<compile_context>
chip_gen: v7x
topology: tpu7x:2x2x1
jax: 0.10.0
libtpu: 0.0.40
codegen_flags: <defaults>
</compile_context>

<pallas_src>
import numpy as np
import jax
import jax.numpy as jnp
from jax import lax
from jax.experimental import pallas as pl
from jax.experimental.pallas import tpu as pltpu


# 3x3x3 tap offsets in tap-major order (kd, kh, kw).  This order must match
# both the im2col row order built in the kernel and the (Cout, 27*Cin) weight
# reshape in double_conv().
_TAPS = [(dd, dh, dw) for dd in (-1, 0, 1) for dh in (-1, 0, 1) for dw in (-1, 0, 1)]


def _tap_masks(D, H, W):
    """(27, D*H*W) float32 validity masks for a 'same' 3x3x3 conv (pad=1)."""
    d = np.arange(D)[:, None, None]
    h = np.arange(H)[None, :, None]
    w = np.arange(W)[None, None, :]
    masks = []
    for dd, dh, dw in _TAPS:
        m = ((d + dd >= 0) & (d + dd < D) &
             (h + dh >= 0) & (h + dh < H) &
             (w + dw >= 0) & (w + dw < W))
        masks.append(np.broadcast_to(m, (D, H, W)).astype(np.float32).reshape(-1))
    return np.stack(masks)                                    # (27, P)


# ----------------------------- kernels --------------------------------------

def _make_conv_bn_kernel(D, H, W, cin, fuse_input_bn_relu):
    """Conv3d(k=3, p=1, no bias) on one sample + fused BN batch statistics.

    Optionally applies the previous layer's BatchNorm affine + ReLU to the
    input while it is loaded (used for the second conv of DoubleConv).
    """
    P = D * H * W
    offsets = [dd * H * W + dh * W + dw for dd, dh, dw in _TAPS]

    def kernel(*refs):
        if fuse_input_bn_relu:
            (x_ref, scale_ref, shift_ref, w_ref, mask_ref,
             y_ref, s_ref, q_ref, col_ref) = refs
        else:
            x_ref, w_ref, mask_ref, y_ref, s_ref, q_ref, col_ref = refs

        x = x_ref[...]                                        # (Cin, P) f32
        if fuse_input_bn_relu:
            # Previous layer's BN affine + ReLU fused into the input path:
            # the mid tensor makes exactly one HBM round trip.
            x = jnp.maximum(x * scale_ref[...] + shift_ref[...], 0.0)

        # Assemble the (27*Cin, P) im2col block.  Each tap is a lane-axis roll
        # (XLU) of the (Cin, P) sample times a precomputed boundary mask; the
        # wrap-around lanes introduced by the roll are exactly the
        # out-of-range voxels, which the mask zeroes (== zero padding).
        # All scratch stores are lane-dense f32 sublane stores.
        for k, off in enumerate(offsets):
            shifted = x if off == 0 else pltpu.roll(x, shift=(-off) % P, axis=1)
            col_ref[k * cin:(k + 1) * cin, :] = shifted * mask_ref[k:k + 1, :]

        # Single MXU matmul over the fused K = 27*Cin contraction:
        # bf16 (Cout, 27*Cin) @ bf16 (27*Cin, P) -> f32 (Cout, P).
        # The im2col scratch is cast to bf16 once, in bulk (not per tap).
        acc = jnp.dot(w_ref[...], col_ref[...].astype(jnp.bfloat16),
                      preferred_element_type=jnp.float32)

        y_ref[...] = acc                                      # lane-dense store

        # Fused BatchNorm batch statistics for this sample: per-channel sum
        # and *centered* sum of squares (Chan-combined across samples in glue,
        # so no E[y^2]-E[y]^2 cancellation).
        s = jnp.sum(acc, axis=-1, keepdims=True)              # (Cout, 1)
        m = s * (1.0 / P)
        c = acc - m
        s_ref[...] = s
        q_ref[...] = jnp.sum(c * c, axis=-1, keepdims=True)

    return kernel


def _bn_relu_kernel(y_ref, scale_ref, shift_ref, o_ref):
    """Elementwise BatchNorm affine + ReLU on a lane-dense (rows, P) block."""
    o_ref[...] = jnp.maximum(y_ref[...] * scale_ref[...] + shift_ref[...], 0.0)


# ----------------------------- wrappers -------------------------------------

def conv3d_bn_stats_pallas(x, w_flat, scale=None, shift=None, *, dims):
    """3x3x3 'same' conv (stride 1, no bias) + fused BN batch statistics.

    x       : (N, Cin, P) float32, P = D*H*W, channels-first flattened.
    w_flat  : (Cout, 27*Cin) bfloat16, tap-major / channel-minor K ordering.
    scale/shift : optional (Cin, 1) f32 -- previous layer's BN affine + ReLU
                  fused into the input path (inner DoubleConv layer).
    Returns y (N, Cout, P) f32, per-sample channel sums (N, Cout, 1) and
    centered sums of squares (N, Cout, 1).
    """
    # TODO(synk): for volumes / channel counts where one (27*Cin, P) im2col
    # block no longer fits VMEM (v7x: 64 MiB physical), tile the depth axis
    # with a 1-voxel halo and set vmem_limit_bytes explicitly.
    # TODO(synk): for large N, block several samples per grid step (im2col of
    # (27*Cin, Nb*P)) to amortize the ~0.35us/step pipeline overhead; at small
    # N the per-sample grid keeps both v7x TensorCores busy instead.
    N, Cin, P = x.shape
    D, H, W = dims
    assert P == D * H * W
    Cout, K = w_flat.shape
    assert K == 27 * Cin
    fused = scale is not None

    kernel = _make_conv_bn_kernel(D, H, W, Cin, fused)
    masks = jnp.asarray(_tap_masks(D, H, W))                  # (27, P) f32

    in_specs = [pl.BlockSpec((None, Cin, P), lambda n: (n, 0, 0))]
    operands = [x]
    if fused:
        in_specs += [pl.BlockSpec((Cin, 1), lambda n: (0, 0)),
                     pl.BlockSpec((Cin, 1), lambda n: (0, 0))]
        operands += [scale, shift]
    # Weights / masks: full blocks with constant index maps -> VMEM-resident.
    in_specs += [pl.BlockSpec((Cout, K), lambda n: (0, 0)),
                 pl.BlockSpec((27, P), lambda n: (0, 0))]
    operands += [w_flat, masks]

    out_shape = (jax.ShapeDtypeStruct((N, Cout, P), jnp.float32),
                 jax.ShapeDtypeStruct((N, Cout, 1), jnp.float32),
                 jax.ShapeDtypeStruct((N, Cout, 1), jnp.float32))
    out_specs = (pl.BlockSpec((None, Cout, P), lambda n: (n, 0, 0)),
                 pl.BlockSpec((None, Cout, 1), lambda n: (n, 0, 0)),
                 pl.BlockSpec((None, Cout, 1), lambda n: (n, 0, 0)))

    return pl.pallas_call(
        kernel,
        out_shape=out_shape,
        grid=(N,),
        in_specs=in_specs,
        out_specs=out_specs,
        scratch_shapes=[pltpu.VMEM((K, P), jnp.float32)],
        compiler_params=pltpu.CompilerParams(
            dimension_semantics=("parallel",)),
    )(*operands)


def bn_relu_pallas(y, scale, shift):
    """Standalone BN affine + ReLU for the final layer.

    y: (N, C, P) f32; scale/shift: (C, 1) f32.  Runs on wide lane-dense
    (rows, P) row blocks spanning multiple samples/channels per grid step
    (this mem-bound pass benefits most from big lane-dense blocks).
    """
    N, C, P = y.shape
    R = N * C
    y2d = y.reshape(R, P)                                     # free reshape
    sc = jnp.tile(scale, (N, 1))                              # (R, 1)
    sh = jnp.tile(shift, (N, 1))

    # Largest row block that divides R, is sublane-friendly, and stays under a
    # conservative per-block VMEM budget (blocks are double-buffered).
    budget = 8 << 20
    rb = R
    for d in range(R, 0, -1):
        if R % d == 0 and (d % 8 == 0 or d == R) and d * P * 4 <= budget:
            rb = d
            break

    out = pl.pallas_call(
        _bn_relu_kernel,
        out_shape=jax.ShapeDtypeStruct((R, P), jnp.float32),
        grid=(R // rb,),
        in_specs=[pl.BlockSpec((rb, P), lambda i: (i, 0)),
                  pl.BlockSpec((rb, 1), lambda i: (i, 0)),
                  pl.BlockSpec((rb, 1), lambda i: (i, 0))],
        out_specs=pl.BlockSpec((rb, P), lambda i: (i, 0)),
        compiler_params=pltpu.CompilerParams(
            dimension_semantics=("parallel",)),
    )(y2d, sc, sh)
    return out.reshape(N, C, P)


def _bn_affine(s, q, gamma, beta, samples_per_image, eps=1e-5):
    """Combine per-sample (sum, centered sum of squares) into BN scale/shift.

    Parallel (Chan) variance combination -> no cancellation.  Biased variance,
    matching BatchNorm3d training-mode normalization of a fresh module.
    """
    n = s.shape[0]
    p = samples_per_image
    mean_n = s[:, :, 0] / p                                   # (N, C)
    mean = jnp.mean(mean_n, axis=0)                           # (C,)
    m2 = jnp.sum(q[:, :, 0], axis=0) + p * jnp.sum((mean_n - mean) ** 2, axis=0)
    var = m2 / (n * p)
    scale = gamma * lax.rsqrt(var + eps)
    shift = beta - mean * scale
    return (scale.reshape(-1, 1).astype(jnp.float32),
            shift.reshape(-1, 1).astype(jnp.float32))


def double_conv(x_ncdhw, params, *, eps=1e-5):
    """DoubleConv forward: (Conv3d k3 p1 -> BatchNorm3d(train) -> ReLU) x 2.

    Input and output are NCDHW float32, matching the PyTorch module.
    """
    N, Cin, D, H, W = x_ncdhw.shape
    P = D * H * W
    Cmid = params["w1"].shape[0]
    Cout = params["w2"].shape[0]

    # Channels-first flattened view: free reshape, no XLA transposes around
    # the kernels for activations.
    x = x_ncdhw.reshape(N, Cin, P).astype(jnp.float32)

    # Weights: (Cout, Cin, 3, 3, 3) -> (Cout, 27*Cin) with K ordered tap-major
    # / channel-minor (matches the im2col row order); cast to bf16 once.
    w1 = jnp.transpose(params["w1"], (0, 2, 3, 4, 1)).reshape(
        Cmid, 27 * Cin).astype(jnp.bfloat16)
    w2 = jnp.transpose(params["w2"], (0, 2, 3, 4, 1)).reshape(
        Cout, 27 * Cmid).astype(jnp.bfloat16)

    # Conv biases b1/b2 are intentionally not applied: a per-channel bias
    # before training-mode BatchNorm is exactly absorbed by the mean/shift.

    # Layer 1: conv + fused BN statistics.
    y1, s1, q1 = conv3d_bn_stats_pallas(x, w1, dims=(D, H, W))
    sc1, sh1 = _bn_affine(s1, q1, params["g1"], params["be1"], P, eps)

    # Layer 2: layer-1's BN affine + ReLU fused into conv-2's input path.
    y2, s2, q2 = conv3d_bn_stats_pallas(y1, w2, sc1, sh1, dims=(D, H, W))
    sc2, sh2 = _bn_affine(s2, q2, params["g2"], params["be2"], P, eps)

    # Final standalone BN affine + ReLU (needs the global stats of y2).
    out = bn_relu_pallas(y2, sc2, sh2)                        # (N, Cout, P)
    return out.reshape(N, Cout, D, H, W)                      # free reshape


# ----------------------------- params & reference ----------------------------

def init_params(key, in_channels, out_channels):
    k1, k2, k3, k4 = jax.random.split(key, 4)
    b1 = 1.0 / (in_channels * 27) ** 0.5
    b2 = 1.0 / (out_channels * 27) ** 0.5
    return dict(
        w1=jax.random.uniform(k1, (out_channels, in_channels, 3, 3, 3),
                              jnp.float32, -b1, b1),
        b1=jax.random.uniform(k2, (out_channels,), jnp.float32, -b1, b1),
        w2=jax.random.uniform(k3, (out_channels, out_channels, 3, 3, 3),
                              jnp.float32, -b2, b2),
        b2=jax.random.uniform(k4, (out_channels,), jnp.float32, -b2, b2),
        g1=jnp.ones((out_channels,), jnp.float32),
        be1=jnp.zeros((out_channels,), jnp.float32),
        g2=jnp.ones((out_channels,), jnp.float32),
        be2=jnp.zeros((out_channels,), jnp.float32),
    )


def _ref_double_conv(x, params, eps=1e-5):
    def conv(x, w, b):
        y = lax.conv_general_dilated(
            x, w, (1, 1, 1), ((1, 1), (1, 1), (1, 1)),
            dimension_numbers=("NCDHW", "OIDHW", "NCDHW"),
            precision=lax.Precision.HIGHEST)
        return y + b.reshape(1, -1, 1, 1, 1)

    def bn_relu(y, g, be):
        mean = jnp.mean(y, axis=(0, 2, 3, 4), keepdims=True)
        var = jnp.var(y, axis=(0, 2, 3, 4), keepdims=True)
        yn = (y - mean) / jnp.sqrt(var + eps)
        return jnp.maximum(yn * g.reshape(1, -1, 1, 1, 1)
                           + be.reshape(1, -1, 1, 1, 1), 0.0)

    h = bn_relu(conv(x, params["w1"], params["b1"]), params["g1"], params["be1"])
    return bn_relu(conv(h, params["w2"], params["b2"]), params["g2"], params["be2"])


# ----------------------------- main ------------------------------------------

if __name__ == "__main__":
    key = jax.random.PRNGKey(0)
    kx, kp = jax.random.split(key)

    N, C_IN, C_OUT, D, H, W = 2, 4, 8, 8, 8, 8
    x = jax.random.normal(kx, (N, C_IN, D, H, W), jnp.float32)
    params = init_params(kp, C_IN, C_OUT)

    fn = jax.jit(double_conv)
    out = jax.block_until_ready(fn(x, params))
    assert out.shape == (N, C_OUT, D, H, W)

    ref = _ref_double_conv(x, params)
    max_err = float(jnp.max(jnp.abs(out - ref)))
    # bf16 MXU operands (f32 accumulation) are intentional per the perf review;
    # against the f32 HIGHEST reference the expected worst-case deviation after
    # two BN-normalized conv layers is ~2e-2 on unit-variance outputs -> gate
    # at 5e-2 (documented relaxed tolerance).
    if not jnp.allclose(out, ref, rtol=1e-2, atol=5e-2):
        raise AssertionError(
            f"Pallas DoubleConv mismatch (max abs err {max_err:.3e})")
    print("KERNEL_OK")
</pallas_src>

<mosaic_0001>
module attributes {stable_mosaic.version = 11 : i64} {
  func.func @kernel(%arg0: i32, %arg1: memref<1x4x512xf32, #tpu.memory_space<vmem>>, %arg2: memref<8x108xbf16, #tpu.memory_space<vmem>>, %arg3: memref<27x512xf32, #tpu.memory_space<vmem>>, %arg4: memref<1x8x512xf32, #tpu.memory_space<vmem>>, %arg5: memref<1x8x1xf32, #tpu.memory_space<vmem>>, %arg6: memref<1x8x1xf32, #tpu.memory_space<vmem>>, %arg7: memref<108x512xf32, #tpu.memory_space<vmem>>) attributes {dimension_semantics = [#tpu.dimension_semantics<parallel>], iteration_bounds = array<i64: 2>, scalar_prefetch = 0 : i64, scratch_operands = 1 : i64, tpu.core_type = #tpu.core_type<tc>, window_params = [{transform_indices = @transform_0, window_bounds = array<i64: 1, 4, 512>}, {pipeline_mode = #tpu.pipeline_mode<synchronous>, transform_indices = @transform_1, window_bounds = array<i64: 8, 108>}, {pipeline_mode = #tpu.pipeline_mode<synchronous>, transform_indices = @transform_2, window_bounds = array<i64: 27, 512>}, {transform_indices = @transform_3, window_bounds = array<i64: 1, 8, 512>}, {transform_indices = @transform_4, window_bounds = array<i64: 1, 8, 1>}, {transform_indices = @transform_5, window_bounds = array<i64: 1, 8, 1>}]} {
    %c0 = arith.constant 0 : index
    %c0_0 = arith.constant 0 : index
    %c0_1 = arith.constant 0 : index
    %0 = vector.load %arg1[%c0, %c0_0, %c0_1] : memref<1x4x512xf32, #tpu.memory_space<vmem>>, vector<1x4x512xf32>
    %1 = vector.shape_cast %0 : vector<1x4x512xf32> to vector<4x512xf32>
    %c73_i32 = arith.constant 73 : i32
    %2 = tpu.dynamic_rotate %1 by %c73_i32 dim 1 : vector<4x512xf32>, i32 -> vector<4x512xf32>
    %c0_2 = arith.constant 0 : index
    %c0_3 = arith.constant 0 : index
    %3 = vector.load %arg3[%c0_2, %c0_3] : memref<27x512xf32, #tpu.memory_space<vmem>>, vector<1x512xf32>
    %4 = vector.broadcast %3 : vector<1x512xf32> to vector<4x512xf32>
    %5 = arith.mulf %2, %4 : vector<4x512xf32>
    %c0_4 = arith.constant 0 : index
    %c0_5 = arith.constant 0 : index
    %6 = vector.load %arg7[%c0_4, %c0_5] : memref<108x512xf32, #tpu.memory_space<vmem>>, vector<4x512xf32>
    tpu.vector_store %arg7[%c0_4, %c0_5], %5 {strides = array<i32>} : memref<108x512xf32, #tpu.memory_space<vmem>>, vector<4x512xf32>,
    %c72_i32 = arith.constant 72 : i32
    %7 = tpu.dynamic_rotate %1 by %c72_i32 dim 1 : vector<4x512xf32>, i32 -> vector<4x512xf32>
    %c1 = arith.constant 1 : index
    %c0_6 = arith.constant 0 : index
    %8 = vector.load %arg3[%c1, %c0_6] : memref<27x512xf32, #tpu.memory_space<vmem>>, vector<1x512xf32>
    %9 = vector.broadcast %8 : vector<1x512xf32> to vector<4x512xf32>
    %10 = arith.mulf %7, %9 : vector<4x512xf32>
    %c4 = arith.constant 4 : index
    %c0_7 = arith.constant 0 : index
    %11 = vector.load %arg7[%c4, %c0_7] : memref<108x512xf32, #tpu.memory_space<vmem>>, vector<4x512xf32>
    tpu.vector_store %arg7[%c4, %c0_7], %10 {strides = array<i32>} : memref<108x512xf32, #tpu.memory_space<vmem>>, vector<4x512xf32>,
    %c71_i32 = arith.constant 71 : i32
    %12 = tpu.dynamic_rotate %1 by %c71_i32 dim 1 : vector<4x512xf32>, i32 -> vector<4x512xf32>
    %c2 = arith.constant 2 : index
    %c0_8 = arith.constant 0 : index
    %13 = vector.load %arg3[%c2, %c0_8] : memref<27x512xf32, #tpu.memory_space<vmem>>, vector<1x512xf32>
    %14 = vector.broadcast %13 : vector<1x512xf32> to vector<4x512xf32>
    %15 = arith.mulf %12, %14 : vector<4x512xf32>
    %c8 = arith.constant 8 : index
    %c0_9 = arith.constant 0 : index
    %16 = vector.load %arg7[%c8, %c0_9] : memref<108x512xf32, #tpu.memory_space<vmem>>, vector<4x512xf32>
    tpu.vector_store %arg7[%c8, %c0_9], %15 {strides = array<i32>} : memref<108x512xf32, #tpu.memory_space<vmem>>, vector<4x512xf32>,
    %c65_i32 = arith.constant 65 : i32
    %17 = tpu.dynamic_rotate %1 by %c65_i32 dim 1 : vector<4x512xf32>, i32 -> vector<4x512xf32>
    %c3 = arith.constant 3 : index
    %c0_10 = arith.constant 0 : index
    %18 = vector.load %arg3[%c3, %c0_10] : memref<27x512xf32, #tpu.memory_space<vmem>>, vector<1x512xf32>
    %19 = vector.broadcast %18 : vector<1x512xf32> to vector<4x512xf32>
    %20 = arith.mulf %17, %19 : vector<4x512xf32>
    %c12 = arith.constant 12 : index
    %c0_11 = arith.constant 0 : index
    %21 = vector.load %arg7[%c12, %c0_11] : memref<108x512xf32, #tpu.memory_space<vmem>>, vector<4x512xf32>
    tpu.vector_store %arg7[%c12, %c0_11], %20 {strides = array<i32>} : memref<108x512xf32, #tpu.memory_space<vmem>>, vector<4x512xf32>,
    %c64_i32 = arith.constant 64 : i32
    %22 = tpu.dynamic_rotate %1 by %c64_i32 dim 1 : vector<4x512xf32>, i32 -> vector<4x512xf32>
    %c4_12 = arith.constant 4 : index
    %c0_13 = arith.constant 0 : index
    %23 = vector.load %arg3[%c4_12, %c0_13] : memref<27x512xf32, #tpu.memory_space<vmem>>, vector<1x512xf32>
    %24 = vector.broadcast %23 : vector<1x512xf32> to vector<4x512xf32>
    %25 = arith.mulf %22, %24 : vector<4x512xf32>
    %c16 = arith.constant 16 : index
    %c0_14 = arith.constant 0 : index
    %26 = vector.load %arg7[%c16, %c0_14] : memref<108x512xf32, #tpu.memory_space<vmem>>, vector<4x512xf32>
    tpu.vector_store %arg7[%c16, %c0_14], %25 {strides = array<i32>} : memref<108x512xf32, #tpu.memory_space<vmem>>, vector<4x512xf32>,
    %c63_i32 = arith.constant 63 : i32
    %27 = tpu.dynamic_rotate %1 by %c63_i32 dim 1 : vector<4x512xf32>, i32 -> vector<4x512xf32>
    %c5 = arith.constant 5 : index
    %c0_15 = arith.constant 0 : index
    %28 = vector.load %arg3[%c5, %c0_15] : memref<27x512xf32, #tpu.memory_space<vmem>>, vector<1x512xf32>
    %29 = vector.broadcast %28 : vector<1x512xf32> to vector<4x512xf32>
    %30 = arith.mulf %27, %29 : vector<4x512xf32>
    %c20 = arith.constant 20 : index
    %c0_16 = arith.constant 0 : index
    %31 = vector.load %arg7[%c20, %c0_16] : memref<108x512xf32, #tpu.memory_space<vmem>>, vector<4x512xf32>
    tpu.vector_store %arg7[%c20, %c0_16], %30 {strides = array<i32>} : memref<108x512xf32, #tpu.memory_space<vmem>>, vector<4x512xf32>,
    %c57_i32 = arith.constant 57 : i32
    %32 = tpu.dynamic_rotate %1 by %c57_i32 dim 1 : vector<4x512xf32>, i32 -> vector<4x512xf32>
    %c6 = arith.constant 6 : index
    %c0_17 = arith.constant 0 : index
    %33 = vector.load %arg3[%c6, %c0_17] : memref<27x512xf32, #tpu.memory_space<vmem>>, vector<1x512xf32>
    %34 = vector.broadcast %33 : vector<1x512xf32> to vector<4x512xf32>
    %35 = arith.mulf %32, %34 : vector<4x512xf32>
    %c24 = arith.constant 24 : index
    %c0_18 = arith.constant 0 : index
    %36 = vector.load %arg7[%c24, %c0_18] : memref<108x512xf32, #tpu.memory_space<vmem>>, vector<4x512xf32>
    tpu.vector_store %arg7[%c24, %c0_18], %35 {strides = array<i32>} : memref<108x512xf32, #tpu.memory_space<vmem>>, vector<4x512xf32>,
    %c56_i32 = arith.constant 56 : i32
    %37 = tpu.dynamic_rotate %1 by %c56_i32 dim 1 : vector<4x512xf32>, i32 -> vector<4x512xf32>
    %c7 = arith.constant 7 : index
    %c0_19 = arith.constant 0 : index
    %38 = vector.load %arg3[%c7, %c0_19] : memref<27x512xf32, #tpu.memory_space<vmem>>, vector<1x512xf32>
    %39 = vector.broadcast %38 : vector<1x512xf32> to vector<4x512xf32>
    %40 = arith.mulf %37, %39 : vector<4x512xf32>
    %c28 = arith.constant 28 : index
    %c0_20 = arith.constant 0 : index
    %41 = vector.load %arg7[%c28, %c0_20] : memref<108x512xf32, #tpu.memory_space<vmem>>, vector<4x512xf32>
    tpu.vector_store %arg7[%c28, %c0_20], %40 {strides = array<i32>} : memref<108x512xf32, #tpu.memory_space<vmem>>, vector<4x512xf32>,
    %c55_i32 = arith.constant 55 : i32
    %42 = tpu.dynamic_rotate %1 by %c55_i32 dim 1 : vector<4x512xf32>, i32 -> vector<4x512xf32>
    %c8_21 = arith.constant 8 : index
    %c0_22 = arith.constant 0 : index
    %43 = vector.load %arg3[%c8_21, %c0_22] : memref<27x512xf32, #tpu.memory_space<vmem>>, vector<1x512xf32>
    %44 = vector.broadcast %43 : vector<1x512xf32> to vector<4x512xf32>
    %45 = arith.mulf %42, %44 : vector<4x512xf32>
    %c32 = arith.constant 32 : index
    %c0_23 = arith.constant 0 : index
    %46 = vector.load %arg7[%c32, %c0_23] : memref<108x512xf32, #tpu.memory_space<vmem>>, vector<4x512xf32>
    tpu.vector_store %arg7[%c32, %c0_23], %45 {strides = array<i32>} : memref<108x512xf32, #tpu.memory_space<vmem>>, vector<4x512xf32>,
    %c9_i32 = arith.constant 9 : i32
    %47 = tpu.dynamic_rotate %1 by %c9_i32 dim 1 : vector<4x512xf32>, i32 -> vector<4x512xf32>
    %c9 = arith.constant 9 : index
    %c0_24 = arith.constant 0 : index
    %48 = vector.load %arg3[%c9, %c0_24] : memref<27x512xf32, #tpu.memory_space<vmem>>, vector<1x512xf32>
    %49 = vector.broadcast %48 : vector<1x512xf32> to vector<4x512xf32>
    %50 = arith.mulf %47, %49 : vector<4x512xf32>
    %c36 = arith.constant 36 : index
    %c0_25 = arith.constant 0 : index
    %51 = vector.load %arg7[%c36, %c0_25] : memref<108x512xf32, #tpu.memory_space<vmem>>, vector<4x512xf32>
    tpu.vector_store %arg7[%c36, %c0_25], %50 {strides = array<i32>} : memref<108x512xf32, #tpu.memory_space<vmem>>, vector<4x512xf32>,
    %c8_i32 = arith.constant 8 : i32
    %52 = tpu.dynamic_rotate %1 by %c8_i32 dim 1 : vector<4x512xf32>, i32 -> vector<4x512xf32>
    %c10 = arith.constant 10 : index
    %c0_26 = arith.constant 0 : index
    %53 = vector.load %arg3[%c10, %c0_26] : memref<27x512xf32, #tpu.memory_space<vmem>>, vector<1x512xf32>
    %54 = vector.broadcast %53 : vector<1x512xf32> to vector<4x512xf32>
    %55 = arith.mulf %52, %54 : vector<4x512xf32>
    %c40 = arith.constant 40 : index
    %c0_27 = arith.constant 0 : index
    %56 = vector.load %arg7[%c40, %c0_27] : memref<108x512xf32, #tpu.memory_space<vmem>>, vector<4x512xf32>
    tpu.vector_store %arg7[%c40, %c0_27], %55 {strides = array<i32>} : memref<108x512xf32, #tpu.memory_space<vmem>>, vector<4x512xf32>,
    %c7_i32 = arith.constant 7 : i32
    %57 = tpu.dynamic_rotate %1 by %c7_i32 dim 1 : vector<4x512xf32>, i32 -> vector<4x512xf32>
    %c11 = arith.constant 11 : index
    %c0_28 = arith.constant 0 : index
    %58 = vector.load %arg3[%c11, %c0_28] : memref<27x512xf32, #tpu.memory_space<vmem>>, vector<1x512xf32>
    %59 = vector.broadcast %58 : vector<1x512xf32> to vector<4x512xf32>
    %60 = arith.mulf %57, %59 : vector<4x512xf32>
    %c44 = arith.constant 44 : index
    %c0_29 = arith.constant 0 : index
    %61 = vector.load %arg7[%c44, %c0_29] : memref<108x512xf32, #tpu.memory_space<vmem>>, vector<4x512xf32>
    tpu.vector_store %arg7[%c44, %c0_29], %60 {strides = array<i32>} : memref<108x512xf32, #tpu.memory_space<vmem>>, vector<4x512xf32>,
    %c1_i32 = arith.constant 1 : i32
    %62 = tpu.dynamic_rotate %1 by %c1_i32 dim 1 : vector<4x512xf32>, i32 -> vector<4x512xf32>
    %c12_30 = arith.constant 12 : index
    %c0_31 = arith.constant 0 : index
    %63 = vector.load %arg3[%c12_30, %c0_31] : memref<27x512xf32, #tpu.memory_space<vmem>>, vector<1x512xf32>
    %64 = vector.broadcast %63 : vector<1x512xf32> to vector<4x512xf32>
    %65 = arith.mulf %62, %64 : vector<4x512xf32>
    %c48 = arith.constant 48 : index
    %c0_32 = arith.constant 0 : index
    %66 = vector.load %arg7[%c48, %c0_32] : memref<108x512xf32, #tpu.memory_space<vmem>>, vector<4x512xf32>
    tpu.vector_store %arg7[%c48, %c0_32], %65 {strides = array<i32>} : memref<108x512xf32, #tpu.memory_space<vmem>>, vector<4x512xf32>,
    %c13 = arith.constant 13 : index
    %c0_33 = arith.constant 0 : index
    %67 = vector.load %arg3[%c13, %c0_33] : memref<27x512xf32, #tpu.memory_space<vmem>>, vector<1x512xf32>
    %68 = vector.broadcast %67 : vector<1x512xf32> to vector<4x512xf32>
    %69 = arith.mulf %1, %68 : vector<4x512xf32>
    %c52 = arith.constant 52 : index
    %c0_34 = arith.constant 0 : index
    %70 = vector.load %arg7[%c52, %c0_34] : memref<108x512xf32, #tpu.memory_space<vmem>>, vector<4x512xf32>
    tpu.vector_store %arg7[%c52, %c0_34], %69 {strides = array<i32>} : memref<108x512xf32, #tpu.memory_space<vmem>>, vector<4x512xf32>,
    %c511_i32 = arith.constant 511 : i32
    %71 = tpu.dynamic_rotate %1 by %c511_i32 dim 1 : vector<4x512xf32>, i32 -> vector<4x512xf32>
    %c14 = arith.constant 14 : index
    %c0_35 = arith.constant 0 : index
    %72 = vector.load %arg3[%c14, %c0_35] : memref<27x512xf32, #tpu.memory_space<vmem>>, vector<1x512xf32>
    %73 = vector.broadcast %72 : vector<1x512xf32> to vector<4x512xf32>
    %74 = arith.mulf %71, %73 : vector<4x512xf32>
    %c56 = arith.constant 56 : index
    %c0_36 = arith.constant 0 : index
    %75 = vector.load %arg7[%c56, %c0_36] : memref<108x512xf32, #tpu.memory_space<vmem>>, vector<4x512xf32>
    tpu.vector_store %arg7[%c56, %c0_36], %74 {strides = array<i32>} : memref<108x512xf32, #tpu.memory_space<vmem>>, vector<4x512xf32>,
    %c505_i32 = arith.constant 505 : i32
    %76 = tpu.dynamic_rotate %1 by %c505_i32 dim 1 : vector<4x512xf32>, i32 -> vector<4x512xf32>
    %c15 = arith.constant 15 : index
    %c0_37 = arith.constant 0 : index
    %77 = vector.load %arg3[%c15, %c0_37] : memref<27x512xf32, #tpu.memory_space<vmem>>, vector<1x512xf32>
    %78 = vector.broadcast %77 : vector<1x512xf32> to vector<4x512xf32>
    %79 = arith.mulf %76, %78 : vector<4x512xf32>
    %c60 = arith.constant 60 : index
    %c0_38 = arith.constant 0 : index
    %80 = vector.load %arg7[%c60, %c0_38] : memref<108x512xf32, #tpu.memory_space<vmem>>, vector<4x512xf32>
    tpu.vector_store %arg7[%c60, %c0_38], %79 {strides = array<i32>} : memref<108x512xf32, #tpu.memory_space<vmem>>, vector<4x512xf32>,
    %c504_i32 = arith.constant 504 : i32
    %81 = tpu.dynamic_rotate %1 by %c504_i32 dim 1 : vector<4x512xf32>, i32 -> vector<4x512xf32>
    %c16_39 = arith.constant 16 : index
    %c0_40 = arith.constant 0 : index
    %82 = vector.load %arg3[%c16_39, %c0_40] : memref<27x512xf32, #tpu.memory_space<vmem>>, vector<1x512xf32>
    %83 = vector.broadcast %82 : vector<1x512xf32> to vector<4x512xf32>
    %84 = arith.mulf %81, %83 : vector<4x512xf32>
    %c64 = arith.constant 64 : index
    %c0_41 = arith.constant 0 : index
    %85 = vector.load %arg7[%c64, %c0_41] : memref<108x512xf32, #tpu.memory_space<vmem>>, vector<4x512xf32>
    tpu.vector_store %arg7[%c64, %c0_41], %84 {strides = array<i32>} : memref<108x512xf32, #tpu.memory_space<vmem>>, vector<4x512xf32>,
    %c503_i32 = arith.constant 503 : i32
    %86 = tpu.dynamic_rotate %1 by %c503_i32 dim 1 : vector<4x512xf32>, i32 -> vector<4x512xf32>
    %c17 = arith.constant 17 : index
    %c0_42 = arith.constant 0 : index
    %87 = vector.load %arg3[%c17, %c0_42] : memref<27x512xf32, #tpu.memory_space<vmem>>, vector<1x512xf32>
    %88 = vector.broadcast %87 : vector<1x512xf32> to vector<4x512xf32>
    %89 = arith.mulf %86, %88 : vector<4x512xf32>
    %c68 = arith.constant 68 : index
    %c0_43 = arith.constant 0 : index
    %90 = vector.load %arg7[%c68, %c0_43] : memref<108x512xf32, #tpu.memory_space<vmem>>, vector<4x512xf32>
    tpu.vector_store %arg7[%c68, %c0_43], %89 {strides = array<i32>} : memref<108x512xf32, #tpu.memory_space<vmem>>, vector<4x512xf32>,
    %c457_i32 = arith.constant 457 : i32
    %91 = tpu.dynamic_rotate %1 by %c457_i32 dim 1 : vector<4x512xf32>, i32 -> vector<4x512xf32>
    %c18 = arith.constant 18 : index
    %c0_44 = arith.constant 0 : index
    %92 = vector.load %arg3[%c18, %c0_44] : memref<27x512xf32, #tpu.memory_space<vmem>>, vector<1x512xf32>
    %93 = vector.broadcast %92 : vector<1x512xf32> to vector<4x512xf32>
    %94 = arith.mulf %91, %93 : vector<4x512xf32>
    %c72 = arith.constant 72 : index
    %c0_45 = arith.constant 0 : index
    %95 = vector.load %arg7[%c72, %c0_45] : memref<108x512xf32, #tpu.memory_space<vmem>>, vector<4x512xf32>
    tpu.vector_store %arg7[%c72, %c0_45], %94 {strides = array<i32>} : memref<108x512xf32, #tpu.memory_space<vmem>>, vector<4x512xf32>,
    %c456_i32 = arith.constant 456 : i32
    %96 = tpu.dynamic_rotate %1 by %c456_i32 dim 1 : vector<4x512xf32>, i32 -> vector<4x512xf32>
    %c19 = arith.constant 19 : index
    %c0_46 = arith.constant 0 : index
    %97 = vector.load %arg3[%c19, %c0_46] : memref<27x512xf32, #tpu.memory_space<vmem>>, vector<1x512xf32>
    %98 = vector.broadcast %97 : vector<1x512xf32> to vector<4x512xf32>
    %99 = arith.mulf %96, %98 : vector<4x512xf32>
    %c76 = arith.constant 76 : index
    %c0_47 = arith.constant 0 : index
    %100 = vector.load %arg7[%c76, %c0_47] : memref<108x512xf32, #tpu.memory_space<vmem>>, vector<4x512xf32>
    tpu.vector_store %arg7[%c76, %c0_47], %99 {strides = array<i32>} : memref<108x512xf32, #tpu.memory_space<vmem>>, vector<4x512xf32>,
    %c455_i32 = arith.constant 455 : i32
    %101 = tpu.dynamic_rotate %1 by %c455_i32 dim 1 : vector<4x512xf32>, i32 -> vector<4x512xf32>
    %c20_48 = arith.constant 20 : index
    %c0_49 = arith.constant 0 : index
    %102 = vector.load %arg3[%c20_48, %c0_49] : memref<27x512xf32, #tpu.memory_space<vmem>>, vector<1x512xf32>
    %103 = vector.broadcast %102 : vector<1x512xf32> to vector<4x512xf32>
    %104 = arith.mulf %101, %103 : vector<4x512xf32>
    %c80 = arith.constant 80 : index
    %c0_50 = arith.constant 0 : index
    %105 = vector.load %arg7[%c80, %c0_50] : memref<108x512xf32, #tpu.memory_space<vmem>>, vector<4x512xf32>
    tpu.vector_store %arg7[%c80, %c0_50], %104 {strides = array<i32>} : memref<108x512xf32, #tpu.memory_space<vmem>>, vector<4x512xf32>,
    %c449_i32 = arith.constant 449 : i32
    %106 = tpu.dynamic_rotate %1 by %c449_i32 dim 1 : vector<4x512xf32>, i32 -> vector<4x512xf32>
    %c21 = arith.constant 21 : index
    %c0_51 = arith.constant 0 : index
    %107 = vector.load %arg3[%c21, %c0_51] : memref<27x512xf32, #tpu.memory_space<vmem>>, vector<1x512xf32>
    %108 = vector.broadcast %107 : vector<1x512xf32> to vector<4x512xf32>
    %109 = arith.mulf %106, %108 : vector<4x512xf32>
    %c84 = arith.constant 84 : index
    %c0_52 = arith.constant 0 : index
    %110 = vector.load %arg7[%c84, %c0_52] : memref<108x512xf32, #tpu.memory_space<vmem>>, vector<4x512xf32>
    tpu.vector_store %arg7[%c84, %c0_52], %109 {strides = array<i32>} : memref<108x512xf32, #tpu.memory_space<vmem>>, vector<4x512xf32>,
    %c448_i32 = arith.constant 448 : i32
    %111 = tpu.dynamic_rotate %1 by %c448_i32 dim 1 : vector<4x512xf32>, i32 -> vector<4x512xf32>
    %c22 = arith.constant 22 : index
    %c0_53 = arith.constant 0 : index
    %112 = vector.load %arg3[%c22, %c0_53] : memref<27x512xf32, #tpu.memory_space<vmem>>, vector<1x512xf32>
    %113 = vector.broadcast %112 : vector<1x512xf32> to vector<4x512xf32>
    %114 = arith.mulf %111, %113 : vector<4x512xf32>
    %c88 = arith.constant 88 : index
    %c0_54 = arith.constant 0 : index
    %115 = vector.load %arg7[%c88, %c0_54] : memref<108x512xf32, #tpu.memory_space<vmem>>, vector<4x512xf32>
    tpu.vector_store %arg7[%c88, %c0_54], %114 {strides = array<i32>} : memref<108x512xf32, #tpu.memory_space<vmem>>, vector<4x512xf32>,
    %c447_i32 = arith.constant 447 : i32
    %116 = tpu.dynamic_rotate %1 by %c447_i32 dim 1 : vector<4x512xf32>, i32 -> vector<4x512xf32>
    %c23 = arith.constant 23 : index
    %c0_55 = arith.constant 0 : index
    %117 = vector.load %arg3[%c23, %c0_55] : memref<27x512xf32, #tpu.memory_space<vmem>>, vector<1x512xf32>
    %118 = vector.broadcast %117 : vector<1x512xf32> to vector<4x512xf32>
    %119 = arith.mulf %116, %118 : vector<4x512xf32>
    %c92 = arith.constant 92 : index
    %c0_56 = arith.constant 0 : index
    %120 = vector.load %arg7[%c92, %c0_56] : memref<108x512xf32, #tpu.memory_space<vmem>>, vector<4x512xf32>
    tpu.vector_store %arg7[%c92, %c0_56], %119 {strides = array<i32>} : memref<108x512xf32, #tpu.memory_space<vmem>>, vector<4x512xf32>,
    %c441_i32 = arith.constant 441 : i32
    %121 = tpu.dynamic_rotate %1 by %c441_i32 dim 1 : vector<4x512xf32>, i32 -> vector<4x512xf32>
    %c24_57 = arith.constant 24 : index
    %c0_58 = arith.constant 0 : index
    %122 = vector.load %arg3[%c24_57, %c0_58] : memref<27x512xf32, #tpu.memory_space<vmem>>, vector<1x512xf32>
    %123 = vector.broadcast %122 : vector<1x512xf32> to vector<4x512xf32>
    %124 = arith.mulf %121, %123 : vector<4x512xf32>
    %c96 = arith.constant 96 : index
    %c0_59 = arith.constant 0 : index
    %125 = vector.load %arg7[%c96, %c0_59] : memref<108x512xf32, #tpu.memory_space<vmem>>, vector<4x512xf32>
    tpu.vector_store %arg7[%c96, %c0_59], %124 {strides = array<i32>} : memref<108x512xf32, #tpu.memory_space<vmem>>, vector<4x512xf32>,
    %c440_i32 = arith.constant 440 : i32
    %126 = tpu.dynamic_rotate %1 by %c440_i32 dim 1 : vector<4x512xf32>, i32 -> vector<4x512xf32>
    %c25 = arith.constant 25 : index
    %c0_60 = arith.constant 0 : index
    %127 = vector.load %arg3[%c25, %c0_60] : memref<27x512xf32, #tpu.memory_space<vmem>>, vector<1x512xf32>
    %128 = vector.broadcast %127 : vector<1x512xf32> to vector<4x512xf32>
    %129 = arith.mulf %126, %128 : vector<4x512xf32>
    %c100 = arith.constant 100 : index
    %c0_61 = arith.constant 0 : index
    %130 = vector.load %arg7[%c100, %c0_61] : memref<108x512xf32, #tpu.memory_space<vmem>>, vector<4x512xf32>
    tpu.vector_store %arg7[%c100, %c0_61], %129 {strides = array<i32>} : memref<108x512xf32, #tpu.memory_space<vmem>>, vector<4x512xf32>,
    %c439_i32 = arith.constant 439 : i32
    %131 = tpu.dynamic_rotate %1 by %c439_i32 dim 1 : vector<4x512xf32>, i32 -> vector<4x512xf32>
    %c26 = arith.constant 26 : index
    %c0_62 = arith.constant 0 : index
    %132 = vector.load %arg3[%c26, %c0_62] : memref<27x512xf32, #tpu.memory_space<vmem>>, vector<1x512xf32>
    %133 = vector.broadcast %132 : vector<1x512xf32> to vector<4x512xf32>
    %134 = arith.mulf %131, %133 : vector<4x512xf32>
    %c104 = arith.constant 104 : index
    %c0_63 = arith.constant 0 : index
    %135 = vector.load %arg7[%c104, %c0_63] : memref<108x512xf32, #tpu.memory_space<vmem>>, vector<4x512xf32>
    tpu.vector_store %arg7[%c104, %c0_63], %134 {strides = array<i32>} : memref<108x512xf32, #tpu.memory_space<vmem>>, vector<4x512xf32>,
    %c0_64 = arith.constant 0 : index
    %c0_65 = arith.constant 0 : index
    %136 = vector.load %arg2[%c0_64, %c0_65] : memref<8x108xbf16, #tpu.memory_space<vmem>>, vector<8x108xbf16>
    %c0_66 = arith.constant 0 : index
    %c0_67 = arith.constant 0 : index
    %137 = vector.load %arg7[%c0_66, %c0_67] : memref<108x512xf32, #tpu.memory_space<vmem>>, vector<108x512xf32>
    %138 = arith.truncf %137 : vector<108x512xf32> to vector<108x512xbf16>
    %cst = arith.constant dense<0.000000e+00> : vector<8x512xf32>
    %139 = tpu.matmul %136, %138, %cst {dimension_numbers = #tpu.dot_dimension_numbers<[1], [0], [0], [1], [0, 0, 1, 1], [], []>} : vector<8x108xbf16>, vector<108x512xbf16>, vector<8x512xf32> -> vector<8x512xf32>
    %c0_68 = arith.constant 0 : index
    %c0_69 = arith.constant 0 : index
    %c0_70 = arith.constant 0 : index
    %140 = vector.load %arg4[%c0_68, %c0_69, %c0_70] : memref<1x8x512xf32, #tpu.memory_space<vmem>>, vector<1x8x512xf32>
    %141 = vector.shape_cast %140 : vector<1x8x512xf32> to vector<8x512xf32>
    %142 = vector.shape_cast %139 : vector<8x512xf32> to vector<1x8x512xf32>
    tpu.vector_store %arg4[%c0_68, %c0_69, %c0_70], %142 {strides = array<i32>} : memref<1x8x512xf32, #tpu.memory_space<vmem>>, vector<1x8x512xf32>,
    %cst_71 = arith.constant dense<0.000000e+00> : vector<8xf32>
    %143 = vector.multi_reduction <add>, %139, %cst_71 [1] : vector<8x512xf32> to vector<8xf32>
    %144 = vector.shape_cast %143 : vector<8xf32> to vector<8x1xf32>
    %cst_72 = arith.constant 0.001953125 : f32
    %145 = vector.broadcast %cst_72 : f32 to vector<8x1xf32>
    %146 = arith.mulf %144, %145 : vector<8x1xf32>
    %147 = vector.broadcast %146 : vector<8x1xf32> to vector<8x512xf32>
    %148 = arith.subf %139, %147 : vector<8x512xf32>
    %c0_73 = arith.constant 0 : index
    %c0_74 = arith.constant 0 : index
    %c0_75 = arith.constant 0 : index
    %149 = vector.load %arg5[%c0_73, %c0_74, %c0_75] : memref<1x8x1xf32, #tpu.memory_space<vmem>>, vector<1x8x1xf32>
    %150 = vector.shape_cast %149 : vector<1x8x1xf32> to vector<8x1xf32>
    %151 = vector.shape_cast %144 : vector<8x1xf32> to vector<1x8x1xf32>
    tpu.vector_store %arg5[%c0_73, %c0_74, %c0_75], %151 {strides = array<i32>} : memref<1x8x1xf32, #tpu.memory_space<vmem>>, vector<1x8x1xf32>,
    %152 = arith.mulf %148, %148 : vector<8x512xf32>
    %cst_76 = arith.constant dense<0.000000e+00> : vector<8xf32>
    %153 = vector.multi_reduction <add>, %152, %cst_76 [1] : vector<8x512xf32> to vector<8xf32>
    %154 = vector.shape_cast %153 : vector<8xf32> to vector<8x1xf32>
    %c0_77 = arith.constant 0 : index
    %c0_78 = arith.constant 0 : index
    %c0_79 = arith.constant 0 : index
    %155 = vector.load %arg6[%c0_77, %c0_78, %c0_79] : memref<1x8x1xf32, #tpu.memory_space<vmem>>, vector<1x8x1xf32>
    %156 = vector.shape_cast %155 : vector<1x8x1xf32> to vector<8x1xf32>
    %157 = vector.shape_cast %154 : vector<8x1xf32> to vector<1x8x1xf32>
    tpu.vector_store %arg6[%c0_77, %c0_78, %c0_79], %157 {strides = array<i32>} : memref<1x8x1xf32, #tpu.memory_space<vmem>>, vector<1x8x1xf32>,
    return
  }
  func.func @transform_0(%arg0: i32) -> (i32, i32, i32) {
    %c0_i32 = arith.constant 0 : i32
    %c0_i32_0 = arith.constant 0 : i32
    %c0_i32_1 = arith.constant 0 : i32
    return %arg0, %c0_i32, %c0_i32_0 : i32, i32, i32
  }
  func.func @transform_1(%arg0: i32) -> (i32, i32) {
    %c0_i32 = arith.constant 0 : i32
    %c0_i32_0 = arith.constant 0 : i32
    %c0_i32_1 = arith.constant 0 : i32
    return %c0_i32, %c0_i32_0 : i32, i32
  }
  func.func @transform_2(%arg0: i32) -> (i32, i32) {
    %c0_i32 = arith.constant 0 : i32
    %c0_i32_0 = arith.constant 0 : i32
    %c0_i32_1 = arith.constant 0 : i32
    return %c0_i32, %c0_i32_0 : i32, i32
  }
  func.func @transform_3(%arg0: i32) -> (i32, i32, i32) {
    %c0_i32 = arith.constant 0 : i32
    %c0_i32_0 = arith.constant 0 : i32
    %c0_i32_1 = arith.constant 0 : i32
    return %arg0, %c0_i32, %c0_i32_0 : i32, i32, i32
  }
  func.func @transform_4(%arg0: i32) -> (i32, i32, i32) {
    %c0_i32 = arith.constant 0 : i32
    %c0_i32_0 = arith.constant 0 : i32
    %c0_i32_1 = arith.constant 0 : i32
    return %arg0, %c0_i32, %c0_i32_0 : i32, i32, i32
  }
  func.func @transform_5(%arg0: i32) -> (i32, i32, i32) {
    %c0_i32 = arith.constant 0 : i32
    %c0_i32_0 = arith.constant 0 : i32
    %c0_i32_1 = arith.constant 0 : i32
    return %arg0, %c0_i32, %c0_i32_0 : i32, i32, i32
  }
}

module attributes {stable_mosaic.version = 11 : i64} {
  func.func @_bn_relu_kernel(%arg0: i32, %arg1: memref<16x512xf32, #tpu.memory_space<vmem>>, %arg2: memref<16x1xf32, #tpu.memory_space<vmem>>, %arg3: memref<16x1xf32, #tpu.memory_space<vmem>>, %arg4: memref<16x512xf32, #tpu.memory_space<vmem>>) attributes {dimension_semantics = [#tpu.dimension_semantics<parallel>], iteration_bounds = array<i64: 1>, scalar_prefetch = 0 : i64, scratch_operands = 0 : i64, tpu.core_type = #tpu.core_type<tc>, window_params = [{transform_indices = @transform_0, window_bounds = array<i64: 16, 512>}, {transform_indices = @transform_1, window_bounds = array<i64: 16, 1>}, {transform_indices = @transform_2, window_bounds = array<i64: 16, 1>}, {transform_indices = @transform_3, window_bounds = array<i64: 16, 512>}]} {
    %c0 = arith.constant 0 : index
    %c0_0 = arith.constant 0 : index
    %0 = vector.load %arg1[%c0, %c0_0] : memref<16x512xf32, #tpu.memory_space<vmem>>, vector<16x512xf32>
    %c0_1 = arith.constant 0 : index
    %c0_2 = arith.constant 0 : index
    %1 = vector.load %arg2[%c0_1, %c0_2] : memref<16x1xf32, #tpu.memory_space<vmem>>, vector<16x1xf32>
    %2 = vector.broadcast %1 : vector<16x1xf32> to vector<16x512xf32>
    %3 = arith.mulf %0, %2 : vector<16x512xf32>
    %c0_3 = arith.constant 0 : index
    %c0_4 = arith.constant 0 : index
    %4 = vector.load %arg3[%c0_3, %c0_4] : memref<16x1xf32, #tpu.memory_space<vmem>>, vector<16x1xf32>
    %5 = vector.broadcast %4 : vector<16x1xf32> to vector<16x512xf32>
    %6 = arith.addf %3, %5 : vector<16x512xf32>
    %cst = arith.constant 0.000000e+00 : f32
    %7 = vector.broadcast %cst : f32 to vector<16x512xf32>
    %8 = arith.maximumf %6, %7 : vector<16x512xf32>
    %c0_5 = arith.constant 0 : index
    %c0_6 = arith.constant 0 : index
    %9 = vector.load %arg4[%c0_5, %c0_6] : memref<16x512xf32, #tpu.memory_space<vmem>>, vector<16x512xf32>
    tpu.vector_store %arg4[%c0_5, %c0_6], %8 {strides = array<i32>} : memref<16x512xf32, #tpu.memory_space<vmem>>, vector<16x512xf32>,
    return
  }
  func.func @transform_0(%arg0: i32) -> (i32, i32) {
    %c0_i32 = arith.constant 0 : i32
    %c0_i32_0 = arith.constant 0 : i32
    return %arg0, %c0_i32 : i32, i32
  }
  func.func @transform_1(%arg0: i32) -> (i32, i32) {
    %c0_i32 = arith.constant 0 : i32
    %c0_i32_0 = arith.constant 0 : i32
    return %arg0, %c0_i32 : i32, i32
  }
  func.func @transform_2(%arg0: i32) -> (i32, i32) {
    %c0_i32 = arith.constant 0 : i32
    %c0_i32_0 = arith.constant 0 : i32
    return %arg0, %c0_i32 : i32, i32
  }
  func.func @transform_3(%arg0: i32) -> (i32, i32) {
    %c0_i32 = arith.constant 0 : i32
    %c0_i32_0 = arith.constant 0 : i32
    return %arg0, %c0_i32 : i32, i32
  }
}

module attributes {stable_mosaic.version = 11 : i64} {
  func.func @kernel(%arg0: i32, %arg1: memref<1x8x512xf32, #tpu.memory_space<vmem>>, %arg2: memref<8x1xf32, #tpu.memory_space<vmem>>, %arg3: memref<8x1xf32, #tpu.memory_space<vmem>>, %arg4: memref<8x216xbf16, #tpu.memory_space<vmem>>, %arg5: memref<27x512xf32, #tpu.memory_space<vmem>>, %arg6: memref<1x8x512xf32, #tpu.memory_space<vmem>>, %arg7: memref<1x8x1xf32, #tpu.memory_space<vmem>>, %arg8: memref<1x8x1xf32, #tpu.memory_space<vmem>>, %arg9: memref<216x512xf32, #tpu.memory_space<vmem>>) attributes {dimension_semantics = [#tpu.dimension_semantics<parallel>], iteration_bounds = array<i64: 2>, scalar_prefetch = 0 : i64, scratch_operands = 1 : i64, tpu.core_type = #tpu.core_type<tc>, window_params = [{transform_indices = @transform_0, window_bounds = array<i64: 1, 8, 512>}, {pipeline_mode = #tpu.pipeline_mode<synchronous>, transform_indices = @transform_1, window_bounds = array<i64: 8, 1>}, {pipeline_mode = #tpu.pipeline_mode<synchronous>, transform_indices = @transform_2, window_bounds = array<i64: 8, 1>}, {pipeline_mode = #tpu.pipeline_mode<synchronous>, transform_indices = @transform_3, window_bounds = array<i64: 8, 216>}, {pipeline_mode = #tpu.pipeline_mode<synchronous>, transform_indices = @transform_4, window_bounds = array<i64: 27, 512>}, {transform_indices = @transform_5, window_bounds = array<i64: 1, 8, 512>}, {transform_indices = @transform_6, window_bounds = array<i64: 1, 8, 1>}, {transform_indices = @transform_7, window_bounds = array<i64: 1, 8, 1>}]} {
    %c0 = arith.constant 0 : index
    %c0_0 = arith.constant 0 : index
    %c0_1 = arith.constant 0 : index
    %0 = vector.load %arg1[%c0, %c0_0, %c0_1] : memref<1x8x512xf32, #tpu.memory_space<vmem>>, vector<1x8x512xf32>
    %1 = vector.shape_cast %0 : vector<1x8x512xf32> to vector<8x512xf32>
    %c0_2 = arith.constant 0 : index
    %c0_3 = arith.constant 0 : index
    %2 = vector.load %arg2[%c0_2, %c0_3] : memref<8x1xf32, #tpu.memory_space<vmem>>, vector<8x1xf32>
    %3 = vector.broadcast %2 : vector<8x1xf32> to vector<8x512xf32>
    %4 = arith.mulf %1, %3 : vector<8x512xf32>
    %c0_4 = arith.constant 0 : index
    %c0_5 = arith.constant 0 : index
    %5 = vector.load %arg3[%c0_4, %c0_5] : memref<8x1xf32, #tpu.memory_space<vmem>>, vector<8x1xf32>
    %6 = vector.broadcast %5 : vector<8x1xf32> to vector<8x512xf32>
    %7 = arith.addf %4, %6 : vector<8x512xf32>
    %cst = arith.constant 0.000000e+00 : f32
    %8 = vector.broadcast %cst : f32 to vector<8x512xf32>
    %9 = arith.maximumf %7, %8 : vector<8x512xf32>
    %c73_i32 = arith.constant 73 : i32
    %10 = tpu.dynamic_rotate %9 by %c73_i32 dim 1 : vector<8x512xf32>, i32 -> vector<8x512xf32>
    %c0_6 = arith.constant 0 : index
    %c0_7 = arith.constant 0 : index
    %11 = vector.load %arg5[%c0_6, %c0_7] : memref<27x512xf32, #tpu.memory_space<vmem>>, vector<1x512xf32>
    %12 = vector.broadcast %11 : vector<1x512xf32> to vector<8x512xf32>
    %13 = arith.mulf %10, %12 : vector<8x512xf32>
    %c0_8 = arith.constant 0 : index
    %c0_9 = arith.constant 0 : index
    %14 = vector.load %arg9[%c0_8, %c0_9] : memref<216x512xf32, #tpu.memory_space<vmem>>, vector<8x512xf32>
    tpu.vector_store %arg9[%c0_8, %c0_9], %13 {strides = array<i32>} : memref<216x512xf32, #tpu.memory_space<vmem>>, vector<8x512xf32>,
    %c72_i32 = arith.constant 72 : i32
    %15 = tpu.dynamic_rotate %9 by %c72_i32 dim 1 : vector<8x512xf32>, i32 -> vector<8x512xf32>
    %c1 = arith.constant 1 : index
    %c0_10 = arith.constant 0 : index
    %16 = vector.load %arg5[%c1, %c0_10] : memref<27x512xf32, #tpu.memory_space<vmem>>, vector<1x512xf32>
    %17 = vector.broadcast %16 : vector<1x512xf32> to vector<8x512xf32>
    %18 = arith.mulf %15, %17 : vector<8x512xf32>
    %c8 = arith.constant 8 : index
    %c0_11 = arith.constant 0 : index
    %19 = vector.load %arg9[%c8, %c0_11] : memref<216x512xf32, #tpu.memory_space<vmem>>, vector<8x512xf32>
    tpu.vector_store %arg9[%c8, %c0_11], %18 {strides = array<i32>} : memref<216x512xf32, #tpu.memory_space<vmem>>, vector<8x512xf32>,
    %c71_i32 = arith.constant 71 : i32
    %20 = tpu.dynamic_rotate %9 by %c71_i32 dim 1 : vector<8x512xf32>, i32 -> vector<8x512xf32>
    %c2 = arith.constant 2 : index
    %c0_12 = arith.constant 0 : index
    %21 = vector.load %arg5[%c2, %c0_12] : memref<27x512xf32, #tpu.memory_space<vmem>>, vector<1x512xf32>
    %22 = vector.broadcast %21 : vector<1x512xf32> to vector<8x512xf32>
    %23 = arith.mulf %20, %22 : vector<8x512xf32>
    %c16 = arith.constant 16 : index
    %c0_13 = arith.constant 0 : index
    %24 = vector.load %arg9[%c16, %c0_13] : memref<216x512xf32, #tpu.memory_space<vmem>>, vector<8x512xf32>
    tpu.vector_store %arg9[%c16, %c0_13], %23 {strides = array<i32>} : memref<216x512xf32, #tpu.memory_space<vmem>>, vector<8x512xf32>,
    %c65_i32 = arith.constant 65 : i32
    %25 = tpu.dynamic_rotate %9 by %c65_i32 dim 1 : vector<8x512xf32>, i32 -> vector<8x512xf32>
    %c3 = arith.constant 3 : index
    %c0_14 = arith.constant 0 : index
    %26 = vector.load %arg5[%c3, %c0_14] : memref<27x512xf32, #tpu.memory_space<vmem>>, vector<1x512xf32>
    %27 = vector.broadcast %26 : vector<1x512xf32> to vector<8x512xf32>
    %28 = arith.mulf %25, %27 : vector<8x512xf32>
    %c24 = arith.constant 24 : index
    %c0_15 = arith.constant 0 : index
    %29 = vector.load %arg9[%c24, %c0_15] : memref<216x512xf32, #tpu.memory_space<vmem>>, vector<8x512xf32>
    tpu.vector_store %arg9[%c24, %c0_15], %28 {strides = array<i32>} : memref<216x512xf32, #tpu.memory_space<vmem>>, vector<8x512xf32>,
    %c64_i32 = arith.constant 64 : i32
    %30 = tpu.dynamic_rotate %9 by %c64_i32 dim 1 : vector<8x512xf32>, i32 -> vector<8x512xf32>
    %c4 = arith.constant 4 : index
    %c0_16 = arith.constant 0 : index
    %31 = vector.load %arg5[%c4, %c0_16] : memref<27x512xf32, #tpu.memory_space<vmem>>, vector<1x512xf32>
    %32 = vector.broadcast %31 : vector<1x512xf32> to vector<8x512xf32>
    %33 = arith.mulf %30, %32 : vector<8x512xf32>
    %c32 = arith.constant 32 : index
    %c0_17 = arith.constant 0 : index
    %34 = vector.load %arg9[%c32, %c0_17] : memref<216x512xf32, #tpu.memory_space<vmem>>, vector<8x512xf32>
    tpu.vector_store %arg9[%c32, %c0_17], %33 {strides = array<i32>} : memref<216x512xf32, #tpu.memory_space<vmem>>, vector<8x512xf32>,
    %c63_i32 = arith.constant 63 : i32
    %35 = tpu.dynamic_rotate %9 by %c63_i32 dim 1 : vector<8x512xf32>, i32 -> vector<8x512xf32>
    %c5 = arith.constant 5 : index
    %c0_18 = arith.constant 0 : index
    %36 = vector.load %arg5[%c5, %c0_18] : memref<27x512xf32, #tpu.memory_space<vmem>>, vector<1x512xf32>
    %37 = vector.broadcast %36 : vector<1x512xf32> to vector<8x512xf32>
    %38 = arith.mulf %35, %37 : vector<8x512xf32>
    %c40 = arith.constant 40 : index
    %c0_19 = arith.constant 0 : index
    %39 = vector.load %arg9[%c40, %c0_19] : memref<216x512xf32, #tpu.memory_space<vmem>>, vector<8x512xf32>
    tpu.vector_store %arg9[%c40, %c0_19], %38 {strides = array<i32>} : memref<216x512xf32, #tpu.memory_space<vmem>>, vector<8x512xf32>,
    %c57_i32 = arith.constant 57 : i32
    %40 = tpu.dynamic_rotate %9 by %c57_i32 dim 1 : vector<8x512xf32>, i32 -> vector<8x512xf32>
    %c6 = arith.constant 6 : index
    %c0_20 = arith.constant 0 : index
    %41 = vector.load %arg5[%c6, %c0_20] : memref<27x512xf32, #tpu.memory_space<vmem>>, vector<1x512xf32>
    %42 = vector.broadcast %41 : vector<1x512xf32> to vector<8x512xf32>
    %43 = arith.mulf %40, %42 : vector<8x512xf32>
    %c48 = arith.constant 48 : index
    %c0_21 = arith.constant 0 : index
    %44 = vector.load %arg9[%c48, %c0_21] : memref<216x512xf32, #tpu.memory_space<vmem>>, vector<8x512xf32>
    tpu.vector_store %arg9[%c48, %c0_21], %43 {strides = array<i32>} : memref<216x512xf32, #tpu.memory_space<vmem>>, vector<8x512xf32>,
    %c56_i32 = arith.constant 56 : i32
    %45 = tpu.dynamic_rotate %9 by %c56_i32 dim 1 : vector<8x512xf32>, i32 -> vector<8x512xf32>
    %c7 = arith.constant 7 : index
    %c0_22 = arith.constant 0 : index
    %46 = vector.load %arg5[%c7, %c0_22] : memref<27x512xf32, #tpu.memory_space<vmem>>, vector<1x512xf32>
    %47 = vector.broadcast %46 : vector<1x512xf32> to vector<8x512xf32>
    %48 = arith.mulf %45, %47 : vector<8x512xf32>
    %c56 = arith.constant 56 : index
    %c0_23 = arith.constant 0 : index
    %49 = vector.load %arg9[%c56, %c0_23] : memref<216x512xf32, #tpu.memory_space<vmem>>, vector<8x512xf32>
    tpu.vector_store %arg9[%c56, %c0_23], %48 {strides = array<i32>} : memref<216x512xf32, #tpu.memory_space<vmem>>, vector<8x512xf32>,
    %c55_i32 = arith.constant 55 : i32
    %50 = tpu.dynamic_rotate %9 by %c55_i32 dim 1 : vector<8x512xf32>, i32 -> vector<8x512xf32>
    %c8_24 = arith.constant 8 : index
    %c0_25 = arith.constant 0 : index
    %51 = vector.load %arg5[%c8_24, %c0_25] : memref<27x512xf32, #tpu.memory_space<vmem>>, vector<1x512xf32>
    %52 = vector.broadcast %51 : vector<1x512xf32> to vector<8x512xf32>
    %53 = arith.mulf %50, %52 : vector<8x512xf32>
    %c64 = arith.constant 64 : index
    %c0_26 = arith.constant 0 : index
    %54 = vector.load %arg9[%c64, %c0_26] : memref<216x512xf32, #tpu.memory_space<vmem>>, vector<8x512xf32>
    tpu.vector_store %arg9[%c64, %c0_26], %53 {strides = array<i32>} : memref<216x512xf32, #tpu.memory_space<vmem>>, vector<8x512xf32>,
    %c9_i32 = arith.constant 9 : i32
    %55 = tpu.dynamic_rotate %9 by %c9_i32 dim 1 : vector<8x512xf32>, i32 -> vector<8x512xf32>
    %c9 = arith.constant 9 : index
    %c0_27 = arith.constant 0 : index
    %56 = vector.load %arg5[%c9, %c0_27] : memref<27x512xf32, #tpu.memory_space<vmem>>, vector<1x512xf32>
    %57 = vector.broadcast %56 : vector<1x512xf32> to vector<8x512xf32>
    %58 = arith.mulf %55, %57 : vector<8x512xf32>
    %c72 = arith.constant 72 : index
    %c0_28 = arith.constant 0 : index
    %59 = vector.load %arg9[%c72, %c0_28] : memref<216x512xf32, #tpu.memory_space<vmem>>, vector<8x512xf32>
    tpu.vector_store %arg9[%c72, %c0_28], %58 {strides = array<i32>} : memref<216x512xf32, #tpu.memory_space<vmem>>, vector<8x512xf32>,
    %c8_i32 = arith.constant 8 : i32
    %60 = tpu.dynamic_rotate %9 by %c8_i32 dim 1 : vector<8x512xf32>, i32 -> vector<8x512xf32>
    %c10 = arith.constant 10 : index
    %c0_29 = arith.constant 0 : index
    %61 = vector.load %arg5[%c10, %c0_29] : memref<27x512xf32, #tpu.memory_space<vmem>>, vector<1x512xf32>
    %62 = vector.broadcast %61 : vector<1x512xf32> to vector<8x512xf32>
    %63 = arith.mulf %60, %62 : vector<8x512xf32>
    %c80 = arith.constant 80 : index
    %c0_30 = arith.constant 0 : index
    %64 = vector.load %arg9[%c80, %c0_30] : memref<216x512xf32, #tpu.memory_space<vmem>>, vector<8x512xf32>
    tpu.vector_store %arg9[%c80, %c0_30], %63 {strides = array<i32>} : memref<216x512xf32, #tpu.memory_space<vmem>>, vector<8x512xf32>,
    %c7_i32 = arith.constant 7 : i32
    %65 = tpu.dynamic_rotate %9 by %c7_i32 dim 1 : vector<8x512xf32>, i32 -> vector<8x512xf32>
    %c11 = arith.constant 11 : index
    %c0_31 = arith.constant 0 : index
    %66 = vector.load %arg5[%c11, %c0_31] : memref<27x512xf32, #tpu.memory_space<vmem>>, vector<1x512xf32>
    %67 = vector.broadcast %66 : vector<1x512xf32> to vector<8x512xf32>
    %68 = arith.mulf %65, %67 : vector<8x512xf32>
    %c88 = arith.constant 88 : index
    %c0_32 = arith.constant 0 : index
    %69 = vector.load %arg9[%c88, %c0_32] : memref<216x512xf32, #tpu.memory_space<vmem>>, vector<8x512xf32>
    tpu.vector_store %arg9[%c88, %c0_32], %68 {strides = array<i32>} : memref<216x512xf32, #tpu.memory_space<vmem>>, vector<8x512xf32>,
    %c1_i32 = arith.constant 1 : i32
    %70 = tpu.dynamic_rotate %9 by %c1_i32 dim 1 : vector<8x512xf32>, i32 -> vector<8x512xf32>
    %c12 = arith.constant 12 : index
    %c0_33 = arith.constant 0 : index
    %71 = vector.load %arg5[%c12, %c0_33] : memref<27x512xf32, #tpu.memory_space<vmem>>, vector<1x512xf32>
    %72 = vector.broadcast %71 : vector<1x512xf32> to vector<8x512xf32>
    %73 = arith.mulf %70, %72 : vector<8x512xf32>
    %c96 = arith.constant 96 : index
    %c0_34 = arith.constant 0 : index
    %74 = vector.load %arg9[%c96, %c0_34] : memref<216x512xf32, #tpu.memory_space<vmem>>, vector<8x512xf32>
    tpu.vector_store %arg9[%c96, %c0_34], %73 {strides = array<i32>} : memref<216x512xf32, #tpu.memory_space<vmem>>, vector<8x512xf32>,
    %c13 = arith.constant 13 : index
    %c0_35 = arith.constant 0 : index
    %75 = vector.load %arg5[%c13, %c0_35] : memref<27x512xf32, #tpu.memory_space<vmem>>, vector<1x512xf32>
    %76 = vector.broadcast %75 : vector<1x512xf32> to vector<8x512xf32>
    %77 = arith.mulf %9, %76 : vector<8x512xf32>
    %c104 = arith.constant 104 : index
    %c0_36 = arith.constant 0 : index
    %78 = vector.load %arg9[%c104, %c0_36] : memref<216x512xf32, #tpu.memory_space<vmem>>, vector<8x512xf32>
    tpu.vector_store %arg9[%c104, %c0_36], %77 {strides = array<i32>} : memref<216x512xf32, #tpu.memory_space<vmem>>, vector<8x512xf32>,
    %c511_i32 = arith.constant 511 : i32
    %79 = tpu.dynamic_rotate %9 by %c511_i32 dim 1 : vector<8x512xf32>, i32 -> vector<8x512xf32>
    %c14 = arith.constant 14 : index
    %c0_37 = arith.constant 0 : index
    %80 = vector.load %arg5[%c14, %c0_37] : memref<27x512xf32, #tpu.memory_space<vmem>>, vector<1x512xf32>
    %81 = vector.broadcast %80 : vector<1x512xf32> to vector<8x512xf32>
    %82 = arith.mulf %79, %81 : vector<8x512xf32>
    %c112 = arith.constant 112 : index
    %c0_38 = arith.constant 0 : index
    %83 = vector.load %arg9[%c112, %c0_38] : memref<216x512xf32, #tpu.memory_space<vmem>>, vector<8x512xf32>
    tpu.vector_store %arg9[%c112, %c0_38], %82 {strides = array<i32>} : memref<216x512xf32, #tpu.memory_space<vmem>>, vector<8x512xf32>,
    %c505_i32 = arith.constant 505 : i32
    %84 = tpu.dynamic_rotate %9 by %c505_i32 dim 1 : vector<8x512xf32>, i32 -> vector<8x512xf32>
    %c15 = arith.constant 15 : index
    %c0_39 = arith.constant 0 : index
    %85 = vector.load %arg5[%c15, %c0_39] : memref<27x512xf32, #tpu.memory_space<vmem>>, vector<1x512xf32>
    %86 = vector.broadcast %85 : vector<1x512xf32> to vector<8x512xf32>
    %87 = arith.mulf %84, %86 : vector<8x512xf32>
    %c120 = arith.constant 120 : index
    %c0_40 = arith.constant 0 : index
    %88 = vector.load %arg9[%c120, %c0_40] : memref<216x512xf32, #tpu.memory_space<vmem>>, vector<8x512xf32>
    tpu.vector_store %arg9[%c120, %c0_40], %87 {strides = array<i32>} : memref<216x512xf32, #tpu.memory_space<vmem>>, vector<8x512xf32>,
    %c504_i32 = arith.constant 504 : i32
    %89 = tpu.dynamic_rotate %9 by %c504_i32 dim 1 : vector<8x512xf32>, i32 -> vector<8x512xf32>
    %c16_41 = arith.constant 16 : index
    %c0_42 = arith.constant 0 : index
    %90 = vector.load %arg5[%c16_41, %c0_42] : memref<27x512xf32, #tpu.memory_space<vmem>>, vector<1x512xf32>
    %91 = vector.broadcast %90 : vector<1x512xf32> to vector<8x512xf32>
    %92 = arith.mulf %89, %91 : vector<8x512xf32>
    %c128 = arith.constant 128 : index
    %c0_43 = arith.constant 0 : index
    %93 = vector.load %arg9[%c128, %c0_43] : memref<216x512xf32, #tpu.memory_space<vmem>>, vector<8x512xf32>
    tpu.vector_store %arg9[%c128, %c0_43], %92 {strides = array<i32>} : memref<216x512xf32, #tpu.memory_space<vmem>>, vector<8x512xf32>,
    %c503_i32 = arith.constant 503 : i32
    %94 = tpu.dynamic_rotate %9 by %c503_i32 dim 1 : vector<8x512xf32>, i32 -> vector<8x512xf32>
    %c17 = arith.constant 17 : index
    %c0_44 = arith.constant 0 : index
    %95 = vector.load %arg5[%c17, %c0_44] : memref<27x512xf32, #tpu.memory_space<vmem>>, vector<1x512xf32>
    %96 = vector.broadcast %95 : vector<1x512xf32> to vector<8x512xf32>
    %97 = arith.mulf %94, %96 : vector<8x512xf32>
    %c136 = arith.constant 136 : index
    %c0_45 = arith.constant 0 : index
    %98 = vector.load %arg9[%c136, %c0_45] : memref<216x512xf32, #tpu.memory_space<vmem>>, vector<8x512xf32>
    tpu.vector_store %arg9[%c136, %c0_45], %97 {strides = array<i32>} : memref<216x512xf32, #tpu.memory_space<vmem>>, vector<8x512xf32>,
    %c457_i32 = arith.constant 457 : i32
    %99 = tpu.dynamic_rotate %9 by %c457_i32 dim 1 : vector<8x512xf32>, i32 -> vector<8x512xf32>
    %c18 = arith.constant 18 : index
    %c0_46 = arith.constant 0 : index
    %100 = vector.load %arg5[%c18, %c0_46] : memref<27x512xf32, #tpu.memory_space<vmem>>, vector<1x512xf32>
    %101 = vector.broadcast %100 : vector<1x512xf32> to vector<8x512xf32>
    %102 = arith.mulf %99, %101 : vector<8x512xf32>
    %c144 = arith.constant 144 : index
    %c0_47 = arith.constant 0 : index
    %103 = vector.load %arg9[%c144, %c0_47] : memref<216x512xf32, #tpu.memory_space<vmem>>, vector<8x512xf32>
    tpu.vector_store %arg9[%c144, %c0_47], %102 {strides = array<i32>} : memref<216x512xf32, #tpu.memory_space<vmem>>, vector<8x512xf32>,
    %c456_i32 = arith.constant 456 : i32
    %104 = tpu.dynamic_rotate %9 by %c456_i32 dim 1 : vector<8x512xf32>, i32 -> vector<8x512xf32>
    %c19 = arith.constant 19 : index
    %c0_48 = arith.constant 0 : index
    %105 = vector.load %arg5[%c19, %c0_48] : memref<27x512xf32, #tpu.memory_space<vmem>>, vector<1x512xf32>
    %106 = vector.broadcast %105 : vector<1x512xf32> to vector<8x512xf32>
    %107 = arith.mulf %104, %106 : vector<8x512xf32>
    %c152 = arith.constant 152 : index
    %c0_49 = arith.constant 0 : index
    %108 = vector.load %arg9[%c152, %c0_49] : memref<216x512xf32, #tpu.memory_space<vmem>>, vector<8x512xf32>
    tpu.vector_store %arg9[%c152, %c0_49], %107 {strides = array<i32>} : memref<216x512xf32, #tpu.memory_space<vmem>>, vector<8x512xf32>,
    %c455_i32 = arith.constant 455 : i32
    %109 = tpu.dynamic_rotate %9 by %c455_i32 dim 1 : vector<8x512xf32>, i32 -> vector<8x512xf32>
    %c20 = arith.constant 20 : index
    %c0_50 = arith.constant 0 : index
    %110 = vector.load %arg5[%c20, %c0_50] : memref<27x512xf32, #tpu.memory_space<vmem>>, vector<1x512xf32>
    %111 = vector.broadcast %110 : vector<1x512xf32> to vector<8x512xf32>
    %112 = arith.mulf %109, %111 : vector<8x512xf32>
    %c160 = arith.constant 160 : index
    %c0_51 = arith.constant 0 : index
    %113 = vector.load %arg9[%c160, %c0_51] : memref<216x512xf32, #tpu.memory_space<vmem>>, vector<8x512xf32>
    tpu.vector_store %arg9[%c160, %c0_51], %112 {strides = array<i32>} : memref<216x512xf32, #tpu.memory_space<vmem>>, vector<8x512xf32>,
    %c449_i32 = arith.constant 449 : i32
    %114 = tpu.dynamic_rotate %9 by %c449_i32 dim 1 : vector<8x512xf32>, i32 -> vector<8x512xf32>
    %c21 = arith.constant 21 : index
    %c0_52 = arith.constant 0 : index
    %115 = vector.load %arg5[%c21, %c0_52] : memref<27x512xf32, #tpu.memory_space<vmem>>, vector<1x512xf32>
    %116 = vector.broadcast %115 : vector<1x512xf32> to vector<8x512xf32>
    %117 = arith.mulf %114, %116 : vector<8x512xf32>
    %c168 = arith.constant 168 : index
    %c0_53 = arith.constant 0 : index
    %118 = vector.load %arg9[%c168, %c0_53] : memref<216x512xf32, #tpu.memory_space<vmem>>, vector<8x512xf32>
    tpu.vector_store %arg9[%c168, %c0_53], %117 {strides = array<i32>} : memref<216x512xf32, #tpu.memory_space<vmem>>, vector<8x512xf32>,
    %c448_i32 = arith.constant 448 : i32
    %119 = tpu.dynamic_rotate %9 by %c448_i32 dim 1 : vector<8x512xf32>, i32 -> vector<8x512xf32>
    %c22 = arith.constant 22 : index
    %c0_54 = arith.constant 0 : index
    %120 = vector.load %arg5[%c22, %c0_54] : memref<27x512xf32, #tpu.memory_space<vmem>>, vector<1x512xf32>
    %121 = vector.broadcast %120 : vector<1x512xf32> to vector<8x512xf32>
    %122 = arith.mulf %119, %121 : vector<8x512xf32>
    %c176 = arith.constant 176 : index
    %c0_55 = arith.constant 0 : index
    %123 = vector.load %arg9[%c176, %c0_55] : memref<216x512xf32, #tpu.memory_space<vmem>>, vector<8x512xf32>
    tpu.vector_store %arg9[%c176, %c0_55], %122 {strides = array<i32>} : memref<216x512xf32, #tpu.memory_space<vmem>>, vector<8x512xf32>,
    %c447_i32 = arith.constant 447 : i32
    %124 = tpu.dynamic_rotate %9 by %c447_i32 dim 1 : vector<8x512xf32>, i32 -> vector<8x512xf32>
    %c23 = arith.constant 23 : index
    %c0_56 = arith.constant 0 : index
    %125 = vector.load %arg5[%c23, %c0_56] : memref<27x512xf32, #tpu.memory_space<vmem>>, vector<1x512xf32>
    %126 = vector.broadcast %125 : vector<1x512xf32> to vector<8x512xf32>
    %127 = arith.mulf %124, %126 : vector<8x512xf32>
    %c184 = arith.constant 184 : index
    %c0_57 = arith.constant 0 : index
    %128 = vector.load %arg9[%c184, %c0_57] : memref<216x512xf32, #tpu.memory_space<vmem>>, vector<8x512xf32>
    tpu.vector_store %arg9[%c184, %c0_57], %127 {strides = array<i32>} : memref<216x512xf32, #tpu.memory_space<vmem>>, vector<8x512xf32>,
    %c441_i32 = arith.constant 441 : i32
    %129 = tpu.dynamic_rotate %9 by %c441_i32 dim 1 : vector<8x512xf32>, i32 -> vector<8x512xf32>
    %c24_58 = arith.constant 24 : index
    %c0_59 = arith.constant 0 : index
    %130 = vector.load %arg5[%c24_58, %c0_59] : memref<27x512xf32, #tpu.memory_space<vmem>>, vector<1x512xf32>
    %131 = vector.broadcast %130 : vector<1x512xf32> to vector<8x512xf32>
    %132 = arith.mulf %129, %131 : vector<8x512xf32>
    %c192 = arith.constant 192 : index
    %c0_60 = arith.constant 0 : index
    %133 = vector.load %arg9[%c192, %c0_60] : memref<216x512xf32, #tpu.memory_space<vmem>>, vector<8x512xf32>
    tpu.vector_store %arg9[%c192, %c0_60], %132 {strides = array<i32>} : memref<216x512xf32, #tpu.memory_space<vmem>>, vector<8x512xf32>,
    %c440_i32 = arith.constant 440 : i32
    %134 = tpu.dynamic_rotate %9 by %c440_i32 dim 1 : vector<8x512xf32>, i32 -> vector<8x512xf32>
    %c25 = arith.constant 25 : index
    %c0_61 = arith.constant 0 : index
    %135 = vector.load %arg5[%c25, %c0_61] : memref<27x512xf32, #tpu.memory_space<vmem>>, vector<1x512xf32>
    %136 = vector.broadcast %135 : vector<1x512xf32> to vector<8x512xf32>
    %137 = arith.mulf %134, %136 : vector<8x512xf32>
    %c200 = arith.constant 200 : index
    %c0_62 = arith.constant 0 : index
    %138 = vector.load %arg9[%c200, %c0_62] : memref<216x512xf32, #tpu.memory_space<vmem>>, vector<8x512xf32>
    tpu.vector_store %arg9[%c200, %c0_62], %137 {strides = array<i32>} : memref<216x512xf32, #tpu.memory_space<vmem>>, vector<8x512xf32>,
    %c439_i32 = arith.constant 439 : i32
    %139 = tpu.dynamic_rotate %9 by %c439_i32 dim 1 : vector<8x512xf32>, i32 -> vector<8x512xf32>
    %c26 = arith.constant 26 : index
    %c0_63 = arith.constant 0 : index
    %140 = vector.load %arg5[%c26, %c0_63] : memref<27x512xf32, #tpu.memory_space<vmem>>, vector<1x512xf32>
    %141 = vector.broadcast %140 : vector<1x512xf32> to vector<8x512xf32>
    %142 = arith.mulf %139, %141 : vector<8x512xf32>
    %c208 = arith.constant 208 : index
    %c0_64 = arith.constant 0 : index
    %143 = vector.load %arg9[%c208, %c0_64] : memref<216x512xf32, #tpu.memory_space<vmem>>, vector<8x512xf32>
    tpu.vector_store %arg9[%c208, %c0_64], %142 {strides = array<i32>} : memref<216x512xf32, #tpu.memory_space<vmem>>, vector<8x512xf32>,
    %c0_65 = arith.constant 0 : index
    %c0_66 = arith.constant 0 : index
    %144 = vector.load %arg4[%c0_65, %c0_66] : memref<8x216xbf16, #tpu.memory_space<vmem>>, vector<8x216xbf16>
    %c0_67 = arith.constant 0 : index
    %c0_68 = arith.constant 0 : index
    %145 = vector.load %arg9[%c0_67, %c0_68] : memref<216x512xf32, #tpu.memory_space<vmem>>, vector<216x512xf32>
    %146 = arith.truncf %145 : vector<216x512xf32> to vector<216x512xbf16>
    %cst_69 = arith.constant dense<0.000000e+00> : vector<8x512xf32>
    %147 = tpu.matmul %144, %146, %cst_69 {dimension_numbers = #tpu.dot_dimension_numbers<[1], [0], [0], [1], [0, 0, 1, 1], [], []>} : vector<8x216xbf16>, vector<216x512xbf16>, vector<8x512xf32> -> vector<8x512xf32>
    %c0_70 = arith.constant 0 : index
    %c0_71 = arith.constant 0 : index
    %c0_72 = arith.constant 0 : index
    %148 = vector.load %arg6[%c0_70, %c0_71, %c0_72] : memref<1x8x512xf32, #tpu.memory_space<vmem>>, vector<1x8x512xf32>
    %149 = vector.shape_cast %148 : vector<1x8x512xf32> to vector<8x512xf32>
    %150 = vector.shape_cast %147 : vector<8x512xf32> to vector<1x8x512xf32>
    tpu.vector_store %arg6[%c0_70, %c0_71, %c0_72], %150 {strides = array<i32>} : memref<1x8x512xf32, #tpu.memory_space<vmem>>, vector<1x8x512xf32>,
    %cst_73 = arith.constant dense<0.000000e+00> : vector<8xf32>
    %151 = vector.multi_reduction <add>, %147, %cst_73 [1] : vector<8x512xf32> to vector<8xf32>
    %152 = vector.shape_cast %151 : vector<8xf32> to vector<8x1xf32>
    %cst_74 = arith.constant 0.001953125 : f32
    %153 = vector.broadcast %cst_74 : f32 to vector<8x1xf32>
    %154 = arith.mulf %152, %153 : vector<8x1xf32>
    %155 = vector.broadcast %154 : vector<8x1xf32> to vector<8x512xf32>
    %156 = arith.subf %147, %155 : vector<8x512xf32>
    %c0_75 = arith.constant 0 : index
    %c0_76 = arith.constant 0 : index
    %c0_77 = arith.constant 0 : index
    %157 = vector.load %arg7[%c0_75, %c0_76, %c0_77] : memref<1x8x1xf32, #tpu.memory_space<vmem>>, vector<1x8x1xf32>
    %158 = vector.shape_cast %157 : vector<1x8x1xf32> to vector<8x1xf32>
    %159 = vector.shape_cast %152 : vector<8x1xf32> to vector<1x8x1xf32>
    tpu.vector_store %arg7[%c0_75, %c0_76, %c0_77], %159 {strides = array<i32>} : memref<1x8x1xf32, #tpu.memory_space<vmem>>, vector<1x8x1xf32>,
    %160 = arith.mulf %156, %156 : vector<8x512xf32>
    %cst_78 = arith.constant dense<0.000000e+00> : vector<8xf32>
    %161 = vector.multi_reduction <add>, %160, %cst_78 [1] : vector<8x512xf32> to vector<8xf32>
    %162 = vector.shape_cast %161 : vector<8xf32> to vector<8x1xf32>
    %c0_79 = arith.constant 0 : index
    %c0_80 = arith.constant 0 : index
    %c0_81 = arith.constant 0 : index
    %163 = vector.load %arg8[%c0_79, %c0_80, %c0_81] : memref<1x8x1xf32, #tpu.memory_space<vmem>>, vector<1x8x1xf32>
    %164 = vector.shape_cast %163 : vector<1x8x1xf32> to vector<8x1xf32>
    %165 = vector.shape_cast %162 : vector<8x1xf32> to vector<1x8x1xf32>
    tpu.vector_store %arg8[%c0_79, %c0_80, %c0_81], %165 {strides = array<i32>} : memref<1x8x1xf32, #tpu.memory_space<vmem>>, vector<1x8x1xf32>,
    return
  }
  func.func @transform_0(%arg0: i32) -> (i32, i32, i32) {
    %c0_i32 = arith.constant 0 : i32
    %c0_i32_0 = arith.constant 0 : i32
    %c0_i32_1 = arith.constant 0 : i32
    return %arg0, %c0_i32, %c0_i32_0 : i32, i32, i32
  }
  func.func @transform_1(%arg0: i32) -> (i32, i32) {
    %c0_i32 = arith.constant 0 : i32
    %c0_i32_0 = arith.constant 0 : i32
    %c0_i32_1 = arith.constant 0 : i32
    return %c0_i32, %c0_i32_0 : i32, i32
  }
  func.func @transform_2(%arg0: i32) -> (i32, i32) {
    %c0_i32 = arith.constant 0 : i32
    %c0_i32_0 = arith.constant 0 : i32
    %c0_i32_1 = arith.constant 0 : i32
    return %c0_i32, %c0_i32_0 : i32, i32
  }
  func.func @transform_3(%arg0: i32) -> (i32, i32) {
    %c0_i32 = arith.constant 0 : i32
    %c0_i32_0 = arith.constant 0 : i32
    %c0_i32_1 = arith.constant 0 : i32
    return %c0_i32, %c0_i32_0 : i32, i32
  }
  func.func @transform_4(%arg0: i32) -> (i32, i32) {
    %c0_i32 = arith.constant 0 : i32
    %c0_i32_0 = arith.constant 0 : i32
    %c0_i32_1 = arith.constant 0 : i32
    return %c0_i32, %c0_i32_0 : i32, i32
  }
  func.func @transform_5(%arg0: i32) -> (i32, i32, i32) {
    %c0_i32 = arith.constant 0 : i32
    %c0_i32_0 = arith.constant 0 : i32
    %c0_i32_1 = arith.constant 0 : i32
    return %arg0, %c0_i32, %c0_i32_0 : i32, i32, i32
  }
  func.func @transform_6(%arg0: i32) -> (i32, i32, i32) {
    %c0_i32 = arith.constant 0 : i32
    %c0_i32_0 = arith.constant 0 : i32
    %c0_i32_1 = arith.constant 0 : i32
    return %arg0, %c0_i32, %c0_i32_0 : i32, i32, i32
  }
  func.func @transform_7(%arg0: i32) -> (i32, i32, i32) {
    %c0_i32 = arith.constant 0 : i32
    %c0_i32_0 = arith.constant 0 : i32
    %c0_i32_1 = arith.constant 0 : i32
    return %arg0, %c0_i32, %c0_i32_0 : i32, i32, i32
  }
}

</mosaic_0001>

<bundles_post_ra>
// kernel: double_conv.5
= control target key start
LH: loop header
LB: loop body
LE: loop exit
PB: predicated region body
PF: predicated region fallthrough
CT: control target
= control target key end

     0   :  { %v85_v0 = vmov 0   ;;  %s166_s2 = inlined_call_operand.vmem [shape: f32[16,1], index: 2, kind: input, shape index: {}]   ;;  %s167_s1 = inlined_call_operand.vmem [shape: f32[16,1], index: 1, kind: input, shape index: {}]   ;;  %s168_s0 = inlined_call_operand.vmem [shape: f32[16,512], index: 0, kind: input, shape index: {}]   ;;  %s169_s3 = inlined_call_operand.vmem [shape: f32[16,512], index: 3, kind: output, shape index: {}]  }
   0x1   :  { %84 = vset.pattern.permute.xlu1 %v85_v0  ;;  %83 = vset.pattern.permute.xlu0 %v85_v0  ;;  %v42_v1 = vld [vmem:[%s166_s2] sm:$0xff]  ;;  %v43_v3 = vld [vmem:[%s166_s2 + $0x8] sm:$0xff]  ;;  %v16_v7 = vld [vmem:[%s168_s0 + $0x10] sm:$0xff] }
   0x2   :  { %v22_v2 = vld [vmem:[%s167_s1] sm:$0xff]  ;;  %46 = vperm.xlu1 %84, %v42_v1   ;;  %v23_v4 = vld [vmem:[%s167_s1 + $0x8] sm:$0xff]  ;;  %v17_v8 = vld [vmem:[%s168_s0 + $0x18] sm:$0xff] }
   0x3   :  { %26 = vperm.xlu0 %83, %v22_v2   ;;  %v14_v5 = vld [vmem:[%s168_s0] sm:$0xff]  ;;  %v15_v6 = vld [vmem:[%s168_s0 + $0x8] sm:$0xff]  ;;  %v20_v21 = vld [vmem:[%s168_s0 + $0x30] sm:$0xff] }
   0x4   :  { %v18_v15 = vld [vmem:[%s168_s0 + $0x20] sm:$0xff]  ;;  %v19_v20 = vld [vmem:[%s168_s0 + $0x28] sm:$0xff]  ;;  %v21_v22 = vld [vmem:[%s168_s0 + $0x38] sm:$0xff] }
   0x6   :  { %51 = vperm.xlu1 %84, %v43_v3  }
   0x7   :  { %31 = vperm.xlu0 %83, %v23_v4  }
  0x81   :  { %v47_v10 = vpop.permute.xlu1 %46 }
  0x82   :  { %v27_v9 = vpop.permute.xlu0 %26 }
  0x83   :  { %v34_v11 = vmul.f32 %v27_v9, %v14_v5  ;;  %v35_v12 = vmul.f32 %v27_v9, %v15_v6  ;;  %v36_v13 = vmul.f32 %v27_v9, %v16_v7  ;;  %v37_v14 = vmul.f32 %v27_v9, %v17_v8 }
  0x85   :  { %v54_v16 = vadd.f32 %v47_v10, %v34_v11  ;;  %v55_v17 = vadd.f32 %v47_v10, %v35_v12  ;;  %v56_v18 = vadd.f32 %v47_v10, %v36_v13  ;;  %v57_v19 = vadd.f32 %v47_v10, %v37_v14  ;;  %v52_v32 = vpop.permute.xlu1 %51 }
  0x86   :  { %v32_v23 = vpop.permute.xlu0 %31 }
  0x87   :  { %v62_v24 = vmax.f32 %v54_v16, 0.0  ;;  %v63_v25 = vmax.f32 %v55_v17, 0.0  ;;  %v64_v26 = vmax.f32 %v56_v18, 0.0  ;;  %v65_v27 = vmax.f32 %v57_v19, 0.0 }
  0x88   :  { %v38_v28 = vmul.f32 %v32_v23, %v18_v15  ;;  %v39_v29 = vmul.f32 %v32_v23, %v19_v20  ;;  %v40_v30 = vmul.f32 %v32_v23, %v20_v21  ;;  %v41_v31 = vmul.f32 %v32_v23, %v21_v22 }
  0x89   :  { %70 = vst [vmem:[%s169_s3] sm:$0xff] %v62_v24  ;;  %71 = vst [vmem:[%s169_s3 + $0x8] sm:$0xff] %v63_v25 }
  0x8a   :  { %72 = vst [vmem:[%s169_s3 + $0x10] sm:$0xff] %v64_v26  ;;  %73 = vst [vmem:[%s169_s3 + $0x18] sm:$0xff] %v65_v27  ;;  %v58_v33 = vadd.f32 %v52_v32, %v38_v28  ;;  %v59_v34 = vadd.f32 %v52_v32, %v39_v29  ;;  %v60_v35 = vadd.f32 %v52_v32, %v40_v30 }
  0x8b   :  { %v61_v36 = vadd.f32 %v52_v32, %v41_v31 }
  0x8c   :  { %v66_v37 = vmax.f32 %v58_v33, 0.0  ;;  %v67_v38 = vmax.f32 %v59_v34, 0.0  ;;  %v68_v39 = vmax.f32 %v60_v35, 0.0 }
  0x8d   :  { %v69_v40 = vmax.f32 %v61_v36, 0.0 }
  0x8e   :  { %74 = vst [vmem:[%s169_s3 + $0x20] sm:$0xff] %v66_v37  ;;  %75 = vst [vmem:[%s169_s3 + $0x28] sm:$0xff] %v67_v38 }
  0x8f   :  { %76 = vst [vmem:[%s169_s3 + $0x30] sm:$0xff] %v68_v39  ;;  %77 = vst [vmem:[%s169_s3 + $0x38] sm:$0xff] %v69_v40 }

// kernel: double_conv.3
= control target key start
LH: loop header
LB: loop body
LE: loop exit
PB: predicated region body
PF: predicated region fallthrough
CT: control target
= control target key end

     0   :  { %s1918_s18 = smov 0   ;;  %s2655_s0 = inlined_call_operand.vmem [shape: f32[2,4,512], index: 0, kind: input, shape index: {}]   ;;  %s2656_s1 = inlined_call_operand.vmem [shape: bf16[8,108], index: 1, kind: input, shape index: {}]   ;;  %s2657_s2 = inlined_call_operand.vmem [shape: f32[27,512], index: 2, kind: input, shape index: {}]   ;;  %s2658_s3 = inlined_call_operand.vmem [shape: f32[2,8,512], index: 3, kind: output, shape index: {0}]   ;;  %s2659_s4 = inlined_call_operand.vmem [shape: f32[2,8,1], index: 4, kind: output, shape index: {1}]   ;;  %s2660_s5 = inlined_call_operand.vmem [shape: f32[2,8,1], index: 5, kind: output, shape index: {2}]  }
   0x1 LB: > { %s1789_s19 = sadd.s32 4294967295, %s1868_s18   ;;  %p1793_p0 = scmp.ge.s32.totalorder %s1868_s18, 1  ;;  %s1868_s18 = sphi %s1918_s18, %s16_s18  }
   0x2   : > { %p192_p1 = scmp.lt.s32.totalorder %s1868_s18, 3 }
   0x4   : > { %p193_p2 = pnand %p1793_p0, %p192_p1 }
   0x5   : > { %p228_p3 = scmp.lt.s32.totalorder (!%p193_p2), %s1789_s19, 1  ;;  %s1870_s24 = smov (!%p193_p2), 65   ;;  %v263_v4 = vlaneseq (!%p193_p2)  ;;  %v1812_v8 = vld [vmem:[%s2657_s2 + $0x25] ss:$8 sm:$0xf] (!%p193_p2) }
   0x6   : > { %196 = sbr.rel (%p193_p2) target bundleno = 805 (0x325), region = 32  ;;  %s1871_s25 = smov (!%p193_p2), 72   ;;  %v2027_v21 = vld [vmem:[%s2657_s2 + $0x3] ss:$8 sm:$0xf] (!%p193_p2) }
   0x7   : > { %s1872_s26 = smov (!%p193_p2), 73   ;;  %s1873_s27 = smov (!%p193_p2), 71   ;;  %v273_v5 = vshrl.u32 (!%p193_p2), %v263_v4, 7  ;;  %v2022_v20 = vand.u32 (!%p193_p2), 127, %v263_v4 }
   0x8   : > { %s1874_s28 = smov (!%p193_p2), 63   ;;  %s1875_s29 = smov (!%p193_p2), 56   ;;  %v2035_v22 = vld [vmem:[%s2657_s2 + $0x45] ss:$8 sm:$0xf] (!%p193_p2) }
   0x9   : > { %s1876_s30 = smov (!%p193_p2), 64   ;;  %s1877_s6 = smov (!%p193_p2), 57   ;;  %v1990_v6 = vsub.s32 (!%p193_p2), 0, %v273_v5  ;;  %v1992_v7 = vsub.s32 (!%p193_p2), 1, %v273_v5  ;;  %v2011_v14 = vsub.s32 (!%p193_p2), 3, %v273_v5  ;;  %v2013_v15 = vsub.s32 (!%p193_p2), 2, %v273_v5 }
   0xa   : > { %s1878_s7 = smov (!%p193_p2), 9   ;;  %s1879_s8 = smov (!%p193_p2), 7   ;;  %v2040_v23 = vld [vmem:[%s2657_s2 + $0x1] ss:$8 sm:$0xf] (!%p193_p2)  ;;  %vm408_vm0 = vcmp.lt.s32.totalorder (!%p193_p2), %v2022_v20, 65 }
   0xb   : > { %s1880_s9 = smov (!%p193_p2), 55   ;;  %s1881_s10 = smov (!%p193_p2), 8   ;;  %v906_v9 = vrot.slane (!%p193_p2), %v1812_v8, %v1990_v6  ;;  %v910_v10 = vrot.slane (!%p193_p2), %v1812_v8, %v1992_v7  ;;  %v914_v16 = vrot.slane (!%p193_p2), %v1812_v8, %v2013_v15  ;;  %v918_v17 = vrot.slane (!%p193_p2), %v1812_v8, %v2011_v14  ;;  %v2045_v25 = vld [vmem:[%s2657_s2 + $0x43] ss:$8 sm:$0xf] (!%p193_p2) }
   0xc   : > { %s1882_s13 = smov (!%p193_p2), 121   ;;  %s1883_s14 = smov (!%p193_p2), 1   ;;  %v423_v28 = vrot.slane (!%p193_p2), %v2027_v21, %v1992_v7  ;;  %v1246_v29 = vrot.slane (!%p193_p2), %v2035_v22, %v1990_v6  ;;  %vm308_vm1 = vcmp.lt.s32.totalorder (!%p193_p2), %v2022_v20, 72  ;;  %v323_v30 = vrot.slane (!%p193_p2), %v2040_v23, %v1992_v7  ;;  %v2084_v44 = vld [vmem:[%s2657_s2] ss:$8 sm:$0xf] (!%p193_p2) }
   0xd   : > { %s2662_s19 = smov (!%p228_p3, %s1789_s19), 1  ;;  %v919_v11 = vcombine.low %v906_v9, %v910_v10  ;;  %s1884_s15 = smov 127   ;;  %v920_v18 = vcombine.low %v914_v16, %v918_v17  ;;  %v1172_v31 = vrot.slane %v2045_v25, %v1990_v6  ;;  %v419_v34 = vrot.slane %v2027_v21, %v1990_v6  ;;  %v2089_v45 = vld [vmem:[%s2657_s2 + $0x42] ss:$8 sm:$0xf] }
   0xe   : > { %s1832_s20 = sshll.u32 %s2662_s19, 4  ;;  %v1258_v35 = vrot.slane %v2035_v22, %v2011_v14  ;;  %v319_v38 = vrot.slane %v2040_v23, %v1990_v6  ;;  %v1184_v39 = vrot.slane %v2045_v25, %v2011_v14  ;;  %vm265_vm2 = vcmp.lt.s32.totalorder %v2022_v20, 73  ;;  %v2115_v60 = vld [vmem:[%s2657_s2 + $0x2] ss:$8 sm:$0xf] }
   0xf   : > { %s232_s23 = scalar_lea.vmem %s2655_s0, %s1832_s20  ;;  %v279_v54 = vrot.slane %v2084_v44, %v1992_v7  ;;  %v1141_v55 = vrot.slane %v2089_v45, %v1990_v6  ;;  %v2120_v61 = vld [vmem:[%s2657_s2 + $0x44] ss:$8 sm:$0xf]  ;;  %vm364_vm3 = vcmp.lt.s32.totalorder %v2022_v20, 71  ;;  %vm508_vm4 = vcmp.lt.s32.totalorder %v2022_v20, 63 }
  0x10   : > { %v1932_v0 = vld [vmem:[%s232_s23] sm:$0xff]  ;;  %v1940_v2 = vld [vmem:[%s232_s23 + $0x8] sm:$0xff]  ;;  %vm608_vm5 = vcmp.lt.s32.totalorder %v2022_v20, 56  ;;  %vm464_vm6 = vcmp.lt.s32.totalorder %v2022_v20, 64  ;;  %vm564_vm7 = vcmp.lt.s32.totalorder %v2022_v20, 57  ;;  %vm708_vm8 = vcmp.lt.s32.totalorder %v2022_v20, 9 }
  0x11   : > { %400 = vrot.lane.b32.xlu1 %v1932_v0, %s1870_s24  ;;  %300 = vrot.lane.b32.xlu0 %v1932_v0, %s1871_s25  ;;  %v1938_v1 = vcombine.high %v1932_v0, %v1932_v0  ;;  %v1946_v3 = vcombine.high %v1940_v2, %v1940_v2  ;;  %v923_v12 = vmul.f32 %v919_v11, %v1932_v0  ;;  %vm808_vm9 = vcmp.lt.s32.totalorder %v2022_v20, 7 }
  0x12   : > { %v924_v19 = vmul.f32 %v920_v18, %v1940_v2  ;;  %vm664_vm10 = vcmp.lt.s32.totalorder %v2022_v20, 55  ;;  %vm764_vm11 = vcmp.lt.s32.totalorder %v2022_v20, 8  ;;  %vm987_vm12 = vcmp.lt.s32.totalorder %v2022_v20, 121 }
  0x13   : > { %932 = vst [vmem:[#allocation2 + $0xc8] sm:$0xf0] %v923_v12  ;;  %v927_v13 = vcombine.low %v923_v12, %v923_v12  ;;  %v379_v12 = vrot.slane %v2115_v60, %v1992_v7  ;;  %vm864_vm13 = vcmp.lt.s32.totalorder %v2022_v20, 1  ;;  %vm943_vm14 = vcmp.lt.s32.totalorder %v2022_v20, 127 }
  0x14   : > { %934 = vst [vmem:[#allocation2 + $0xd8] sm:$0xf0] %v924_v19  ;;  %v928_v24 = vcombine.low %v924_v19, %v924_v19  ;;  %v1176_v19 = vrot.slane %v2045_v25, %v1992_v7  ;;  %vm1087_vm15 = vcmp.lt.s32.totalorder %v2022_v20, 119 }
  0x15   : > { %402 = vrot.lane.b32.xlu1 %v1938_v1, %s1870_s24  ;;  %302 = vrot.lane.b32.xlu0 %v1938_v1, %s1871_s25  ;;  %931 = vst [vmem:[#allocation2 + $0xc0] sm:$0xf0] %v927_v13  ;;  %v1215_v13 = vrot.slane %v2120_v61, %v1990_v6 }
  0x16   : > { %933 = vst [vmem:[#allocation2 + $0xd0] sm:$0xf0] %v928_v24 }
  0x19   : > { %406 = vrot.lane.b32.xlu1 %v1946_v3, %s1870_s24  ;;  %306 = vrot.lane.b32.xlu0 %v1946_v3, %s1871_s25 }
  0x1d   : > { %257 = vrot.lane.b32.xlu1 %v1938_v1, %s1872_s26  ;;  %255 = vrot.lane.b32.xlu0 %v1932_v0, %s1872_s26 }
  0x21   : > { %358 = vrot.lane.b32.xlu1 %v1938_v1, %s1873_s27  ;;  %356 = vrot.lane.b32.xlu0 %v1932_v0, %s1873_s27 }
  0x25   : > { %304 = vrot.lane.b32.xlu1 %v1940_v2, %s1871_s25  ;;  %261 = vrot.lane.b32.xlu0 %v1946_v3, %s1872_s26 }
  0x29   : > { %404 = vrot.lane.b32.xlu1 %v1940_v2, %s1870_s24  ;;  %362 = vrot.lane.b32.xlu0 %v1946_v3, %s1873_s27 }
  0x2d   : > { %502 = vrot.lane.b32.xlu1 %v1938_v1, %s1874_s28  ;;  %500 = vrot.lane.b32.xlu0 %v1932_v0, %s1874_s28 }
  0x31   : > { %602 = vrot.lane.b32.xlu1 %v1938_v1, %s1875_s29  ;;  %600 = vrot.lane.b32.xlu0 %v1932_v0, %s1875_s29 }
  0x35   : > { %360 = vrot.lane.b32.xlu1 %v1940_v2, %s1873_s27  ;;  %259 = vrot.lane.b32.xlu0 %v1940_v2, %s1872_s26  ;;  %s1885_s26 = smov 119  }
  0x39   : > { %606 = vrot.lane.b32.xlu1 %v1946_v3, %s1875_s29  ;;  %506 = vrot.lane.b32.xlu0 %v1946_v3, %s1874_s28 }
  0x3d   : > { %458 = vrot.lane.b32.xlu1 %v1938_v1, %s1876_s30  ;;  %456 = vrot.lane.b32.xlu0 %v1932_v0, %s1876_s30 }
  0x41   : > { %558 = vrot.lane.b32.xlu1 %v1938_v1, %s1877_s6  ;;  %556 = vrot.lane.b32.xlu0 %v1932_v0, %s1877_s6 }
  0x45   : > { %504 = vrot.lane.b32.xlu1 %v1940_v2, %s1874_s28  ;;  %462 = vrot.lane.b32.xlu0 %v1946_v3, %s1876_s30  ;;  %s1833_s28 = sshll.u32 %s2662_s19, 5 }
  0x49   : > { %604 = vrot.lane.b32.xlu1 %v1940_v2, %s1875_s29  ;;  %562 = vrot.lane.b32.xlu0 %v1946_v3, %s1877_s6 }
  0x4d   : > { %702 = vrot.lane.b32.xlu1 %v1938_v1, %s1878_s7  ;;  %700 = vrot.lane.b32.xlu0 %v1932_v0, %s1878_s7 }
  0x51   : > { %802 = vrot.lane.b32.xlu1 %v1938_v1, %s1879_s8  ;;  %800 = vrot.lane.b32.xlu0 %v1932_v0, %s1879_s8 }
  0x55   : > { %560 = vrot.lane.b32.xlu1 %v1940_v2, %s1877_s6  ;;  %460 = vrot.lane.b32.xlu0 %v1940_v2, %s1876_s30  ;;  %s1886_s6 = smov 120  }
  0x59   : > { %806 = vrot.lane.b32.xlu1 %v1946_v3, %s1879_s8  ;;  %706 = vrot.lane.b32.xlu0 %v1946_v3, %s1878_s7 }
  0x5d   : > { %658 = vrot.lane.b32.xlu1 %v1938_v1, %s1880_s9  ;;  %656 = vrot.lane.b32.xlu0 %v1932_v0, %s1880_s9 }
  0x61   : > { %758 = vrot.lane.b32.xlu1 %v1938_v1, %s1881_s10  ;;  %756 = vrot.lane.b32.xlu0 %v1932_v0, %s1881_s10 }
  0x65   : > { %704 = vrot.lane.b32.xlu1 %v1940_v2, %s1878_s7  ;;  %662 = vrot.lane.b32.xlu0 %v1946_v3, %s1880_s9  ;;  %s1798_s7 = sshll.u32 %s2662_s19, 3 }
  0x66   : > { %s245_s12 = scalar_lea.vmem %s2660_s5, %s1798_s7 }
  0x69   : > { %804 = vrot.lane.b32.xlu1 %v1940_v2, %s1879_s8  ;;  %762 = vrot.lane.b32.xlu0 %v1946_v3, %s1881_s10 }
  0x6d   : > { %983 = vrot.lane.b32.xlu1 %v1940_v2, %s1882_s13  ;;  %981 = vrot.lane.b32.xlu0 %v1938_v1, %s1882_s13 }
  0x71   : > { %760 = vrot.lane.b32.xlu1 %v1940_v2, %s1881_s10  ;;  %660 = vrot.lane.b32.xlu0 %v1940_v2, %s1880_s9  ;;  %s241_s10 = scalar_lea.vmem %s2659_s4, %s1798_s7 }
  0x75   : > { %856 = vrot.lane.b32.xlu1 %v1932_v0, %s1883_s14  ;;  %979 = vrot.lane.b32.xlu0 %v1932_v0, %s1882_s13 }
  0x79   : > { %937 = vrot.lane.b32.xlu1 %v1938_v1, %s1884_s15  ;;  %858 = vrot.lane.b32.xlu0 %v1938_v1, %s1883_s14 }
  0x7d   : > { %862 = vrot.lane.b32.xlu1 %v1946_v3, %s1883_s14  ;;  %939 = vrot.lane.b32.xlu0 %v1940_v2, %s1884_s15 }
  0x81   : > { %985 = vrot.lane.b32.xlu1 %v1946_v3, %s1882_s13  ;;  %935 = vrot.lane.b32.xlu0 %v1932_v0, %s1884_s15 }
  0x83   : > { %v401_v26 = vpop.permute.xlu1 %400  ;;  %v301_v27 = vpop.permute.xlu0 %300 }
  0x85   : > { %1083 = vrot.lane.b32.xlu1 %v1940_v2, %s1885_s26  ;;  %1081 = vrot.lane.b32.xlu0 %v1938_v1, %s1885_s26 }
  0x87   : > { %v2061_v32 = vpop.permute.xlu1 %402  ;;  %v2063_v33 = vpop.permute.xlu0 %302 }
  0x88   : > { %v411_v36 = vsel %vm408_vm0, %v401_v26, %v2061_v32  ;;  %v311_v37 = vsel %vm308_vm1, %v301_v27, %v2063_v33 }
  0x89   : > { %v437_v40 = vmul.f32 %v423_v28, %v411_v36  ;;  %v1263_v41 = vmul.f32 %v1246_v29, %v411_v36  ;;  %v337_v42 = vmul.f32 %v323_v30, %v311_v37  ;;  %v1189_v43 = vmul.f32 %v1172_v31, %v311_v37  ;;  %941 = vrot.lane.b32.xlu1 %v1946_v3, %s1884_s15  ;;  %v2179_v37 = vld [vmem:[%s2657_s2 + $0x47] ss:$8 sm:$0xf] }
  0x8a   : > { %860 = vrot.lane.b32.xlu0 %v1940_v2, %s1883_s14  ;;  %v275_v28 = vrot.slane %v2084_v44, %v1990_v6  ;;  %v1153_v29 = vrot.slane %v2089_v45, %v2011_v14  ;;  %v427_v30 = vrot.slane %v2027_v21, %v2013_v15  ;;  %v431_v31 = vrot.slane %v2027_v21, %v2011_v14  ;;  %v2174_v21 = vld [vmem:[%s2657_s2 + $0x5] ss:$8 sm:$0xf] }
  0x8b   : > { %v445_v46 = vrot.slane %v437_v40, 4  ;;  %v1271_v47 = vrot.slane %v1263_v41, 4  ;;  %v345_v48 = vrot.slane %v337_v42, 4  ;;  %v1197_v49 = vrot.slane %v1189_v43, 4  ;;  %v2094_v50 = vpop.permute.xlu1 %406  ;;  %v2096_v51 = vpop.permute.xlu0 %306 }
  0x8c   : > { %v412_v52 = vsel %vm408_vm0, %v2094_v50, %v401_v26  ;;  %v312_v53 = vsel %vm308_vm1, %v2096_v51, %v301_v27  ;;  %v1180_v27 = vrot.slane %v2045_v25, %v2013_v15  ;;  %v1254_v25 = vrot.slane %v2035_v22, %v2013_v15 }
  0x8d   : > { %453 = vst [vmem:[#allocation2 + $0x28] sm:$0xf0] %v445_v46  ;;  %1279 = vst [vmem:[#allocation2 + $0x140] sm:$0xf0] %v1271_v47  ;;  %v436_v56 = vmul.f32 %v419_v34, %v412_v52  ;;  %v1266_v57 = vmul.f32 %v1258_v35, %v412_v52  ;;  %v336_v58 = vmul.f32 %v319_v38, %v312_v53  ;;  %1037 = vrot.lane.b32.xlu1 %v1938_v1, %s1886_s6 }
  0x8e   : > { %353 = vst [vmem:[#allocation2 + $0x8] sm:$0xf0] %v345_v48  ;;  %1205 = vst [vmem:[#allocation2 + $0x120] sm:$0xf0] %v1197_v49  ;;  %v1192_v59 = vmul.f32 %v1184_v39, %v312_v53  ;;  %1079 = vrot.lane.b32.xlu0 %v1932_v0, %s1885_s26  ;;  %v375_v35 = vrot.slane %v2115_v60, %v1990_v6  ;;  %v1227_v36 = vrot.slane %v2120_v61, %v2011_v14 }
  0x8f   : > { %v444_v62 = vrot.slane %v436_v56, 4  ;;  %v1274_v63 = vrot.slane %v1266_v57, 4  ;;  %v344_v4 = vrot.slane %v336_v58, 4  ;;  %v2122_v8 = vpop.permute.xlu1 %257  ;;  %v256_v1 = vpop.permute.xlu0 %255  ;;  %v523_v48 = vrot.slane %v2174_v21, %v1992_v7 }
  0x90   : > { %v1200_v5 = vrot.slane %v1192_v59, 4  ;;  %v268_v9 = vsel %vm265_vm2, %v256_v1, %v2122_v8  ;;  %v1320_v49 = vrot.slane %v2179_v37, %v1990_v6 }
  0x91   : > { %452 = vst [vmem:[#allocation2 + $0x20] sm:$0xf0] %v444_v62  ;;  %1282 = vst [vmem:[#allocation2 + $0x158] sm:$0xf0] %v1274_v63  ;;  %v293_v10 = vmul.f32 %v279_v54, %v268_v9  ;;  %v1158_v11 = vmul.f32 %v1141_v55, %v268_v9  ;;  %1035 = vrot.lane.b32.xlu1 %v1932_v0, %s1886_s6  ;;  %v331_v0 = vrot.slane %v2040_v23, %v2011_v14 }
  0x92   : > { %352 = vst [vmem:[#allocation2] sm:$0xf0] %v344_v4  ;;  %1208 = vst [vmem:[#allocation2 + $0x138] sm:$0xf0] %v1200_v5  ;;  %1039 = vrot.lane.b32.xlu0 %v1940_v2, %s1886_s6  ;;  %v327_v2 = vrot.slane %v2040_v23, %v2013_v15  ;;  %v1887_v5 = vmov 0  }
  0x93   : > { %297 = vst [vmem:[#allocation2 + $0x8] sm:$0xf] %v293_v10  ;;  %1162 = vst [vmem:[#allocation2 + $0x120] sm:$0xf] %v1158_v11  ;;  %v2136_v16 = vpop.permute.xlu1 %358  ;;  %v357_v17 = vpop.permute.xlu0 %356  ;;  %1596 = vmatprep.mubr.bf16.mxu0 %v1887_v5  ;;  %1637 = vmatprep.mubr.bf16.mxu1 %v1887_v5 }
  0x94   : > { %v367_v18 = vsel %vm364_vm3, %v357_v17, %v2136_v16  ;;  %v2214_v10 = vld [vmem:[%s2657_s2 + $0x61] ss:$8 sm:$0xf] }
  0x95   : > { %v393_v24 = vmul.f32 %v379_v12, %v367_v18  ;;  %v1232_v26 = vmul.f32 %v1215_v13, %v367_v18  ;;  %1041 = vrot.lane.b32.xlu1 %v1946_v3, %s1886_s6  ;;  %s237_s6 = scalar_lea.vmem %s2658_s3, %s1833_s28 }
  0x96   : > { %1085 = vrot.lane.b32.xlu0 %v1946_v3, %s1885_s26  ;;  %v1250_v3 = vrot.slane %v2035_v22, %v1992_v7 }
  0x97   : > { %397 = vst [vmem:[#allocation2 + $0x28] sm:$0xf] %v393_v24  ;;  %1236 = vst [vmem:[#allocation2 + $0x140] sm:$0xf] %v1232_v26  ;;  %v305_v23 = vpop.permute.xlu1 %304  ;;  %v2161_v34 = vpop.permute.xlu0 %261 }
  0x98   : > { %v309_v22 = vsel %vm308_vm1, %v305_v23, %v2096_v51  ;;  %v310_v38 = vsel %vm308_vm1, %v2063_v33, %v305_v23  ;;  %v269_v39 = vsel %vm265_vm2, %v2161_v34, %v256_v1  ;;  %vm1551_vm1 = vcmask 1045504  }
  0x99   : > { %v338_v40 = vmul.f32 %v327_v2, %v310_v38  ;;  %v339_v41 = vmul.f32 %v331_v0, %v309_v22  ;;  %v1190_v42 = vmul.f32 %v1176_v19, %v310_v38  ;;  %v1191_v43 = vmul.f32 %v1180_v27, %v309_v22 }
  0x9a   : > { %v292_v46 = vmul.f32 %v275_v28, %v269_v39  ;;  %v1161_v47 = vmul.f32 %v1153_v29, %v269_v39  ;;  %v1464_v19 = vld [vmem:[#allocation2 + $0x8] sm:$0xff]  ;;  %v1394_v29 = vrot.slane %v2214_v10, %v1990_v6  ;;  %v1219_v22 = vrot.slane %v2120_v61, %v1992_v7 }
  0x9b   : > { %v346_v51 = vrot.slane %v338_v40, 4  ;;  %v347_v33 = vrot.slane %v339_v41, 4  ;;  %v1198_v52 = vrot.slane %v1190_v42, 4  ;;  %v1199_v53 = vrot.slane %v1191_v43, 4  ;;  %v405_v54 = vpop.permute.xlu1 %404  ;;  %v2195_v55 = vpop.permute.xlu0 %362 }
  0x9c   : > { %296 = vst [vmem:[#allocation2] sm:$0xf] %v292_v46  ;;  %1165 = vst [vmem:[#allocation2 + $0x138] sm:$0xf] %v1161_v47  ;;  %v409_v56 = vsel %vm408_vm0, %v405_v54, %v2094_v50  ;;  %v410_v57 = vsel %vm408_vm0, %v2061_v32, %v405_v54  ;;  %v368_v58 = vsel %vm364_vm3, %v2195_v55, %v357_v17  ;;  %vm1043_vm0 = vcmp.lt.s32.totalorder %v2022_v20, 120 }
  0x9d   : > { %354 = vst [vmem:[#allocation2 + $0x10] sm:$0xf0] %v346_v51  ;;  %355 = vst [vmem:[#allocation2 + $0x18] sm:$0xf0] %v347_v33  ;;  %v438_v59 = vmul.f32 %v427_v30, %v410_v57  ;;  %v439_v62 = vmul.f32 %v431_v31, %v409_v56  ;;  %v1264_v63 = vmul.f32 %v1250_v3, %v410_v57 }
  0x9e   : > { %1206 = vst [vmem:[#allocation2 + $0x128] sm:$0xf0] %v1198_v52  ;;  %1207 = vst [vmem:[#allocation2 + $0x130] sm:$0xf0] %v1199_v53  ;;  %v1265_v4 = vmul.f32 %v1254_v25, %v409_v56  ;;  %v392_v32 = vmul.f32 %v375_v35, %v368_v58  ;;  %v1235_v1 = vmul.f32 %v1227_v36, %v368_v58  ;;  %v1468_v9 = vld [vmem:[#allocation2 + $0x28] sm:$0xff] }
  0x9f   : > { %v2209_v50 = vld [vmem:[%s2657_s2 + $0x7] ss:$8 sm:$0xf]  ;;  %v446_v11 = vrot.slane %v438_v59, 4  ;;  %v447_v12 = vrot.slane %v439_v62, 4  ;;  %v1272_v13 = vrot.slane %v1264_v63, 4  ;;  %v2216_v18 = vpop.permute.xlu1 %502  ;;  %v2218_v0 = vpop.permute.xlu0 %500  ;;  %v1520_v26 = vpack.c.bf16 %v1468_v9, %v1464_v19 }
  0xa0   : > { %v1273_v17 = vrot.slane %v1265_v4, 4  ;;  %396 = vst [vmem:[#allocation2 + $0x20] sm:$0xf] %v392_v32  ;;  %1239 = vst [vmem:[#allocation2 + $0x158] sm:$0xf] %v1235_v1  ;;  %v511_v24 = vsel %vm508_vm4, %v2218_v0, %v2216_v18  ;;  %v623_v28 = vrot.slane %v2209_v50, %v1992_v7  ;;  %v383_v25 = vrot.slane %v2115_v60, %v2013_v15 }
  0xa1   : > { %454 = vst [vmem:[#allocation2 + $0x30] sm:$0xf0] %v446_v11  ;;  %455 = vst [vmem:[#allocation2 + $0x38] sm:$0xf0] %v447_v12  ;;  %v537_v2 = vmul.f32 %v523_v48, %v511_v24  ;;  %v1337_v27 = vmul.f32 %v1320_v49, %v511_v24  ;;  %1564 = vmatprep.subr.bf16.mxu0 %v1520_v26  ;;  %v387_v36 = vrot.slane %v2115_v60, %v2011_v14 }
  0xa2   : > { %1280 = vst [vmem:[#allocation2 + $0x148] sm:$0xf0] %v1272_v13  ;;  %1281 = vst [vmem:[#allocation2 + $0x150] sm:$0xf0] %v1273_v17  ;;  %v1223_v38 = vrot.slane %v2120_v61, %v2013_v15  ;;  %v283_v41 = vrot.slane %v2084_v44, %v2013_v15  ;;  %v287_v42 = vrot.slane %v2084_v44, %v2011_v14 }
  0xa3   : > { %v545_v30 = vrot.slane %v537_v2, 4  ;;  %v1345_v31 = vrot.slane %v1337_v27, 4  ;;  %v2229_v23 = vpop.permute.xlu1 %602  ;;  %v601_v3 = vpop.permute.xlu0 %600  ;;  %v1145_v43 = vrot.slane %v2089_v45, %v1992_v7  ;;  %v1149_v60 = vrot.slane %v2089_v45, %v2013_v15  ;;  %v1463_v5 = vld [vmem:[#allocation2] sm:$0xff] }
  0xa4   : > { %v611_v35 = vsel %vm608_vm5, %v601_v3, %v2229_v23  ;;  %v619_v46 = vrot.slane %v2209_v50, %v1990_v6  ;;  %v1406_v61 = vrot.slane %v2214_v10, %v2011_v14  ;;  %v519_v33 = vrot.slane %v2174_v21, %v1990_v6  ;;  %v2299_v27 = vld [vmem:[%s2657_s2 + $0x6] ss:$8 sm:$0xf] }
  0xa5   : > { %553 = vst [vmem:[#allocation2 + $0x48] sm:$0xf0] %v545_v30  ;;  %1353 = vst [vmem:[#allocation2 + $0x160] sm:$0xf0] %v1345_v31  ;;  %v637_v39 = vmul.f32 %v623_v28, %v611_v35  ;;  %v1411_v40 = vmul.f32 %v1394_v29, %v611_v35  ;;  %v1332_v44 = vrot.slane %v2179_v37, %v2011_v14 }
  0xa7   : > { %v645_v47 = vrot.slane %v637_v39, 4  ;;  %v1419_v48 = vrot.slane %v1411_v40, 4  ;;  %v361_v49 = vpop.permute.xlu1 %360  ;;  %v260_v51 = vpop.permute.xlu0 %259  ;;  %v1467_v56 = vld [vmem:[#allocation2 + $0x20] sm:$0xff] }
  0xa8   : > { %v365_v45 = vsel %vm364_vm3, %v361_v49, %v2195_v55  ;;  %v366_v52 = vsel %vm364_vm3, %v2136_v16, %v361_v49  ;;  %v266_v53 = vsel %vm265_vm2, %v260_v51, %v2161_v34  ;;  %v267_v54 = vsel %vm265_vm2, %v2122_v8, %v260_v51  ;;  %v2273_v55 = vld [vmem:[%s2657_s2 + $0x4] ss:$8 sm:$0xf]  ;;  %v2278_v16 = vld [vmem:[%s2657_s2 + $0x46] ss:$8 sm:$0xf] }
  0xa9   : > { %653 = vst [vmem:[#allocation2 + $0x68] sm:$0xf0] %v645_v47  ;;  %1427 = vst [vmem:[#allocation2 + $0x180] sm:$0xf0] %v1419_v48  ;;  %v394_v57 = vmul.f32 %v383_v25, %v366_v52  ;;  %v395_v58 = vmul.f32 %v387_v36, %v365_v45  ;;  %v1233_v59 = vmul.f32 %v1219_v22, %v366_v52  ;;  %vm1547_vm2 = vcmask 883712  }
  0xaa   : > { %v1234_v62 = vmul.f32 %v1223_v38, %v365_v45  ;;  %v294_v34 = vmul.f32 %v283_v41, %v267_v54  ;;  %v295_v63 = vmul.f32 %v287_v42, %v266_v53  ;;  %v1159_v8 = vmul.f32 %v1145_v43, %v267_v54 }
  0xab   : > { %v1160_v4 = vmul.f32 %v1149_v60, %v266_v53  ;;  %398 = vst [vmem:[#allocation2 + $0x30] sm:$0xf] %v394_v57  ;;  %399 = vst [vmem:[#allocation2 + $0x38] sm:$0xf] %v395_v58  ;;  %v1519_v32 = vpack.c.bf16 %v1467_v56, %v1463_v5  ;;  %v2280_v1 = vpop.permute.xlu1 %606  ;;  %v2282_v9 = vpop.permute.xlu0 %506  ;;  %v479_v13 = vrot.slane %v2273_v55, %v1992_v7  ;;  %vm1660_vm3 = vcmask 7168  }
  0xac   : > { %1237 = vst [vmem:[#allocation2 + $0x148] sm:$0xf] %v1233_v59  ;;  %1238 = vst [vmem:[#allocation2 + $0x150] sm:$0xf] %v1234_v62  ;;  %v612_v11 = vsel %vm608_vm5, %v2280_v1, %v601_v3  ;;  %v512_v12 = vsel %vm508_vm4, %v2282_v9, %v2218_v0  ;;  %v1289_v17 = vrot.slane %v2278_v16, %v1990_v6 }
  0xad   : > { %298 = vst [vmem:[#allocation2 + $0x10] sm:$0xf] %v294_v34  ;;  %299 = vst [vmem:[#allocation2 + $0x18] sm:$0xf] %v295_v63  ;;  %1565 = vmatpush1.bf16.msra.mxu0 %v1519_v32  ;;  %v636_v19 = vmul.f32 %v619_v46, %v612_v11  ;;  %v1414_v24 = vmul.f32 %v1406_v61, %v612_v11  ;;  %v536_v26 = vmul.f32 %v519_v33, %v512_v12 }
  0xae   : > { %1163 = vst [vmem:[#allocation2 + $0x128] sm:$0xf] %v1159_v8  ;;  %1164 = vst [vmem:[#allocation2 + $0x130] sm:$0xf] %v1160_v4  ;;  %v1340_v2 = vmul.f32 %v1332_v44, %v512_v12  ;;  %v579_v38 = vrot.slane %v2299_v27, %v1992_v7  ;;  %v527_v61 = vrot.slane %v2174_v21, %v2013_v15 }
  0xaf   : > { %v2304_v0 = vld [vmem:[%s2657_s2 + $0x60] ss:$8 sm:$0xf]  ;;  %v644_v28 = vrot.slane %v636_v19, 4  ;;  %v1422_v29 = vrot.slane %v1414_v24, 4  ;;  %v544_v30 = vrot.slane %v536_v26, 4  ;;  %v2306_v3 = vpop.permute.xlu1 %458  ;;  %v457_v25 = vpop.permute.xlu0 %456  ;;  %v531_v51 = vrot.slane %v2174_v21, %v2011_v14 }
  0xb0   : > { %v1348_v31 = vrot.slane %v1340_v2, 4  ;;  %v467_v35 = vsel %vm464_vm6, %v457_v25, %v2306_v3  ;;  %v1363_v39 = vrot.slane %v2304_v0, %v1990_v6  ;;  %v1324_v45 = vrot.slane %v2179_v37, %v1992_v7 }
  0xb1   : > { %652 = vst [vmem:[#allocation2 + $0x60] sm:$0xf0] %v644_v28  ;;  %1430 = vst [vmem:[#allocation2 + $0x198] sm:$0xf0] %v1422_v29  ;;  %v493_v36 = vmul.f32 %v479_v13, %v467_v35  ;;  %v1306_v22 = vmul.f32 %v1289_v17, %v467_v35  ;;  %v1328_v52 = vrot.slane %v2179_v37, %v2013_v15 }
  0xb2   : > { %552 = vst [vmem:[#allocation2 + $0x40] sm:$0xf0] %v544_v30  ;;  %1356 = vst [vmem:[#allocation2 + $0x178] sm:$0xf0] %v1348_v31  ;;  %v1470_v40 = vld [vmem:[#allocation2 + $0x38] sm:$0xff]  ;;  %v1469_v41 = vld [vmem:[#allocation2 + $0x30] sm:$0xff]  ;;  %v475_v53 = vrot.slane %v2273_v55, %v1990_v6  ;;  %v1301_v54 = vrot.slane %v2278_v16, %v2011_v14  ;;  %v627_v57 = vrot.slane %v2209_v50, %v2013_v15 }
  0xb3   : > { %497 = vst [vmem:[#allocation2 + $0x48] sm:$0xf] %v493_v36  ;;  %1310 = vst [vmem:[#allocation2 + $0x160] sm:$0xf] %v1306_v22  ;;  %v2316_v42 = vpop.permute.xlu1 %558  ;;  %v557_v43 = vpop.permute.xlu0 %556  ;;  %v631_v58 = vrot.slane %v2209_v50, %v2011_v14  ;;  %v1398_v37 = vrot.slane %v2214_v10, %v1992_v7  ;;  %v1402_v59 = vrot.slane %v2214_v10, %v2013_v15 }
  0xb4   : > { %v1466_v60 = vld [vmem:[#allocation2 + $0x18] sm:$0xff]  ;;  %v1465_v46 = vld [vmem:[#allocation2 + $0x10] sm:$0xff]  ;;  %v567_v47 = vsel %vm564_vm7, %v557_v43, %v2316_v42  ;;  %v575_v50 = vrot.slane %v2299_v27, %v1990_v6 }
  0xb5   : > { %v1522_v48 = vpack.c.bf16 %v1470_v40, %v1466_v60  ;;  %v1521_v49 = vpack.c.bf16 %v1469_v41, %v1465_v46  ;;  %v593_v33 = vmul.f32 %v579_v38, %v567_v47  ;;  %v1380_v44 = vmul.f32 %v1363_v39, %v567_v47  ;;  %v2357_v10 = vld [vmem:[%s2657_s2 + $0x21] ss:$8 sm:$0xf] }
  0xb6   : > { %v723_v30 = vrot.slane %v2357_v10, %v1992_v7 }
  0xb7   : > { %1605 = vmatprep.subr.bf16.mxu1 %v1522_v48  ;;  %597 = vst [vmem:[#allocation2 + $0x68] sm:$0xf] %v593_v33  ;;  %1384 = vst [vmem:[#allocation2 + $0x180] sm:$0xf] %v1380_v44  ;;  %v505_v56 = vpop.permute.xlu1 %504  ;;  %v2333_v21 = vpop.permute.xlu0 %462 }
  0xb8   : > { %1606 = vmatpush1.bf16.msra.mxu1 %v1521_v49  ;;  %v509_v62 = vsel %vm508_vm4, %v505_v56, %v2282_v9  ;;  %v510_v34 = vsel %vm508_vm4, %v2216_v18, %v505_v56  ;;  %v468_v63 = vsel %vm464_vm6, %v2333_v21, %v457_v25  ;;  %v1375_v18 = vrot.slane %v2304_v0, %v2011_v14 }
  0xb9   : > { %v538_v8 = vmul.f32 %v527_v61, %v510_v34  ;;  %v539_v4 = vmul.f32 %v531_v51, %v509_v62  ;;  %v1338_v5 = vmul.f32 %v1324_v45, %v510_v34  ;;  %v1339_v32 = vmul.f32 %v1328_v52, %v509_v62 }
  0xba   : > { %v492_v9 = vmul.f32 %v475_v53, %v468_v63  ;;  %v1309_v11 = vmul.f32 %v1301_v54, %v468_v63  ;;  %v1472_v61 = vld [vmem:[#allocation2 + $0x48] sm:$0xff]  ;;  %v583_v53 = vrot.slane %v2299_v27, %v2013_v15  ;;  %v587_v56 = vrot.slane %v2299_v27, %v2011_v14 }
  0xbb   : > { %v546_v12 = vrot.slane %v538_v8, 4  ;;  %v547_v13 = vrot.slane %v539_v4, 4  ;;  %v1346_v17 = vrot.slane %v1338_v5, 4  ;;  %v1347_v19 = vrot.slane %v1339_v32, 4  ;;  %v605_v24 = vpop.permute.xlu1 %604  ;;  %v563_v26 = vpop.permute.xlu0 %562 }
  0xbc   : > { %496 = vst [vmem:[#allocation2 + $0x40] sm:$0xf] %v492_v9  ;;  %1313 = vst [vmem:[#allocation2 + $0x178] sm:$0xf] %v1309_v11  ;;  %v609_v2 = vsel %vm608_vm5, %v605_v24, %v2280_v1  ;;  %v610_v28 = vsel %vm608_vm5, %v2229_v23, %v605_v24  ;;  %v568_v29 = vsel %vm564_vm7, %v563_v26, %v557_v43 }
  0xbd   : > { %554 = vst [vmem:[#allocation2 + $0x50] sm:$0xf0] %v546_v12  ;;  %555 = vst [vmem:[#allocation2 + $0x58] sm:$0xf0] %v547_v13  ;;  %v638_v31 = vmul.f32 %v627_v57, %v610_v28  ;;  %v639_v25 = vmul.f32 %v631_v58, %v609_v2  ;;  %v1412_v35 = vmul.f32 %v1398_v37, %v610_v28 }
  0xbe   : > { %1354 = vst [vmem:[#allocation2 + $0x168] sm:$0xf0] %v1346_v17  ;;  %1355 = vst [vmem:[#allocation2 + $0x170] sm:$0xf0] %v1347_v19  ;;  %v1413_v36 = vmul.f32 %v1402_v59, %v609_v2  ;;  %v592_v22 = vmul.f32 %v575_v50, %v568_v29  ;;  %v1383_v1 = vmul.f32 %v1375_v18, %v568_v29  ;;  %v1476_v38 = vld [vmem:[#allocation2 + $0x68] sm:$0xff] }
  0xbf   : > { %v2375_v23 = vld [vmem:[%s2657_s2 + $0x23] ss:$8 sm:$0xf]  ;;  %v646_v39 = vrot.slane %v638_v31, 4  ;;  %v647_v40 = vrot.slane %v639_v25, 4  ;;  %v1420_v41 = vrot.slane %v1412_v35, 4  ;;  %v2377_v60 = vpop.permute.xlu1 %702  ;;  %v2379_v46 = vpop.permute.xlu0 %700  ;;  %v1524_v48 = vpack.c.bf16 %v1476_v38, %v1472_v61 }
  0xc0   : > { %v1421_v43 = vrot.slane %v1413_v36, 4  ;;  %596 = vst [vmem:[#allocation2 + $0x60] sm:$0xf] %v592_v22  ;;  %1387 = vst [vmem:[#allocation2 + $0x198] sm:$0xf] %v1383_v1  ;;  %v711_v47 = vsel %vm708_vm8, %v2379_v46, %v2377_v60  ;;  %v823_v51 = vrot.slane %v2375_v23, %v1992_v7  ;;  %v1367_v57 = vrot.slane %v2304_v0, %v1992_v7 }
  0xc1   : > { %654 = vst [vmem:[#allocation2 + $0x70] sm:$0xf0] %v646_v39  ;;  %655 = vst [vmem:[#allocation2 + $0x78] sm:$0xf0] %v647_v40  ;;  %v737_v49 = vmul.f32 %v723_v30, %v711_v47  ;;  %1566 = vmatprep.subr.bf16.mxu0 %v1524_v48  ;;  %v1371_v58 = vrot.slane %v2304_v0, %v2013_v15  ;;  %v483_v37 = vrot.slane %v2273_v55, %v2013_v15 }
  0xc2   : > { %1428 = vst [vmem:[#allocation2 + $0x188] sm:$0xf0] %v1420_v41  ;;  %1429 = vst [vmem:[#allocation2 + $0x190] sm:$0xf0] %v1421_v43  ;;  %v487_v59 = vrot.slane %v2273_v55, %v2011_v14  ;;  %v1293_v62 = vrot.slane %v2278_v16, %v1992_v7  ;;  %v1297_v34 = vrot.slane %v2278_v16, %v2013_v15 }
  0xc3   : > { %v745_v33 = vrot.slane %v737_v49, 4  ;;  %v2388_v44 = vpop.permute.xlu1 %802  ;;  %v801_v45 = vpop.permute.xlu0 %800  ;;  %v819_v8 = vrot.slane %v2375_v23, %v1990_v6  ;;  %v719_v0 = vrot.slane %v2357_v10, %v1990_v6  ;;  %v2427_v13 = vld [vmem:[%s2657_s2 + $0x20] ss:$8 sm:$0xf] }
  0xc4   : > { %v811_v52 = vsel %vm808_vm9, %v801_v45, %v2388_v44  ;;  %v679_v35 = vrot.slane %v2427_v13, %v1992_v7  ;;  %v2450_v22 = vld [vmem:[%s2657_s2 + $0x22] ss:$8 sm:$0xf] }
  0xc5   : > { %753 = vst [vmem:[#allocation2 + $0x88] sm:$0xf0] %v745_v33  ;;  %v837_v54 = vmul.f32 %v823_v51, %v811_v52  ;;  %v779_v61 = vrot.slane %v2450_v22, %v1992_v7 }
  0xc7   : > { %v845_v63 = vrot.slane %v837_v54, 4  ;;  %v561_v27 = vpop.permute.xlu1 %560  ;;  %v461_v50 = vpop.permute.xlu0 %460  ;;  %v1475_v32 = vld [vmem:[#allocation2 + $0x60] sm:$0xff] }
  0xc8   : > { %v565_v4 = vsel %vm564_vm7, %v561_v27, %v563_v26  ;;  %v566_v55 = vsel %vm564_vm7, %v2316_v42, %v561_v27  ;;  %v465_v16 = vsel %vm464_vm6, %v461_v50, %v2333_v21  ;;  %v466_v5 = vsel %vm464_vm6, %v2306_v3, %v461_v50  ;;  %v1471_v21 = vld [vmem:[#allocation2 + $0x40] sm:$0xff] }
  0xc9   : > { %853 = vst [vmem:[#allocation2 + $0xa8] sm:$0xf0] %v845_v63  ;;  %v594_v9 = vmul.f32 %v583_v53, %v566_v55  ;;  %v595_v11 = vmul.f32 %v587_v56, %v565_v4  ;;  %v1381_v18 = vmul.f32 %v1367_v57, %v566_v55  ;;  %v1382_v12 = vmul.f32 %v1371_v58, %v565_v4  ;;  %v2432_v3 = vld [vmem:[%s2657_s2 + $0x62] ss:$8 sm:$0xf] }
  0xca   : > { %v494_v42 = vmul.f32 %v483_v37, %v466_v5  ;;  %v495_v17 = vmul.f32 %v487_v59, %v465_v16  ;;  %v1307_v19 = vmul.f32 %v1293_v62, %v466_v5  ;;  %v1308_v24 = vmul.f32 %v1297_v34, %v465_v16 }
  0xcb   : > { %598 = vst [vmem:[#allocation2 + $0x70] sm:$0xf] %v594_v9  ;;  %599 = vst [vmem:[#allocation2 + $0x78] sm:$0xf] %v595_v11  ;;  %v1523_v26 = vpack.c.bf16 %v1475_v32, %v1471_v21  ;;  %v2434_v2 = vpop.permute.xlu1 %806  ;;  %v707_v28 = vpop.permute.xlu0 %706  ;;  %v1437_v36 = vrot.slane %v2432_v3, %v1990_v6  ;;  %v727_v56 = vrot.slane %v2357_v10, %v2013_v15 }
  0xcc   : > { %1385 = vst [vmem:[#allocation2 + $0x188] sm:$0xf] %v1381_v18  ;;  %1386 = vst [vmem:[#allocation2 + $0x190] sm:$0xf] %v1382_v12  ;;  %v812_v29 = vsel %vm808_vm9, %v2434_v2, %v801_v45  ;;  %v712_v30 = vsel %vm708_vm8, %v707_v28, %v2379_v46  ;;  %v731_v58 = vrot.slane %v2357_v10, %v2011_v14 }
  0xcd   : > { %498 = vst [vmem:[#allocation2 + $0x50] sm:$0xf] %v494_v42  ;;  %499 = vst [vmem:[#allocation2 + $0x58] sm:$0xf] %v495_v17  ;;  %1567 = vmatpush1.bf16.msra.mxu0 %v1523_v26  ;;  %v836_v31 = vmul.f32 %v819_v8, %v812_v29  ;;  %v736_v25 = vmul.f32 %v719_v0, %v712_v30  ;;  %v675_v37 = vrot.slane %v2427_v13, %v1990_v6 }
  0xce   : > { %1311 = vst [vmem:[#allocation2 + $0x168] sm:$0xf] %v1307_v19  ;;  %1312 = vst [vmem:[#allocation2 + $0x170] sm:$0xf] %v1308_v24  ;;  %v1449_v59 = vrot.slane %v2432_v3, %v2011_v14  ;;  %v827_v63 = vrot.slane %v2375_v23, %v2013_v15  ;;  %v831_v27 = vrot.slane %v2375_v23, %v2011_v14 }
  0xcf   : > { %v844_v1 = vrot.slane %v836_v31, 4  ;;  %v744_v38 = vrot.slane %v736_v25, 4  ;;  %v2452_v39 = vpop.permute.xlu1 %658  ;;  %v657_v40 = vpop.permute.xlu0 %656  ;;  %v775_v0 = vrot.slane %v2450_v22, %v1990_v6  ;;  %v2489_v23 = vld [vmem:[%s2657_s2 + $0x27] ss:$8 sm:$0xf] }
  0xd0   : > { %v667_v41 = vsel %vm664_vm10, %v657_v40, %v2452_v39  ;;  %v1002_v21 = vrot.slane %v2489_v23, %v1992_v7 }
  0xd1   : > { %852 = vst [vmem:[#allocation2 + $0xa0] sm:$0xf0] %v844_v1  ;;  %752 = vst [vmem:[#allocation2 + $0x80] sm:$0xf0] %v744_v38  ;;  %v693_v43 = vmul.f32 %v679_v35, %v667_v41  ;;  %v1454_v46 = vmul.f32 %v1437_v36, %v667_v41  ;;  %v783_v35 = vrot.slane %v2450_v22, %v2013_v15 }
  0xd2   : > { %v1478_v47 = vld [vmem:[#allocation2 + $0x78] sm:$0xff]  ;;  %v1477_v48 = vld [vmem:[#allocation2 + $0x70] sm:$0xff]  ;;  %v787_v1 = vrot.slane %v2450_v22, %v2011_v14  ;;  %v683_v38 = vrot.slane %v2427_v13, %v2013_v15  ;;  %v1441_v41 = vrot.slane %v2432_v3, %v1992_v7 }
  0xd3   : > { %697 = vst [vmem:[#allocation2 + $0x88] sm:$0xf] %v693_v43  ;;  %1458 = vst [vmem:[#allocation2 + $0x1a0] sm:$0xf] %v1454_v46  ;;  %v2460_v49 = vpop.permute.xlu1 %758  ;;  %v757_v51 = vpop.permute.xlu0 %756  ;;  %v1445_v43 = vrot.slane %v2432_v3, %v2013_v15 }
  0xd4   : > { %v1474_v33 = vld [vmem:[#allocation2 + $0x58] sm:$0xff]  ;;  %v1473_v45 = vld [vmem:[#allocation2 + $0x50] sm:$0xff]  ;;  %v767_v52 = vsel %vm764_vm11, %v757_v51, %v2460_v49 }
  0xd5   : > { %v1526_v53 = vpack.c.bf16 %v1478_v47, %v1474_v33  ;;  %v1525_v54 = vpack.c.bf16 %v1477_v48, %v1473_v45  ;;  %v793_v57 = vmul.f32 %v779_v61, %v767_v52  ;;  %v998_v48 = vrot.slane %v2489_v23, %v1990_v6 }
  0xd7   : > { %1607 = vmatprep.subr.bf16.mxu1 %v1526_v53  ;;  %797 = vst [vmem:[#allocation2 + $0xa8] sm:$0xf] %v793_v57  ;;  %v705_v62 = vpop.permute.xlu1 %704  ;;  %v663_v34 = vpop.permute.xlu0 %662 }
  0xd8   : > { %1608 = vmatpush1.bf16.msra.mxu1 %v1525_v54  ;;  %v709_v10 = vsel %vm708_vm8, %v705_v62, %v707_v28  ;;  %v710_v50 = vsel %vm708_vm8, %v2377_v60, %v705_v62  ;;  %v668_v8 = vsel %vm664_vm10, %v663_v34, %v657_v40  ;;  %v687_v40 = vrot.slane %v2427_v13, %v2011_v14 }
  0xd9   : > { %v738_v4 = vmul.f32 %v727_v56, %v710_v50  ;;  %v739_v55 = vmul.f32 %v731_v58, %v709_v10  ;;  %v692_v16 = vmul.f32 %v675_v37, %v668_v8  ;;  %v1457_v5 = vmul.f32 %v1449_v59, %v668_v8 }
  0xda   : > { %v1480_v26 = vld [vmem:[#allocation2 + $0x88] sm:$0xff] }
  0xdb   : > { %v746_v32 = vrot.slane %v738_v4, 4  ;;  %v747_v9 = vrot.slane %v739_v55, 4  ;;  %696 = vst [vmem:[#allocation2 + $0x80] sm:$0xf] %v692_v16  ;;  %1461 = vst [vmem:[#allocation2 + $0x1b8] sm:$0xf] %v1457_v5  ;;  %v805_v60 = vpop.permute.xlu1 %804  ;;  %v763_v11 = vpop.permute.xlu0 %762 }
  0xdc   : > { %v809_v18 = vsel %vm808_vm9, %v805_v60, %v2434_v2  ;;  %v810_v12 = vsel %vm808_vm9, %v2388_v44, %v805_v60  ;;  %v768_v42 = vsel %vm764_vm11, %v763_v11, %v757_v51 }
  0xdd   : > { %754 = vst [vmem:[#allocation2 + $0x90] sm:$0xf0] %v746_v32  ;;  %755 = vst [vmem:[#allocation2 + $0x98] sm:$0xf0] %v747_v9  ;;  %v838_v17 = vmul.f32 %v827_v63, %v810_v12  ;;  %v839_v19 = vmul.f32 %v831_v27, %v809_v18  ;;  %v792_v24 = vmul.f32 %v775_v0, %v768_v42 }
  0xde   : > { %v1484_v28 = vld [vmem:[#allocation2 + $0xa8] sm:$0xff] }
  0xdf   : > { %v846_v2 = vrot.slane %v838_v17, 4  ;;  %v847_v29 = vrot.slane %v839_v19, 4  ;;  %796 = vst [vmem:[#allocation2 + $0xa0] sm:$0xf] %v792_v24  ;;  %v2502_v30 = vpop.permute.xlu1 %983  ;;  %v982_v44 = vpop.permute.xlu0 %981  ;;  %v1528_v31 = vpack.c.bf16 %v1484_v28, %v1480_v26  ;;  %v1006_v24 = vrot.slane %v2489_v23, %v2013_v15 }
  0xe0   : > { %v989_v25 = vsel %vm987_vm12, %v982_v44, %v2502_v30  ;;  %v2544_v27 = vld [vmem:[%s2657_s2 + $0x26] ss:$8 sm:$0xf]  ;;  %v1010_v28 = vrot.slane %v2489_v23, %v2011_v14 }
  0xe1   : > { %854 = vst [vmem:[#allocation2 + $0xb0] sm:$0xf0] %v846_v2  ;;  %855 = vst [vmem:[#allocation2 + $0xb8] sm:$0xf0] %v847_v29  ;;  %v1016_v36 = vmul.f32 %v1002_v21, %v989_v25  ;;  %1568 = vmatprep.subr.bf16.mxu0 %v1528_v31  ;;  %v958_v16 = vrot.slane %v2544_v27, %v1992_v7  ;;  %v954_v2 = vrot.slane %v2544_v27, %v1990_v6 }
  0xe2   : > { %v1479_v57 = vld [vmem:[#allocation2 + $0x80] sm:$0xff] }
  0xe3   : > { %v1024_v46 = vrot.slane %v1016_v36, 4  ;;  %v761_v61 = vpop.permute.xlu1 %760  ;;  %v661_v47 = vpop.permute.xlu0 %660  ;;  %v2569_v29 = vld [vmem:[%s2657_s2 + $0x41] ss:$8 sm:$0xf] }
  0xe4   : > { %v765_v22 = vsel %vm764_vm11, %v761_v61, %v763_v11  ;;  %v766_v51 = vsel %vm764_vm11, %v2460_v49, %v761_v61  ;;  %v665_v13 = vsel %vm664_vm10, %v661_v47, %v663_v34  ;;  %v666_v3 = vsel %vm664_vm10, %v2452_v39, %v661_v47  ;;  %v2534_v49 = vld [vmem:[%s2657_s2 + $0x24] ss:$8 sm:$0xf] }
  0xe5   : > { %1032 = vst [vmem:[#allocation2 + $0xe8] sm:$0xf0] %v1024_v46  ;;  %v794_v33 = vmul.f32 %v783_v35, %v766_v51  ;;  %v795_v45 = vmul.f32 %v787_v1, %v765_v22  ;;  %v694_v52 = vmul.f32 %v683_v38, %v666_v3  ;;  %v695_v53 = vmul.f32 %v687_v40, %v665_v13 }
  0xe6   : > { %v1455_v54 = vmul.f32 %v1441_v41, %v666_v3  ;;  %v1456_v56 = vmul.f32 %v1445_v43, %v665_v13  ;;  %v1483_v58 = vld [vmem:[#allocation2 + $0xa0] sm:$0xff]  ;;  %v879_v63 = vrot.slane %v2534_v49, %v1992_v7  ;;  %v875_v55 = vrot.slane %v2534_v49, %v1990_v6 }
  0xe7   : > { %798 = vst [vmem:[#allocation2 + $0xb0] sm:$0xf] %v794_v33  ;;  %799 = vst [vmem:[#allocation2 + $0xb8] sm:$0xf] %v795_v45  ;;  %v857_v37 = vpop.permute.xlu1 %856  ;;  %v980_v39 = vpop.permute.xlu0 %979  ;;  %v1527_v59 = vpack.c.bf16 %v1483_v58, %v1479_v57  ;;  %v1102_v40 = vrot.slane %v2569_v29, %v1992_v7  ;;  %v966_v22 = vrot.slane %v2544_v27, %v2011_v14 }
  0xe8   : > { %698 = vst [vmem:[#allocation2 + $0x90] sm:$0xf] %v694_v52  ;;  %699 = vst [vmem:[#allocation2 + $0x98] sm:$0xf] %v695_v53  ;;  %v990_v62 = vsel %vm987_vm12, %v980_v39, %v982_v44  ;;  %v883_v51 = vrot.slane %v2534_v49, %v2013_v15  ;;  %v887_v13 = vrot.slane %v2534_v49, %v2011_v14 }
  0xe9   : > { %1459 = vst [vmem:[#allocation2 + $0x1a8] sm:$0xf] %v1455_v54  ;;  %1460 = vst [vmem:[#allocation2 + $0x1b0] sm:$0xf] %v1456_v56  ;;  %v1015_v34 = vmul.f32 %v998_v48, %v990_v62  ;;  %1569 = vmatpush1.bf16.msra.mxu0 %v1527_v59  ;;  %v962_v48 = vrot.slane %v2544_v27, %v2013_v15 }
  0xeb   : > { %v1023_v10 = vrot.slane %v1015_v34, 4  ;;  %v938_v50 = vpop.permute.xlu1 %937  ;;  %v2546_v8 = vpop.permute.xlu0 %858  ;;  %v1098_v34 = vrot.slane %v2569_v29, %v1990_v6 }
  0xec   : > { %v867_v0 = vsel %vm864_vm13, %v857_v37, %v2546_v8 }
  0xed   : > { %1031 = vst [vmem:[#allocation2 + $0xe0] sm:$0xf0] %v1023_v10  ;;  %v893_v4 = vmul.f32 %v879_v63, %v867_v0  ;;  %v1815_v10 = vld [vmem:[%s2657_s2 + $0x40] ss:$8 sm:$0xf] }
  0xee   : > { %v1486_v32 = vld [vmem:[#allocation2 + $0xb8] sm:$0xff]  ;;  %v1485_v12 = vld [vmem:[#allocation2 + $0xb0] sm:$0xff] }
  0xef   : > { %v1482_v5 = vld [vmem:[#allocation2 + $0x98] sm:$0xff]  ;;  %v1481_v9 = vld [vmem:[#allocation2 + $0x90] sm:$0xff]  ;;  %897 = vst [vmem:[#allocation2 + $0xc8] sm:$0xf] %v893_v4  ;;  %v863_v60 = vpop.permute.xlu1 %862  ;;  %v940_v11 = vpop.permute.xlu0 %939 }
  0xf0   : > { %v1530_v18 = vpack.c.bf16 %v1486_v32, %v1482_v5  ;;  %v868_v42 = vsel %vm864_vm13, %v863_v60, %v857_v37  ;;  %v945_v17 = vsel %vm943_vm14, %v938_v50, %v940_v11  ;;  %v1529_v19 = vpack.c.bf16 %v1485_v12, %v1481_v9 }
  0xf1   : > { %v892_v21 = vmul.f32 %v875_v55, %v868_v42  ;;  %v972_v26 = vmul.f32 %v958_v16, %v945_v17  ;;  %v1054_v55 = vrot.slane %v1815_v10, %v1990_v6  ;;  %v1058_v5 = vrot.slane %v1815_v10, %v1992_v7 }
  0xf2   : > { %1609 = vmatprep.subr.bf16.mxu1 %v1530_v18  ;;  %v1062_v42 = vrot.slane %v1815_v10, %v2013_v15  ;;  %v1066_v17 = vrot.slane %v1815_v10, %v2011_v14  ;;  %v1106_v6 = vrot.slane %v2569_v29, %v2013_v15  ;;  %v1110_v7 = vrot.slane %v2569_v29, %v2011_v14  ;;  %v1509_v10 = vld [vmem:[#allocation2 + $0x170] sm:$0xff] }
  0xf3   : > { %1610 = vmatpush1.bf16.msra.mxu1 %v1529_v19  ;;  %896 = vst [vmem:[#allocation2 + $0xc0] sm:$0xf] %v892_v21  ;;  %976 = vst [vmem:[#allocation2 + $0xe8] sm:$0xf] %v972_v26  ;;  %v986_v44 = vpop.permute.xlu1 %985  ;;  %v936_v31 = vpop.permute.xlu0 %935 }
  0xf4   : > { %v988_v25 = vsel %vm987_vm12, %v2502_v30, %v986_v44  ;;  %v991_v23 = vsel %vm987_vm12, %v986_v44, %v980_v39  ;;  %v946_v35 = vsel %vm943_vm14, %v936_v31, %v938_v50 }
  0xf5   : > { %v1017_v36 = vmul.f32 %v1006_v24, %v988_v25  ;;  %v1018_v1 = vmul.f32 %v1010_v28, %v991_v23  ;;  %v971_v38 = vmul.f32 %v954_v2, %v946_v35 }
  0xf6   : > { %v1488_v3 = vld [vmem:[#allocation2 + $0xc8] sm:$0xff] }
  0xf7   : > { %v1025_v41 = vrot.slane %v1017_v36, 4  ;;  %v1026_v43 = vrot.slane %v1018_v1, 4  ;;  %975 = vst [vmem:[#allocation2 + $0xe0] sm:$0xf] %v971_v38  ;;  %v2581_v46 = vpop.permute.xlu1 %1083  ;;  %v1082_v30 = vpop.permute.xlu0 %1081 }
  0xf8   : > { %v1089_v61 = vsel %vm1087_vm15, %v1082_v30, %v2581_v46 }
  0xf9   : > { %1033 = vst [vmem:[#allocation2 + $0xf0] sm:$0xf0] %v1025_v41  ;;  %1034 = vst [vmem:[#allocation2 + $0xf8] sm:$0xf0] %v1026_v43  ;;  %v1116_v47 = vmul.f32 %v1102_v40, %v1089_v61 }
  0xfa   : > { %v1492_v33 = vld [vmem:[#allocation2 + $0xe8] sm:$0xff]  ;;  %v1487_v63 = vld [vmem:[#allocation2 + $0xc0] sm:$0xff] }
  0xfb   : > { %v1124_v45 = vrot.slane %v1116_v47, 4  ;;  %v942_v52 = vpop.permute.xlu1 %941  ;;  %v1532_v53 = vpack.c.bf16 %v1492_v33, %v1488_v3  ;;  %v1500_v47 = vld [vmem:[#allocation2 + $0x128] sm:$0xff]  ;;  %v1507_v3 = vld [vmem:[#allocation2 + $0x160] sm:$0xff] }
  0xfc   : > { %v944_v54 = vsel %vm943_vm14, %v940_v11, %v942_v52  ;;  %v947_v56 = vsel %vm943_vm14, %v942_v52, %v936_v31  ;;  %v861_v57 = vpop.permute.xlu0 %860  ;;  %v1516_v33 = vld [vmem:[#allocation2 + $0x1a8] sm:$0xf]  ;;  %v1515_v52 = vld [vmem:[#allocation2 + $0x1a0] sm:$0xf] }
  0xfd   : > { %1132 = vst [vmem:[#allocation2 + $0x108] sm:$0xf0] %v1124_v45  ;;  %v973_v58 = vmul.f32 %v962_v48, %v944_v54  ;;  %v974_v37 = vmul.f32 %v966_v22, %v947_v56  ;;  %v865_v39 = vsel %vm864_vm13, %v861_v57, %v863_v60  ;;  %v866_v49 = vsel %vm864_vm13, %v2546_v8, %v861_v57  ;;  %v1508_v22 = vld [vmem:[#allocation2 + $0x168] sm:$0xff]  ;;  %v1502_v45 = vld [vmem:[#allocation2 + $0x138] sm:$0xff]  ;;  %v1511_v56 = vld [vmem:[#allocation2 + $0x180] sm:$0xff] }
  0xfe   : > { %1570 = vmatprep.subr.bf16.mxu0 %v1532_v53  ;;  %v894_v59 = vmul.f32 %v883_v51, %v866_v49  ;;  %v895_v62 = vmul.f32 %v887_v13, %v865_v39  ;;  %v1491_v27 = vld [vmem:[#allocation2 + $0xe0] sm:$0xff]  ;;  %v1504_v51 = vld [vmem:[#allocation2 + $0x148] sm:$0xff]  ;;  %v1501_v53 = vld [vmem:[#allocation2 + $0x130] sm:$0xff] }
  0xff   : > { %977 = vst [vmem:[#allocation2 + $0xf0] sm:$0xf] %v973_v58  ;;  %978 = vst [vmem:[#allocation2 + $0xf8] sm:$0xf] %v974_v37  ;;  %v1038_v50 = vpop.permute.xlu1 %1037  ;;  %v1531_v0 = vpack.c.bf16 %v1491_v27, %v1487_v63  ;;  %v1540_v20 = vpack.c.bf16 %v1508_v22, %v1504_v51  ;;  %v1503_v13 = vld [vmem:[#allocation2 + $0x140] sm:$0xff]  ;;  %v1510_v54 = vld [vmem:[#allocation2 + $0x178] sm:$0xff] }
 0x100   : > { %898 = vst [vmem:[#allocation2 + $0xd0] sm:$0xf] %v894_v59  ;;  %899 = vst [vmem:[#allocation2 + $0xd8] sm:$0xf] %v895_v62  ;;  %v1080_v4 = vpop.permute.xlu0 %1079  ;;  %v1539_v57 = vpack.c.bf16 %v1507_v3, %v1503_v13  ;;  %v1512_v58 = vld [vmem:[#allocation2 + $0x188] sm:$0xff]  ;;  %v1506_v63 = vld [vmem:[#allocation2 + $0x158] sm:$0xff] }
 0x101   : > { %v1090_v8 = vsel %vm1087_vm15, %v1080_v4, %v1082_v30  ;;  %1571 = vmatpush1.bf16.msra.mxu0 %v1531_v0  ;;  %v1499_v30 = vld [vmem:[#allocation2 + $0x120] sm:$0xff]  ;;  %v1544_v49 = vpack.c.bf16 %v1516_v33, %v1512_v58  ;;  %v1542_v27 = vpack.c.bf16 %v1510_v54, %v1506_v63  ;;  %v1517_v0 = vld [vmem:[#allocation2 + $0x1b0] sm:$0xf] }
 0x102   : > { %v1115_v16 = vmul.f32 %v1098_v34, %v1090_v8  ;;  %v1543_v34 = vpack.c.bf16 %v1515_v52, %v1511_v56  ;;  %v1505_v8 = vld [vmem:[#allocation2 + $0x150] sm:$0xff] }
 0x103   : > { %v1036_v32 = vpop.permute.xlu1 %1035 }
 0x104   : > { %v1123_v9 = vrot.slane %v1115_v16, 4  ;;  %v1046_v60 = vsel %vm1043_vm0, %v1036_v32, %v1038_v50  ;;  %v1040_v11 = vpop.permute.xlu0 %1039  ;;  %v1462_v16 = vld [vmem:[%s2656_s1] sm:$0xf] }
 0x105   : > { %v1071_v18 = vmul.f32 %v1054_v55, %v1046_v60  ;;  %v1045_v12 = vsel %vm1043_vm0, %v1038_v50, %v1040_v11  ;;  %v1518_v50 = vld [vmem:[#allocation2 + $0x1b8] sm:$0xf]  ;;  %v1541_v55 = vpack.c.bf16 %v1509_v10, %v1505_v8 }
 0x106   : > { %1131 = vst [vmem:[#allocation2 + $0x100] sm:$0xf0] %v1123_v9  ;;  %v1072_v19 = vmul.f32 %v1058_v5, %v1045_v12  ;;  %v1494_v24 = vld [vmem:[#allocation2 + $0xf8] sm:$0xff]  ;;  %v1493_v21 = vld [vmem:[#allocation2 + $0xf0] sm:$0xff] }
 0x107   : > { %1075 = vst [vmem:[#allocation2 + $0x100] sm:$0xf] %v1071_v18  ;;  %v1042_v26 = vpop.permute.xlu1 %1041  ;;  %v1490_v28 = vld [vmem:[#allocation2 + $0xd8] sm:$0xff]  ;;  %v1489_v2 = vld [vmem:[#allocation2 + $0xd0] sm:$0xff] }
 0x108   : > { %1076 = vst [vmem:[#allocation2 + $0x108] sm:$0xf] %v1072_v19  ;;  %v1044_v44 = vsel %vm1043_vm0, %v1040_v11, %v1042_v26  ;;  %v1047_v31 = vsel %vm1043_vm0, %v1042_v26, %v1036_v32  ;;  %v1086_v25 = vpop.permute.xlu0 %1085  ;;  %v1534_v23 = vpack.c.bf16 %v1494_v24, %v1490_v28  ;;  %v1533_v35 = vpack.c.bf16 %v1493_v21, %v1489_v2  ;;  %v1514_v5 = vld [vmem:[#allocation2 + $0x198] sm:$0xff]  ;;  %v1513_v32 = vld [vmem:[#allocation2 + $0x190] sm:$0xff] }
 0x109   : > { %v1073_v15 = vmul.f32 %v1062_v42, %v1044_v44  ;;  %v1074_v36 = vmul.f32 %v1066_v17, %v1047_v31  ;;  %v1088_v14 = vsel %vm1087_vm15, %v2581_v46, %v1086_v25  ;;  %v1091_v29 = vsel %vm1087_vm15, %v1086_v25, %v1080_v4 }
 0x10a   : > { %v1117_v1 = vmul.f32 %v1106_v6, %v1088_v14  ;;  %v1118_v38 = vmul.f32 %v1110_v7, %v1091_v29  ;;  %1611 = vmatprep.subr.bf16.mxu1 %v1534_v23  ;;  %v1553_v4 = vsel %vm1551_vm1, %v1543_v34, 0  ;;  %v1546_v9 = vpack.c.bf16 %v1518_v50, %v1514_v5 }
 0x10b   : > { %1077 = vst [vmem:[#allocation2 + $0x110] sm:$0xf] %v1073_v15  ;;  %1078 = vst [vmem:[#allocation2 + $0x118] sm:$0xf] %v1074_v36  ;;  %1612 = vmatpush1.bf16.msra.mxu1 %v1533_v35  ;;  %v1545_v60 = vpack.c.bf16 %v1517_v0, %v1513_v32 }
 0x10c   : > { %v1125_v40 = vrot.slane %v1117_v1, 4  ;;  %v1126_v41 = vrot.slane %v1118_v38, 4 }
 0x10d   : > { %v1559_v11 = vsel %vm1551_vm1, %v1545_v60, 0 }
 0x10e   : > { %1133 = vst [vmem:[#allocation2 + $0x110] sm:$0xf0] %v1125_v40  ;;  %1134 = vst [vmem:[#allocation2 + $0x118] sm:$0xf0] %v1126_v41  ;;  %v1495_v43 = vld [vmem:[#allocation2 + $0x100] sm:$0xff] }
 0x10f   : > { %v1496_v61 = vld [vmem:[#allocation2 + $0x108] sm:$0xff]  ;;  %v1535_v48 = vpack.c.bf16 %v1499_v30, %v1495_v43 }
 0x110   : > { %v1536_v46 = vpack.c.bf16 %v1500_v47, %v1496_v61 }
 0x112   : > { %1572 = vmatprep.subr.bf16.mxu0 %v1536_v46 }
 0x113   : > { %1573 = vmatpush1.bf16.msra.mxu0 %v1535_v48 }
 0x114   : > { %1574 = vmatprep.subr.bf16.mxu0 %v1540_v20 }
 0x115   : > { %v1498_v37 = vld [vmem:[#allocation2 + $0x118] sm:$0xff]  ;;  %v1497_v39 = vld [vmem:[#allocation2 + $0x110] sm:$0xff] }
 0x116   : > { %v1538_v59 = vpack.c.bf16 %v1502_v45, %v1498_v37  ;;  %v1537_v62 = vpack.c.bf16 %v1501_v53, %v1497_v39 }
 0x117   : > { %1575 = vmatpush1.bf16.msra.mxu0 %v1539_v57 }
 0x118   : > { %1826 = vmatprep.subr.msk.bf16.mxu0 %vm1551_vm1, %v1544_v49  ;;  %1613 = vmatprep.subr.bf16.mxu1 %v1538_v59 }
 0x119   : > { %1614 = vmatpush1.bf16.msra.mxu1 %v1537_v62 }
 0x11a   : > { %1615 = vmatprep.subr.bf16.mxu1 %v1542_v27 }
 0x11b   : > { %1577 = vmatpush1.bf16.msra.mxu0 %v1553_v4 }
 0x11d   : > { %1616 = vmatpush1.bf16.msra.mxu1 %v1541_v55 }
 0x11e   : > { %1827 = vmatmul.mubr.msk.bf16.vlgmr.msra.gmra.mrb[0].mxu0 %vm1547_vm2, %v1462_v16  ;;  %1828 = vmatprep.subr.msk.bf16.mxu1 %vm1551_vm1, %v1546_v9 }
 0x121   : > { %1618 = vmatpush1.bf16.msra.mxu1 %v1559_v11 }
 0x124   : > { %1829 = vmatmul.mubr.msk.bf16.vlgmr.msra.gmra.mrb[0].mxu1 %vm1547_vm2, %v1462_v16 }
 0x1f1   : > { %v1598_v18 = vpop.f32.mrb[0].mxu0 }
 0x1f2   : > { %1646 = vst [vmem:[%s237_s6] sm:$0xff] %v1598_v18  ;;  %v1600_v12 = vpop.f32.mrb[1].mxu0 }
 0x1f3   : > { %1647 = vst [vmem:[%s237_s6 + $0x8] sm:$0xff] %v1600_v12  ;;  %v1650_v42 = vadd.f32 %v1600_v12, %v1598_v18  ;;  %v1602_v17 = vpop.f32.mrb[2].mxu0 }
 0x1f4   : > { %v1603_v19 = vpop.f32.mrb[3].mxu0 }
 0x1f7   : > { %v1639_v6 = vpop.f32.mrb[0].mxu1 }
 0x1f8   : > { %1648 = vst [vmem:[%s237_s6 + $0x10] sm:$0xff] %v1639_v6  ;;  %v1641_v7 = vpop.f32.mrb[1].mxu1  ;;  %v1651_v24 = vadd.f32 %v1650_v42, %v1639_v6 }
 0x1f9   : > { %1649 = vst [vmem:[%s237_s6 + $0x18] sm:$0xff] %v1641_v7  ;;  %v1643_v21 = vpop.f32.mrb[2].mxu1 }
 0x1fa   : > { %v1644_v26 = vpop.f32.mrb[3].mxu1  ;;  %v1652_v28 = vadd.f32 %v1651_v24, %v1641_v7 }
 0x1fc   : > { %1653 = vadd.xlane.f32.xlu0 %v1652_v28 }
 0x289   : > { %v1654_v2 = vpop.xlane.xlu0 %1653 }
 0x28a   : > { %v1655_v44 = vmul.f32 0.001953125, %v1654_v2  ;;  %1661 = vst.msk [vmem:[%s241_s10] sm:$0xff] %vm1660_vm3, %v1654_v2 }
 0x28c   : > { %v1656_v31 = vsub.f32 %v1598_v18, %v1655_v44  ;;  %v1657_v25 = vsub.f32 %v1600_v12, %v1655_v44  ;;  %v1658_v23 = vsub.f32 %v1639_v6, %v1655_v44  ;;  %v1659_v35 = vsub.f32 %v1641_v7, %v1655_v44 }
 0x28e   : > { %v1662_v15 = vmul.f32 %v1656_v31, %v1656_v31  ;;  %v1663_v36 = vmul.f32 %v1657_v25, %v1657_v25  ;;  %v1664_v14 = vmul.f32 %v1658_v23, %v1658_v23  ;;  %v1665_v1 = vmul.f32 %v1659_v35, %v1659_v35 }
 0x290   : > { %v1666_v29 = vadd.f32 %v1663_v36, %v1662_v15 }
 0x292   : > { %v1667_v38 = vadd.f32 %v1666_v29, %v1664_v14 }
 0x294   : > { %v1668_v40 = vadd.f32 %v1667_v38, %v1665_v1 }
 0x296   : > { %1669 = vadd.xlane.f32.xlu1 %v1668_v40 }
 0x323   : > { %v1670_v41 = vpop.xlane.xlu1 %1669 }
 0x324   : > { %1671 = vst.msk [vmem:[%s245_s12] sm:$0xff] %vm1660_vm3, %v1670_v41 }
 0x325 PF: > { %s16_s18 = sadd.s32 1, %s1868_s18  }
 0x326   : > { %p13_p4 = scmp.ge.s32.totalorder %s16_s18, 4  }
 0x328   :  { %15 = sbr.rel (!%p13_p4) target bundleno = 1 (0x1), region = 112 }

// kernel: double_conv.4
= control target key start
LH: loop header
LB: loop body
LE: loop exit
PB: predicated region body
PF: predicated region fallthrough
CT: control target
= control target key end

     0   :  { %s1943_s24 = smov 0   ;;  %s2625_s0 = inlined_call_operand.vmem [shape: f32[2,8,512], index: 0, kind: input, shape index: {}]   ;;  %s2626_s1 = inlined_call_operand.vmem [shape: f32[8,1], index: 1, kind: input, shape index: {}]   ;;  %s2627_s2 = inlined_call_operand.vmem [shape: f32[8,1], index: 2, kind: input, shape index: {}]   ;;  %s2628_s3 = inlined_call_operand.vmem [shape: bf16[8,216], index: 3, kind: input, shape index: {}]   ;;  %s2629_s4 = inlined_call_operand.vmem [shape: f32[27,512], index: 4, kind: input, shape index: {}]   ;;  %s2630_s5 = inlined_call_operand.vmem [shape: f32[2,8,512], index: 5, kind: output, shape index: {0}]   ;;  %s2631_s6 = inlined_call_operand.vmem [shape: f32[2,8,1], index: 6, kind: output, shape index: {1}]   ;;  %s2632_s7 = inlined_call_operand.vmem [shape: f32[2,8,1], index: 7, kind: output, shape index: {2}]  }
   0x1 LB: > { %s1801_s25 = sadd.s32 4294967295, %s1883_s24   ;;  %p1805_p0 = scmp.ge.s32.totalorder %s1883_s24, 1  ;;  %s1883_s24 = sphi %s1943_s24, %s18_s24  }
   0x2   : > { %p242_p1 = scmp.lt.s32.totalorder %s1883_s24, 3 }
   0x4   : > { %p243_p2 = pnand %p1805_p0, %p242_p1 }
   0x6   : > { %246 = sbr.rel (%p243_p2) target bundleno = 945 (0x3b1), region = 40 }
   0xd   : > { %v305_v0 = vld [vmem:[%s2626_s1] sm:$0xff]  ;;  %v1885_v1 = vmov 0   ;;  %p282_p3 = scmp.lt.s32.totalorder %s1801_s25, 1  ;;  %s1886_s11 = smov 72   ;;  %v337_v21 = vlaneseq  ;;  %vm1559_vm4 = vcmask 719872  }
   0xe   : > { %1874 = vset.pattern.permute.xlu0 %v1885_v1  ;;  %v315_v2 = vld [vmem:[%s2627_s2] sm:$0xff]  ;;  %s1887_s12 = smov 73   ;;  %s1888_s13 = smov 71  }
   0xf   : > { %308 = vperm.xlu0 %1874, %v305_v0   ;;  %s2680_s25 = smov (!%p282_p3, %s1801_s25), 1  ;;  %s1889_s14 = smov 65   ;;  %v2031_v24 = vand.u32 127, %v337_v21  ;;  %v347_v25 = vshrl.u32 %v337_v21, 7 }
  0x10   : > { %s1846_s30 = sshll.u32 %s2680_s25, 5  ;;  %s1890_s15 = smov 64   ;;  %v2039_v26 = vld [vmem:[%s2629_s4] ss:$8 sm:$0xf] }
  0x11   : > { %s286_s10 = scalar_lea.vmem %s2625_s0, %s1846_s30  ;;  %s1891_s16 = smov 63   ;;  %v1829_v27 = vld [vmem:[%s2629_s4 + $0x42] ss:$8 sm:$0xf]  ;;  %vm339_vm0 = vcmp.lt.s32.totalorder %v2031_v24, 73  ;;  %v2050_v29 = vsub.s32 0, %v347_v25 }
  0x12   : > { %v301_v4 = vld [vmem:[%s286_s10] sm:$0xff]  ;;  %v302_v5 = vld [vmem:[%s286_s10 + $0x8] sm:$0xff]  ;;  %v304_v6 = vld [vmem:[%s286_s10 + $0x18] sm:$0xff]  ;;  %s1892_s17 = smov 57   ;;  %s1893_s18 = smov 56   ;;  %v2057_v33 = vsub.s32 3, %v347_v25 }
  0x13   : > { %318 = vperm.xlu0 %1874, %v315_v2   ;;  %v303_v12 = vld [vmem:[%s286_s10 + $0x10] sm:$0xff]  ;;  %s1894_s19 = smov 55   ;;  %s1895_s20 = smov 9   ;;  %v2059_v34 = vsub.s32 1, %v347_v25  ;;  %v1115_v35 = vrot.slane %v1829_v27, %v2050_v29  ;;  %v2065_v36 = vsub.s32 2, %v347_v25  ;;  %vm382_vm1 = vcmp.lt.s32.totalorder %v2031_v24, 72 }
  0x14   : > { %s1896_s21 = smov 8   ;;  %s1897_s22 = smov 7   ;;  %v2047_v28 = vld [vmem:[%s2629_s4 + $0x43] ss:$8 sm:$0xf]  ;;  %v349_v41 = vrot.slane %v2039_v26, %v2050_v29  ;;  %v1127_v42 = vrot.slane %v1829_v27, %v2057_v33  ;;  %v361_v57 = vrot.slane %v2039_v26, %v2057_v33  ;;  %vm426_vm2 = vcmp.lt.s32.totalorder %v2031_v24, 71 }
  0x15   : > { %s1898_s23 = smov 1   ;;  %s1899_s26 = smov 127   ;;  %v2055_v32 = vld [vmem:[%s2629_s4 + $0x1] ss:$8 sm:$0xf]  ;;  %v1146_v37 = vrot.slane %v2047_v28, %v2050_v29  ;;  %v353_v39 = vrot.slane %v2039_v26, %v2059_v34  ;;  %v357_v43 = vrot.slane %v2039_v26, %v2065_v36  ;;  %v1119_v46 = vrot.slane %v1829_v27, %v2059_v34 }
  0x16   : > { %s1900_s27 = smov 121   ;;  %s1901_s28 = smov 120   ;;  %v397_v40 = vrot.slane %v2055_v32, %v2059_v34  ;;  %v1123_v47 = vrot.slane %v1829_v27, %v2065_v36  ;;  %v393_v49 = vrot.slane %v2055_v32, %v2050_v29  ;;  %v1158_v53 = vrot.slane %v2047_v28, %v2057_v33  ;;  %v1813_v27 = vld [vmem:[%s2629_s4 + $0x2] ss:$8 sm:$0xf] }
  0x17   : > { %v401_v56 = vrot.slane %v2055_v32, %v2065_v36  ;;  %v1150_v60 = vrot.slane %v2047_v28, %v2059_v34  ;;  %v1154_v61 = vrot.slane %v2047_v28, %v2065_v36  ;;  %v405_v62 = vrot.slane %v2055_v32, %v2057_v33  ;;  %v1831_v28 = vld [vmem:[%s2629_s4 + $0x44] ss:$8 sm:$0xf]  ;;  %s1810_s29 = sshll.u32 %s2680_s25, 3 }
  0x18   : > { %vm470_vm3 = vcmp.lt.s32.totalorder %v2031_v24, 65  ;;  %vm514_vm5 = vcmp.lt.s32.totalorder %v2031_v24, 64  ;;  %vm558_vm6 = vcmp.lt.s32.totalorder %v2031_v24, 63  ;;  %vm602_vm7 = vcmp.lt.s32.totalorder %v2031_v24, 57  ;;  %s295_s9 = scalar_lea.vmem %s2631_s6, %s1810_s29 }
  0x19   : > { %vm646_vm8 = vcmp.lt.s32.totalorder %v2031_v24, 56  ;;  %vm690_vm9 = vcmp.lt.s32.totalorder %v2031_v24, 55  ;;  %vm734_vm10 = vcmp.lt.s32.totalorder %v2031_v24, 9  ;;  %vm778_vm11 = vcmp.lt.s32.totalorder %v2031_v24, 8 }
  0x1a   : > { %vm822_vm12 = vcmp.lt.s32.totalorder %v2031_v24, 7  ;;  %vm866_vm13 = vcmp.lt.s32.totalorder %v2031_v24, 1  ;;  %vm941_vm14 = vcmp.lt.s32.totalorder %v2031_v24, 127  ;;  %vm985_vm15 = vcmp.lt.s32.totalorder %v2031_v24, 121 }
  0x8e   : > { %v309_v3 = vpop.permute.xlu0 %308 }
  0x8f   : > { %v311_v7 = vmul.f32 %v309_v3, %v301_v4  ;;  %v312_v9 = vmul.f32 %v309_v3, %v302_v5  ;;  %v314_v10 = vmul.f32 %v309_v3, %v304_v6  ;;  %v313_v16 = vmul.f32 %v309_v3, %v303_v12 }
  0x92   : > { %v319_v8 = vpop.permute.xlu0 %318 }
  0x93   : > { %v321_v11 = vadd.f32 %v319_v8, %v311_v7  ;;  %v322_v13 = vadd.f32 %v319_v8, %v312_v9  ;;  %v324_v14 = vadd.f32 %v319_v8, %v314_v10  ;;  %v323_v17 = vadd.f32 %v319_v8, %v313_v16 }
  0x95   : > { %v1965_v15 = vmax.f32 %v321_v11, 0.0  ;;  %v1969_v18 = vmax.f32 %v322_v13, 0.0  ;;  %v1971_v19 = vmax.f32 %v324_v14, 0.0  ;;  %v1975_v20 = vmax.f32 %v323_v17, 0.0 }
  0x97   : > { %374 = vrot.lane.b32.xlu0 %v1965_v15, %s1886_s11  ;;  %329 = vrot.lane.b32.xlu1 %v1965_v15, %s1887_s12 }
  0x9b   : > { %335 = vrot.lane.b32.xlu0 %v1971_v19, %s1887_s12  ;;  %331 = vrot.lane.b32.xlu1 %v1969_v18, %s1887_s12 }
  0x9f   : > { %333 = vrot.lane.b32.xlu0 %v1975_v20, %s1887_s12  ;;  %376 = vrot.lane.b32.xlu1 %v1969_v18, %s1886_s11 }
  0xa3   : > { %418 = vrot.lane.b32.xlu0 %v1965_v15, %s1888_s13  ;;  %380 = vrot.lane.b32.xlu1 %v1971_v19, %s1886_s11 }
  0xa7   : > { %462 = vrot.lane.b32.xlu0 %v1965_v15, %s1889_s14  ;;  %378 = vrot.lane.b32.xlu1 %v1975_v20, %s1886_s11  ;;  %s299_s11 = scalar_lea.vmem %s2632_s7, %s1810_s29 }
  0xab   : > { %424 = vrot.lane.b32.xlu0 %v1971_v19, %s1888_s13  ;;  %420 = vrot.lane.b32.xlu1 %v1969_v18, %s1888_s13 }
  0xaf   : > { %422 = vrot.lane.b32.xlu0 %v1975_v20, %s1888_s13  ;;  %464 = vrot.lane.b32.xlu1 %v1969_v18, %s1889_s14 }
  0xb3   : > { %506 = vrot.lane.b32.xlu0 %v1965_v15, %s1890_s15  ;;  %468 = vrot.lane.b32.xlu1 %v1971_v19, %s1889_s14 }
  0xb7   : > { %550 = vrot.lane.b32.xlu0 %v1965_v15, %s1891_s16  ;;  %466 = vrot.lane.b32.xlu1 %v1975_v20, %s1889_s14 }
  0xbb   : > { %512 = vrot.lane.b32.xlu0 %v1971_v19, %s1890_s15  ;;  %508 = vrot.lane.b32.xlu1 %v1969_v18, %s1890_s15 }
  0xbf   : > { %510 = vrot.lane.b32.xlu0 %v1975_v20, %s1890_s15  ;;  %552 = vrot.lane.b32.xlu1 %v1969_v18, %s1891_s16  ;;  %s1902_s15 = smov 119  }
  0xc3   : > { %594 = vrot.lane.b32.xlu0 %v1965_v15, %s1892_s17  ;;  %556 = vrot.lane.b32.xlu1 %v1971_v19, %s1891_s16 }
  0xc7   : > { %638 = vrot.lane.b32.xlu0 %v1965_v15, %s1893_s18  ;;  %554 = vrot.lane.b32.xlu1 %v1975_v20, %s1891_s16 }
  0xcb   : > { %600 = vrot.lane.b32.xlu0 %v1971_v19, %s1892_s17  ;;  %596 = vrot.lane.b32.xlu1 %v1969_v18, %s1892_s17 }
  0xcf   : > { %598 = vrot.lane.b32.xlu0 %v1975_v20, %s1892_s17  ;;  %640 = vrot.lane.b32.xlu1 %v1969_v18, %s1893_s18 }
  0xd3   : > { %682 = vrot.lane.b32.xlu0 %v1965_v15, %s1894_s19  ;;  %644 = vrot.lane.b32.xlu1 %v1971_v19, %s1893_s18 }
  0xd7   : > { %726 = vrot.lane.b32.xlu0 %v1965_v15, %s1895_s20  ;;  %642 = vrot.lane.b32.xlu1 %v1975_v20, %s1893_s18 }
  0xdb   : > { %688 = vrot.lane.b32.xlu0 %v1971_v19, %s1894_s19  ;;  %684 = vrot.lane.b32.xlu1 %v1969_v18, %s1894_s19 }
  0xdf   : > { %686 = vrot.lane.b32.xlu0 %v1975_v20, %s1894_s19  ;;  %728 = vrot.lane.b32.xlu1 %v1969_v18, %s1895_s20 }
  0xe3   : > { %770 = vrot.lane.b32.xlu0 %v1965_v15, %s1896_s21  ;;  %732 = vrot.lane.b32.xlu1 %v1971_v19, %s1895_s20 }
  0xe7   : > { %814 = vrot.lane.b32.xlu0 %v1965_v15, %s1897_s22  ;;  %730 = vrot.lane.b32.xlu1 %v1975_v20, %s1895_s20 }
  0xeb   : > { %776 = vrot.lane.b32.xlu0 %v1971_v19, %s1896_s21  ;;  %772 = vrot.lane.b32.xlu1 %v1969_v18, %s1896_s21 }
  0xef   : > { %774 = vrot.lane.b32.xlu0 %v1975_v20, %s1896_s21  ;;  %816 = vrot.lane.b32.xlu1 %v1969_v18, %s1897_s22 }
  0xf3   : > { %858 = vrot.lane.b32.xlu0 %v1965_v15, %s1898_s23  ;;  %820 = vrot.lane.b32.xlu1 %v1971_v19, %s1897_s22 }
  0xf7   : > { %864 = vrot.lane.b32.xlu0 %v1971_v19, %s1898_s23  ;;  %818 = vrot.lane.b32.xlu1 %v1975_v20, %s1897_s22 }
  0xfb   : > { %935 = vrot.lane.b32.xlu0 %v1969_v18, %s1899_s26  ;;  %860 = vrot.lane.b32.xlu1 %v1969_v18, %s1898_s23 }
  0xff   : > { %979 = vrot.lane.b32.xlu0 %v1969_v18, %s1900_s27  ;;  %862 = vrot.lane.b32.xlu1 %v1975_v20, %s1898_s23 }
 0x103   : > { %933 = vrot.lane.b32.xlu0 %v1965_v15, %s1899_s26  ;;  %937 = vrot.lane.b32.xlu1 %v1975_v20, %s1899_s26 }
 0x107   : > { %939 = vrot.lane.b32.xlu0 %v1971_v19, %s1899_s26  ;;  %981 = vrot.lane.b32.xlu1 %v1975_v20, %s1900_s27 }
 0x109   : > { %v375_v22 = vpop.permute.xlu0 %374  ;;  %v330_v23 = vpop.permute.xlu1 %329 }
 0x10b   : > { %1023 = vrot.lane.b32.xlu0 %v1969_v18, %s1901_s28  ;;  %977 = vrot.lane.b32.xlu1 %v1965_v15, %s1900_s27 }
 0x10d   : > { %v336_v30 = vpop.permute.xlu0 %335  ;;  %v332_v31 = vpop.permute.xlu1 %331 }
 0x10e   : > { %v342_v38 = vsel %vm339_vm0, %v330_v23, %v332_v31  ;;  %v343_v50 = vsel %vm339_vm0, %v336_v30, %v330_v23 }
 0x10f   : > { %1067 = vrot.lane.b32.xlu0 %v1969_v18, %s1902_s15  ;;  %983 = vrot.lane.b32.xlu1 %v1971_v19, %s1900_s27  ;;  %v2089_v51 = vmul.f32 %v1115_v35, %v342_v38  ;;  %v367_v54 = vmul.f32 %v353_v39, %v342_v38  ;;  %v366_v0 = vmul.f32 %v349_v41, %v343_v50  ;;  %v2157_v38 = vld [vmem:[%s2629_s4 + $0x45] ss:$8 sm:$0xf] }
 0x110   : > { %v2117_v4 = vmul.f32 %v1127_v42, %v343_v50  ;;  %v441_v41 = vrot.slane %v1813_v27, %v2059_v34  ;;  %v1177_v42 = vrot.slane %v1831_v28, %v2050_v29 }
 0x111   : > { %v334_v44 = vpop.permute.xlu0 %333  ;;  %v377_v45 = vpop.permute.xlu1 %376 }
 0x112   : > { %v385_v48 = vsel %vm382_vm1, %v375_v22, %v377_v45  ;;  %v341_v1 = vsel %vm339_vm0, %v332_v31, %v334_v44  ;;  %v340_v5 = vsel %vm339_vm0, %v334_v44, %v336_v30  ;;  %v1208_v44 = vrot.slane %v2157_v38, %v2050_v29 }
 0x113   : > { %v2091_v52 = vmul.f32 %v1146_v37, %v385_v48  ;;  %1021 = vrot.lane.b32.xlu0 %v1965_v15, %s1901_s28  ;;  %1025 = vrot.lane.b32.xlu1 %v1975_v20, %s1901_s28  ;;  %v411_v55 = vmul.f32 %v397_v40, %v385_v48  ;;  %v368_v8 = vmul.f32 %v357_v43, %v341_v1  ;;  %v2152_v37 = vld [vmem:[%s2629_s4 + $0x3] ss:$8 sm:$0xf]  ;;  %vm1029_vm0 = vcmp.lt.s32.totalorder %v2031_v24, 120 }
 0x114   : > { %v2127_v9 = vmul.f32 %v1119_v46, %v341_v1  ;;  %v2131_v14 = vmul.f32 %v1123_v47, %v340_v5  ;;  %v369_v21 = vmul.f32 %v361_v57, %v340_v5  ;;  %v485_v43 = vrot.slane %v2152_v37, %v2059_v34 }
 0x115   : > { %v2103_v58 = vpop.permute.xlu0 %418  ;;  %v381_v59 = vpop.permute.xlu1 %380  ;;  %v1498_v3 = vpack.c.bf16 %v411_v55, %v367_v54  ;;  %v1189_v46 = vrot.slane %v1831_v28, %v2057_v33  ;;  %v445_v48 = vrot.slane %v1813_v27, %v2065_v36  ;;  %v1181_v54 = vrot.slane %v1831_v28, %v2059_v34 }
 0x116   : > { %v386_v2 = vsel %vm382_vm1, %v381_v59, %v375_v22  ;;  %v1185_v55 = vrot.slane %v1831_v28, %v2065_v36 }
 0x117   : > { %v410_v6 = vmul.f32 %v393_v49, %v386_v2  ;;  %v2121_v7 = vmul.f32 %v1158_v53, %v386_v2  ;;  %1027 = vrot.lane.b32.xlu0 %v1971_v19, %s1901_s28  ;;  %1069 = vrot.lane.b32.xlu1 %v1975_v20, %s1902_s15  ;;  %v449_v53 = vrot.slane %v1813_v27, %v2057_v33  ;;  %s291_s28 = scalar_lea.vmem %s2630_s5, %s1846_s30 }
 0x118   : > { %1576 = vmatprep.subr.bf16.mxu0 %v1498_v3 }
 0x119   : > { %v463_v10 = vpop.permute.xlu0 %462  ;;  %v379_v11 = vpop.permute.xlu1 %378  ;;  %v1497_v12 = vpack.c.bf16 %v410_v6, %v366_v0 }
 0x11a   : > { %v383_v16 = vsel %vm382_vm1, %v379_v11, %v381_v59  ;;  %v384_v17 = vsel %vm382_vm1, %v377_v45, %v379_v11  ;;  %v437_v45 = vrot.slane %v1813_v27, %v2050_v29  ;;  %v481_v59 = vrot.slane %v2152_v37, %v2050_v29 }
 0x11b   : > { %v412_v22 = vmul.f32 %v401_v56, %v384_v17  ;;  %v2137_v23 = vmul.f32 %v1150_v60, %v384_v17  ;;  %v2139_v25 = vmul.f32 %v1154_v61, %v383_v16  ;;  %1577 = vmatpush1.bf16.msra.mxu0 %v1497_v12  ;;  %v413_v26 = vmul.f32 %v405_v62, %v383_v16 }
 0x11c   : > { %1065 = vrot.lane.b32.xlu1 %v1965_v15, %s1902_s15  ;;  %v1220_v60 = vrot.slane %v2157_v38, %v2057_v33  ;;  %v489_v61 = vrot.slane %v2152_v37, %v2065_v36  ;;  %v1212_v11 = vrot.slane %v2157_v38, %v2059_v34  ;;  %v1216_v17 = vrot.slane %v2157_v38, %v2065_v36 }
 0x11d   : > { %v425_v30 = vpop.permute.xlu0 %424  ;;  %v421_v31 = vpop.permute.xlu1 %420  ;;  %v1500_v32 = vpack.c.bf16 %v413_v26, %v369_v21  ;;  %v1499_v35 = vpack.c.bf16 %v412_v22, %v368_v8  ;;  %v493_v8 = vrot.slane %v2152_v37, %v2057_v33  ;;  %vm1073_vm1 = vcmp.lt.s32.totalorder %v2031_v24, 119 }
 0x11e   : > { %v429_v47 = vsel %vm426_vm2, %v2103_v58, %v421_v31  ;;  %v430_v57 = vsel %vm426_vm2, %v425_v30, %v2103_v58 }
 0x11f   : > { %1617 = vmatprep.subr.bf16.mxu1 %v1500_v32  ;;  %v455_v62 = vmul.f32 %v441_v41, %v429_v47  ;;  %v2193_v0 = vmul.f32 %v1177_v42, %v429_v47  ;;  %v454_v22 = vmul.f32 %v437_v45, %v430_v57  ;;  %v2211_v26 = vmul.f32 %v1189_v46, %v430_v57 }
 0x120   : > { %1071 = vrot.lane.b32.xlu1 %v1971_v19, %s1902_s15  ;;  %1618 = vmatpush1.bf16.msra.mxu1 %v1499_v35 }
 0x121   : > { %v423_v49 = vpop.permute.xlu0 %422  ;;  %v465_v50 = vpop.permute.xlu1 %464 }
 0x122   : > { %v473_v56 = vsel %vm470_vm3, %v463_v10, %v465_v50  ;;  %v427_v3 = vsel %vm426_vm2, %v423_v49, %v425_v30  ;;  %v428_v58 = vsel %vm426_vm2, %v421_v31, %v423_v49  ;;  %v2218_v30 = vld [vmem:[%s2628_s3] sm:$0xff]  ;;  %vm1563_vm2 = vcmask 1043456  }
 0x123   : > { %v499_v1 = vmul.f32 %v485_v43, %v473_v56  ;;  %v2195_v2 = vmul.f32 %v1208_v44, %v473_v56  ;;  %2643 = vst [vmem:[#allocation3_spill] sm:$0xff] %v2218_v30  ;;  %v456_v31 = vmul.f32 %v445_v48, %v428_v58  ;;  %v1839_v32 = vcombine.high %v2218_v30, %v2218_v30 }
 0x124   : > { %v2222_v35 = vmul.f32 %v1181_v54, %v428_v58  ;;  %v2226_v43 = vmul.f32 %v1185_v55, %v427_v3  ;;  %v1833_v54 = vld [vmem:[%s2629_s4 + $0x46] ss:$8 sm:$0xf] }
 0x125   : > { %v507_v5 = vpop.permute.xlu0 %506  ;;  %v469_v6 = vpop.permute.xlu1 %468  ;;  %v1502_v16 = vpack.c.bf16 %v499_v1, %v455_v62  ;;  %1841 = vmatprep.mubr.msk.bf16.mxu0 %vm1559_vm4, %v1839_v32  ;;  %1843 = vmatprep.mubr.msk.bf16.mxu1 %vm1559_vm4, %v1839_v32 }
 0x126   : > { %v474_v12 = vsel %vm470_vm3, %v469_v6, %v463_v10  ;;  %v457_v10 = vmul.f32 %v449_v53, %v427_v3  ;;  %2644 = vst [vmem:[#allocation4_spill] sm:$0xff] %v2226_v43  ;;  %v1815_v53 = vld [vmem:[%s2629_s4 + $0x4] ss:$8 sm:$0xf]  ;;  %v1239_v3 = vrot.slane %v1833_v54, %v2050_v29 }
 0x127   : > { %v498_v27 = vmul.f32 %v481_v59, %v474_v12  ;;  %v2213_v28 = vmul.f32 %v1220_v60, %v474_v12  ;;  %1578 = vmatprep.subr.bf16.mxu0 %v1502_v16  ;;  %v1816_v59 = vld [vmem:[%s2629_s4 + $0x5] ss:$8 sm:$0xf]  ;;  %v1834_v60 = vld [vmem:[%s2629_s4 + $0x47] ss:$8 sm:$0xf]  ;;  %v529_v1 = vrot.slane %v1815_v53, %v2059_v34  ;;  %v533_v16 = vrot.slane %v1815_v53, %v2065_v36 }
 0x128   : > { %v573_v58 = vrot.slane %v1816_v59, %v2059_v34  ;;  %v581_v42 = vrot.slane %v1816_v59, %v2057_v33  ;;  %v1278_v40 = vrot.slane %v1834_v60, %v2065_v36 }
 0x129   : > { %v551_v37 = vpop.permute.xlu0 %550  ;;  %v467_v38 = vpop.permute.xlu1 %466  ;;  %v1501_v41 = vpack.c.bf16 %v498_v27, %v454_v22  ;;  %v537_v27 = vrot.slane %v1815_v53, %v2057_v33 }
 0x12a   : > { %v471_v44 = vsel %vm470_vm3, %v467_v38, %v469_v6  ;;  %v472_v45 = vsel %vm470_vm3, %v465_v50, %v467_v38  ;;  %v1270_v6 = vrot.slane %v1834_v60, %v2050_v29  ;;  %vm1672_vm3 = vcmask 7168  }
 0x12b   : > { %v500_v46 = vmul.f32 %v489_v61, %v472_v45  ;;  %v501_v47 = vmul.f32 %v493_v8, %v471_v44  ;;  %v2232_v48 = vmul.f32 %v1212_v11, %v472_v45  ;;  %v2234_v49 = vmul.f32 %v1216_v17, %v471_v44  ;;  %1579 = vmatpush1.bf16.msra.mxu0 %v1501_v41 }
 0x12c   : > { %v525_v8 = vrot.slane %v1815_v53, %v2050_v29  ;;  %v1251_v11 = vrot.slane %v1833_v54, %v2057_v33  ;;  %v569_v41 = vrot.slane %v1816_v59, %v2050_v29  ;;  %v1282_v44 = vrot.slane %v1834_v60, %v2057_v33 }
 0x12d   : > { %2645 = vst [vmem:[#allocation5_spill] sm:$0xff] %v2234_v49  ;;  %v513_v55 = vpop.permute.xlu0 %512  ;;  %v509_v56 = vpop.permute.xlu1 %508  ;;  %v1504_v50 = vpack.c.bf16 %v501_v47, %v457_v10  ;;  %v1503_v57 = vpack.c.bf16 %v500_v46, %v456_v31  ;;  %v1243_v31 = vrot.slane %v1833_v54, %v2059_v34  ;;  %v1247_v10 = vrot.slane %v1833_v54, %v2065_v36 }
 0x12e   : > { %v517_v12 = vsel %vm514_vm5, %v507_v5, %v509_v56  ;;  %v518_v38 = vsel %vm514_vm5, %v513_v55, %v507_v5  ;;  %v577_v45 = vrot.slane %v1816_v59, %v2065_v36  ;;  %v1274_v5 = vrot.slane %v1834_v60, %v2059_v34 }
 0x12f   : > { %1619 = vmatprep.subr.bf16.mxu1 %v1504_v50  ;;  %v543_v46 = vmul.f32 %v529_v1, %v517_v12  ;;  %v2273_v47 = vmul.f32 %v1239_v3, %v517_v12  ;;  %v2655_v24 = vpack.c.bf16 %v2232_v48, %v2222_v35  ;;  %v2664_v35 = vld [vmem:[#allocation4_spill] sm:$0xff] }
 0x130   : > { %1620 = vmatpush1.bf16.msra.mxu1 %v1503_v57 }
 0x131   : > { %v511_v17 = vpop.permute.xlu0 %510  ;;  %v553_v22 = vpop.permute.xlu1 %552 }
 0x132   : > { %v561_v32 = vsel %vm558_vm6, %v551_v37, %v553_v22  ;;  %v515_v54 = vsel %vm514_vm5, %v511_v17, %v513_v55  ;;  %v516_v21 = vsel %vm514_vm5, %v509_v56, %v511_v17  ;;  %v2288_v55 = vmul.f32 %v1251_v11, %v518_v38 }
 0x133   : > { %v587_v53 = vmul.f32 %v573_v58, %v561_v32  ;;  %v2275_v50 = vmul.f32 %v1270_v6, %v561_v32  ;;  %v542_v6 = vmul.f32 %v525_v8, %v518_v38  ;;  %v544_v59 = vmul.f32 %v533_v16, %v516_v21 }
 0x134   : > { %2646 = vst [vmem:[#allocation6_spill] sm:$0xff] %v2288_v55  ;;  %v545_v13 = vmul.f32 %v537_v27, %v515_v54  ;;  %v2296_v17 = vmul.f32 %v1247_v10, %v515_v54 }
 0x135   : > { %v595_v57 = vpop.permute.xlu0 %594  ;;  %v557_v62 = vpop.permute.xlu1 %556  ;;  %v1506_v3 = vpack.c.bf16 %v587_v53, %v543_v46 }
 0x136   : > { %v562_v1 = vsel %vm558_vm6, %v557_v62, %v551_v37  ;;  %v2294_v37 = vmul.f32 %v1243_v31, %v516_v21  ;;  %2648 = vst [vmem:[#allocation8_spill] sm:$0xff] %v2296_v17  ;;  %v1817_v21 = vld [vmem:[%s2629_s4 + $0x6] ss:$8 sm:$0xf] }
 0x137   : > { %v586_v12 = vmul.f32 %v569_v41, %v562_v1  ;;  %v2290_v32 = vmul.f32 %v1282_v44, %v562_v1  ;;  %1580 = vmatprep.subr.bf16.mxu0 %v1506_v3  ;;  %v1835_v31 = vld [vmem:[%s2629_s4 + $0x60] ss:$8 sm:$0xf]  ;;  %v613_v54 = vrot.slane %v1817_v21, %v2050_v29  ;;  %v621_v3 = vrot.slane %v1817_v21, %v2065_v36 }
 0x139   : > { %2647 = vst [vmem:[#allocation7_spill] sm:$0xff] %v2290_v32  ;;  %v639_v60 = vpop.permute.xlu0 %638  ;;  %v555_v61 = vpop.permute.xlu1 %554  ;;  %v1505_v63 = vpack.c.bf16 %v586_v12, %v542_v6 }
 0x13a   : > { %v559_v8 = vsel %vm558_vm6, %v555_v61, %v557_v62  ;;  %v560_v11 = vsel %vm558_vm6, %v553_v22, %v555_v61  ;;  %v1301_v22 = vrot.slane %v1835_v31, %v2050_v29 }
 0x13b   : > { %v588_v38 = vmul.f32 %v577_v45, %v560_v11  ;;  %v589_v41 = vmul.f32 %v581_v42, %v559_v8  ;;  %v2302_v16 = vmul.f32 %v1274_v5, %v560_v11  ;;  %v2304_v27 = vmul.f32 %v1278_v40, %v559_v8  ;;  %1581 = vmatpush1.bf16.msra.mxu0 %v1505_v63  ;;  %v1818_v42 = vld [vmem:[%s2629_s4 + $0x7] ss:$8 sm:$0xf]  ;;  %v1836_v63 = vld [vmem:[%s2629_s4 + $0x61] ss:$8 sm:$0xf] }
 0x13c   : > { %v661_v45 = vrot.slane %v1818_v42, %v2059_v34  ;;  %v1332_v53 = vrot.slane %v1836_v63, %v2050_v29  ;;  %v1313_v5 = vrot.slane %v1835_v31, %v2057_v33  ;;  %v1305_v8 = vrot.slane %v1835_v31, %v2059_v34  ;;  %v2667_v48 = vld [vmem:[#allocation6_spill] sm:$0xff] }
 0x13d   : > { %2649 = vst [vmem:[#allocation9_spill] sm:$0xff] %v2304_v27  ;;  %v601_v10 = vpop.permute.xlu0 %600  ;;  %v597_v62 = vpop.permute.xlu1 %596  ;;  %v1508_v44 = vpack.c.bf16 %v589_v41, %v545_v13  ;;  %v1507_v46 = vpack.c.bf16 %v588_v38, %v544_v59  ;;  %v617_v13 = vrot.slane %v1817_v21, %v2059_v34  ;;  %v625_v59 = vrot.slane %v1817_v21, %v2057_v33 }
 0x13e   : > { %v605_v1 = vsel %vm602_vm7, %v595_v57, %v597_v62  ;;  %v1309_v11 = vrot.slane %v1835_v31, %v2065_v36  ;;  %v606_v41 = vsel %vm602_vm7, %v601_v10, %v595_v57  ;;  %v665_v61 = vrot.slane %v1818_v42, %v2065_v36 }
 0x13f   : > { %1621 = vmatprep.subr.bf16.mxu1 %v1508_v44  ;;  %v657_v44 = vrot.slane %v1818_v42, %v2050_v29  ;;  %v631_v56 = vmul.f32 %v617_v13, %v605_v1  ;;  %v2343_v58 = vmul.f32 %v1301_v22, %v605_v1  ;;  %v669_v17 = vrot.slane %v1818_v42, %v2057_v33 }
 0x140   : > { %1622 = vmatpush1.bf16.msra.mxu1 %v1507_v46  ;;  %v1344_v46 = vrot.slane %v1836_v63, %v2057_v33  ;;  %v1336_v57 = vrot.slane %v1836_v63, %v2059_v34  ;;  %v1340_v27 = vrot.slane %v1836_v63, %v2065_v36 }
 0x141   : > { %v599_v6 = vpop.permute.xlu0 %598  ;;  %v641_v12 = vpop.permute.xlu1 %640 }
 0x142   : > { %v649_v38 = vsel %vm646_vm8, %v639_v60, %v641_v12  ;;  %v603_v31 = vsel %vm602_vm7, %v599_v6, %v601_v10  ;;  %v604_v55 = vsel %vm602_vm7, %v597_v62, %v599_v6  ;;  %v2358_v10 = vmul.f32 %v1313_v5, %v606_v41 }
 0x143   : > { %v675_v21 = vmul.f32 %v661_v45, %v649_v38  ;;  %v2345_v40 = vmul.f32 %v1332_v53, %v649_v38  ;;  %v630_v53 = vmul.f32 %v613_v54, %v606_v41  ;;  %v632_v42 = vmul.f32 %v621_v3, %v604_v55 }
 0x144   : > { %2650 = vst [vmem:[#allocation10_spill] sm:$0xff] %v2358_v10  ;;  %v633_v32 = vmul.f32 %v625_v59, %v603_v31 }
 0x145   : > { %v683_v39 = vpop.permute.xlu0 %682  ;;  %v645_v30 = vpop.permute.xlu1 %644  ;;  %v1510_v22 = vpack.c.bf16 %v675_v21, %v631_v56  ;;  %v2366_v56 = vmul.f32 %v1309_v11, %v603_v31 }
 0x146   : > { %v650_v13 = vsel %vm646_vm8, %v645_v30, %v639_v60  ;;  %v2364_v60 = vmul.f32 %v1305_v8, %v604_v55  ;;  %v1819_v55 = vld [vmem:[%s2629_s4 + $0x20] ss:$8 sm:$0xf] }
 0x147   : > { %v674_v1 = vmul.f32 %v657_v44, %v650_v13  ;;  %v2360_v38 = vmul.f32 %v1344_v46, %v650_v13  ;;  %1582 = vmatprep.subr.bf16.mxu0 %v1510_v22  ;;  %2651 = vst [vmem:[#allocation11_spill] sm:$0xff] %v2366_v56  ;;  %v701_v31 = vrot.slane %v1819_v55, %v2050_v29 }
 0x149   : > { %v727_v63 = vpop.permute.xlu0 %726  ;;  %v643_v43 = vpop.permute.xlu1 %642  ;;  %v1509_v49 = vpack.c.bf16 %v674_v1, %v630_v53 }
 0x14a   : > { %v647_v54 = vsel %vm646_vm8, %v643_v43, %v645_v30  ;;  %v648_v5 = vsel %vm646_vm8, %v641_v12, %v643_v43  ;;  %v1820_v30 = vld [vmem:[%s2629_s4 + $0x21] ss:$8 sm:$0xf] }
 0x14b   : > { %v676_v6 = vmul.f32 %v665_v61, %v648_v5  ;;  %v677_v41 = vmul.f32 %v669_v17, %v647_v54  ;;  %v2372_v3 = vmul.f32 %v1336_v57, %v648_v5  ;;  %v2374_v59 = vmul.f32 %v1340_v27, %v647_v54  ;;  %1583 = vmatpush1.bf16.msra.mxu0 %v1509_v49 }
 0x14c   : > { %v705_v49 = vrot.slane %v1819_v55, %v2059_v34  ;;  %v745_v57 = vrot.slane %v1820_v30, %v2050_v29  ;;  %v709_v54 = vrot.slane %v1819_v55, %v2065_v36  ;;  %v713_v5 = vrot.slane %v1819_v55, %v2057_v33 }
 0x14d   : > { %2652 = vst [vmem:[#allocation12_spill] sm:$0xff] %v2374_v59  ;;  %v689_v8 = vpop.permute.xlu0 %688  ;;  %v685_v11 = vpop.permute.xlu1 %684  ;;  %v1512_v44 = vpack.c.bf16 %v677_v41, %v633_v32  ;;  %v1511_v46 = vpack.c.bf16 %v676_v6, %v632_v42  ;;  %v749_v32 = vrot.slane %v1820_v30, %v2059_v34  ;;  %v753_v17 = vrot.slane %v1820_v30, %v2065_v36 }
 0x14e   : > { %v2392_v27 = vsel %vm690_vm9, %v683_v39, %v685_v11  ;;  %v2400_v13 = vsel %vm690_vm9, %v689_v8, %v683_v39  ;;  %v757_v39 = vrot.slane %v1820_v30, %v2057_v33 }
 0x14f   : > { %1623 = vmatprep.subr.bf16.mxu1 %v1512_v44  ;;  %v719_v22 = vmul.f32 %v705_v49, %v2392_v27  ;;  %v718_v44 = vmul.f32 %v701_v31, %v2400_v13 }
 0x150   : > { %1624 = vmatpush1.bf16.msra.mxu1 %v1511_v46 }
 0x151   : > { %v687_v61 = vpop.permute.xlu0 %686  ;;  %v729_v12 = vpop.permute.xlu1 %728 }
 0x152   : > { %v737_v21 = vsel %vm734_vm10, %v727_v63, %v729_v12  ;;  %v2412_v49 = vsel %vm690_vm9, %v687_v61, %v689_v8 }
 0x153   : > { %v763_v53 = vmul.f32 %v749_v32, %v737_v21  ;;  %v2416_v32 = vsel %vm690_vm9, %v685_v11, %v687_v61  ;;  %v1821_v11 = vld [vmem:[%s2629_s4 + $0x22] ss:$8 sm:$0xf]  ;;  %v1822_v61 = vld [vmem:[%s2629_s4 + $0x23] ss:$8 sm:$0xf] }
 0x154   : > { %v720_v30 = vmul.f32 %v709_v54, %v2416_v32  ;;  %v793_v54 = vrot.slane %v1821_v11, %v2059_v34 }
 0x155   : > { %v771_v1 = vpop.permute.xlu0 %770  ;;  %v733_v42 = vpop.permute.xlu1 %732  ;;  %v1514_v41 = vpack.c.bf16 %v763_v53, %v719_v22  ;;  %v721_v22 = vmul.f32 %v713_v5, %v2412_v49 }
 0x156   : > { %v738_v6 = vsel %vm734_vm10, %v733_v42, %v727_v63 }
 0x157   : > { %v762_v46 = vmul.f32 %v745_v57, %v738_v6  ;;  %1584 = vmatprep.subr.bf16.mxu0 %v1514_v41 }
 0x159   : > { %v815_v55 = vpop.permute.xlu0 %814  ;;  %v731_v21 = vpop.permute.xlu1 %730  ;;  %v1513_v63 = vpack.c.bf16 %v762_v46, %v718_v44 }
 0x15a   : > { %v735_v31 = vsel %vm734_vm10, %v731_v21, %v733_v42  ;;  %v736_v57 = vsel %vm734_vm10, %v729_v12, %v731_v21  ;;  %v789_v21 = vrot.slane %v1821_v11, %v2050_v29 }
 0x15b   : > { %v764_v8 = vmul.f32 %v753_v17, %v736_v57  ;;  %v765_v53 = vmul.f32 %v757_v39, %v735_v31  ;;  %1585 = vmatpush1.bf16.msra.mxu0 %v1513_v63  ;;  %v837_v17 = vrot.slane %v1822_v61, %v2059_v34  ;;  %v833_v57 = vrot.slane %v1822_v61, %v2050_v29 }
 0x15d   : > { %v777_v42 = vpop.permute.xlu0 %776  ;;  %v773_v6 = vpop.permute.xlu1 %772  ;;  %v1516_v12 = vpack.c.bf16 %v765_v53, %v721_v22  ;;  %v1515_v41 = vpack.c.bf16 %v764_v8, %v720_v30 }
 0x15e   : > { %v781_v5 = vsel %vm778_vm11, %v771_v1, %v773_v6  ;;  %v782_v30 = vsel %vm778_vm11, %v777_v42, %v771_v1  ;;  %v1824_v1 = vld [vmem:[%s2629_s4 + $0x25] ss:$8 sm:$0xf] }
 0x15f   : > { %1625 = vmatprep.subr.bf16.mxu1 %v1516_v12  ;;  %v807_v63 = vmul.f32 %v793_v54, %v781_v5  ;;  %v797_v12 = vrot.slane %v1821_v11, %v2065_v36  ;;  %v1823_v54 = vld [vmem:[%s2629_s4 + $0x24] ss:$8 sm:$0xf]  ;;  %v806_v5 = vmul.f32 %v789_v21, %v782_v30  ;;  %v912_v59 = vrot.slane %v1824_v1, %v2059_v34 }
 0x160   : > { %1626 = vmatpush1.bf16.msra.mxu1 %v1515_v41  ;;  %v801_v41 = vrot.slane %v1821_v11, %v2057_v33  ;;  %v845_v11 = vrot.slane %v1822_v61, %v2057_v33 }
 0x161   : > { %v775_v44 = vpop.permute.xlu0 %774  ;;  %v817_v46 = vpop.permute.xlu1 %816 }
 0x162   : > { %v825_v39 = vsel %vm822_vm12, %v815_v55, %v817_v46 }
 0x163   : > { %v851_v31 = vmul.f32 %v837_v17, %v825_v39  ;;  %v841_v17 = vrot.slane %v1822_v61, %v2065_v36  ;;  %v780_v39 = vsel %vm778_vm11, %v773_v6, %v775_v44  ;;  %v881_v61 = vrot.slane %v1823_v54, %v2059_v34 }
 0x164   : > { %v808_v21 = vmul.f32 %v797_v12, %v780_v39 }
 0x165   : > { %v859_v22 = vpop.permute.xlu0 %858  ;;  %v821_v8 = vpop.permute.xlu1 %820  ;;  %v1518_v53 = vpack.c.bf16 %v851_v31, %v807_v63  ;;  %v877_v31 = vrot.slane %v1823_v54, %v2050_v29 }
 0x166   : > { %v826_v62 = vsel %vm822_vm12, %v821_v8, %v815_v55  ;;  %v779_v55 = vsel %vm778_vm11, %v775_v44, %v777_v42 }
 0x167   : > { %v850_v63 = vmul.f32 %v833_v57, %v826_v62  ;;  %1586 = vmatprep.subr.bf16.mxu0 %v1518_v53  ;;  %v809_v57 = vmul.f32 %v801_v41, %v779_v55  ;;  %v908_v53 = vrot.slane %v1824_v1, %v2050_v29 }
 0x169   : > { %v865_v45 = vpop.permute.xlu0 %864  ;;  %v819_v43 = vpop.permute.xlu1 %818  ;;  %v1517_v56 = vpack.c.bf16 %v850_v63, %v806_v5  ;;  %v925_v55 = vmul.f32 %v908_v53, %v1965_v15  ;;  %v1825_v15 = vld [vmem:[%s2629_s4 + $0x26] ss:$8 sm:$0xf] }
 0x16a   : > { %v823_v6 = vsel %vm822_vm12, %v819_v43, %v821_v8  ;;  %v824_v62 = vsel %vm822_vm12, %v817_v46, %v819_v43  ;;  %v870_v42 = vsel %vm866_vm13, %v865_v45, %v859_v22  ;;  %v920_v43 = vrot.slane %v1824_v1, %v2057_v33 }
 0x16b   : > { %v852_v44 = vmul.f32 %v841_v17, %v824_v62  ;;  %v853_v30 = vmul.f32 %v845_v11, %v823_v6  ;;  %1587 = vmatpush1.bf16.msra.mxu0 %v1517_v56  ;;  %v894_v10 = vmul.f32 %v877_v31, %v870_v42  ;;  %v916_v46 = vrot.slane %v1824_v1, %v2065_v36 }
 0x16c   : > { %v885_v17 = vrot.slane %v1823_v54, %v2065_v36  ;;  %v889_v56 = vrot.slane %v1823_v54, %v2057_v33  ;;  %v926_v11 = vmul.f32 %v912_v59, %v1969_v18  ;;  %v928_v54 = vmul.f32 %v920_v43, %v1971_v19 }
 0x16d   : > { %v936_v5 = vpop.permute.xlu0 %935  ;;  %v861_v63 = vpop.permute.xlu1 %860  ;;  %v1520_v12 = vpack.c.bf16 %v853_v30, %v809_v57  ;;  %v1519_v39 = vpack.c.bf16 %v852_v44, %v808_v21  ;;  %v1521_v62 = vpack.c.bf16 %v925_v55, %v894_v10  ;;  %v927_v18 = vmul.f32 %v916_v46, %v1975_v20 }
 0x16e   : > { %v869_v8 = vsel %vm866_vm13, %v859_v22, %v861_v63  ;;  %v956_v30 = vrot.slane %v1825_v15, %v2059_v34  ;;  %v960_v55 = vrot.slane %v1825_v15, %v2065_v36 }
 0x16f   : > { %v895_v41 = vmul.f32 %v881_v61, %v869_v8  ;;  %1627 = vmatprep.subr.bf16.mxu1 %v1520_v12 }
 0x170   : > { %1628 = vmatpush1.bf16.msra.mxu1 %v1519_v39  ;;  %v952_v39 = vrot.slane %v1825_v15, %v2050_v29 }
 0x171   : > { %v980_v21 = vpop.permute.xlu0 %979  ;;  %v863_v31 = vpop.permute.xlu1 %862  ;;  %v1522_v6 = vpack.c.bf16 %v926_v11, %v895_v41 }
 0x172   : > { %v867_v22 = vsel %vm866_vm13, %v863_v31, %v865_v45  ;;  %v868_v1 = vsel %vm866_vm13, %v861_v63, %v863_v31  ;;  %v1826_v45 = vld [vmem:[%s2629_s4 + $0x27] ss:$8 sm:$0xf]  ;;  %v964_v31 = vrot.slane %v1825_v15, %v2057_v33 }
 0x173   : > { %v896_v61 = vmul.f32 %v885_v17, %v868_v1  ;;  %v897_v57 = vmul.f32 %v889_v56, %v867_v22  ;;  %1588 = vmatprep.subr.bf16.mxu0 %v1522_v6  ;;  %v1000_v19 = vrot.slane %v1826_v45, %v2059_v34  ;;  %v996_v46 = vrot.slane %v1826_v45, %v2050_v29 }
 0x174   : > { %1589 = vmatpush1.bf16.msra.mxu0 %v1521_v62  ;;  %v1004_v62 = vrot.slane %v1826_v45, %v2065_v36 }
 0x175   : > { %v934_v59 = vpop.permute.xlu0 %933  ;;  %v938_v10 = vpop.permute.xlu1 %937  ;;  %v1524_v42 = vpack.c.bf16 %v928_v54, %v897_v57  ;;  %v1523_v44 = vpack.c.bf16 %v927_v18, %v896_v61  ;;  %v1008_v61 = vrot.slane %v1826_v45, %v2057_v33  ;;  %v1827_v45 = vld [vmem:[%s2629_s4 + $0x40] ss:$8 sm:$0xf] }
 0x176   : > { %v943_v20 = vsel %vm941_vm14, %v936_v5, %v938_v10  ;;  %v944_v41 = vsel %vm941_vm14, %v934_v59, %v936_v5 }
 0x177   : > { %1629 = vmatprep.subr.bf16.mxu1 %v1524_v42  ;;  %v970_v8 = vmul.f32 %v956_v30, %v943_v20  ;;  %v969_v22 = vmul.f32 %v952_v39, %v944_v41  ;;  %v1044_v39 = vrot.slane %v1827_v45, %v2059_v34 }
 0x178   : > { %1630 = vmatpush1.bf16.msra.mxu1 %v1523_v44 }
 0x179   : > { %v940_v53 = vpop.permute.xlu0 %939  ;;  %v982_v63 = vpop.permute.xlu1 %981 }
 0x17a   : > { %v987_v12 = vsel %vm985_vm15, %v980_v21, %v982_v63  ;;  %v942_v5 = vsel %vm941_vm14, %v938_v10, %v940_v53  ;;  %v945_v57 = vsel %vm941_vm14, %v940_v53, %v934_v59  ;;  %v1828_v53 = vld [vmem:[%s2629_s4 + $0x41] ss:$8 sm:$0xf] }
 0x17b   : > { %v1014_v43 = vmul.f32 %v1000_v19, %v987_v12  ;;  %v971_v44 = vmul.f32 %v960_v55, %v942_v5  ;;  %v972_v30 = vmul.f32 %v964_v31, %v945_v57  ;;  %v1084_v31 = vrot.slane %v1828_v53, %v2050_v29 }
 0x17c   : > { %v1052_v5 = vrot.slane %v1827_v45, %v2057_v33 }
 0x17d   : > { %v1024_v17 = vpop.permute.xlu0 %1023  ;;  %v978_v56 = vpop.permute.xlu1 %977  ;;  %v1526_v11 = vpack.c.bf16 %v1014_v43, %v970_v8  ;;  %v1088_v8 = vrot.slane %v1828_v53, %v2059_v34 }
 0x17e   : > { %v988_v6 = vsel %vm985_vm15, %v978_v56, %v980_v21 }
 0x17f   : > { %v1013_v1 = vmul.f32 %v996_v46, %v988_v6  ;;  %1590 = vmatprep.subr.bf16.mxu0 %v1526_v11 }
 0x181   : > { %v984_v54 = vpop.permute.xlu1 %983  ;;  %v1525_v18 = vpack.c.bf16 %v1013_v1, %v969_v22  ;;  %v1068_v42 = vpop.permute.xlu0 %1067 }
 0x182   : > { %v986_v15 = vsel %vm985_vm15, %v982_v63, %v984_v54  ;;  %v989_v21 = vsel %vm985_vm15, %v984_v54, %v978_v56  ;;  %v1040_v56 = vrot.slane %v1827_v45, %v2050_v29 }
 0x183   : > { %v1015_v19 = vmul.f32 %v1004_v62, %v986_v15  ;;  %v1016_v20 = vmul.f32 %v1008_v61, %v989_v21  ;;  %1591 = vmatpush1.bf16.msra.mxu0 %v1525_v18  ;;  %v1048_v61 = vrot.slane %v1827_v45, %v2065_v36  ;;  %v1092_v15 = vrot.slane %v1828_v53, %v2065_v36 }
 0x184   : > { %v1096_v21 = vrot.slane %v1828_v53, %v2057_v33  ;;  %v2653_v53 = vpack.c.bf16 %v2137_v23, %v2127_v9  ;;  %v2656_v9 = vpack.c.bf16 %v2121_v7, %v2117_v4  ;;  %v2660_v4 = vpack.c.bf16 %v2213_v28, %v2211_v26  ;;  %v2666_v28 = vld [vmem:[#allocation7_spill] sm:$0xff] }
 0x185   : > { %v1528_v10 = vpack.c.bf16 %v1016_v20, %v972_v30  ;;  %v1527_v59 = vpack.c.bf16 %v1015_v19, %v971_v44  ;;  %v1026_v63 = vpop.permute.xlu1 %1025  ;;  %v1022_v12 = vpop.permute.xlu0 %1021 }
 0x186   : > { %v1031_v43 = vsel %vm1029_vm0, %v1024_v17, %v1026_v63  ;;  %v1032_v6 = vsel %vm1029_vm0, %v1022_v12, %v1024_v17 }
 0x187   : > { %1631 = vmatprep.subr.bf16.mxu1 %v1528_v10  ;;  %v1058_v11 = vmul.f32 %v1044_v39, %v1031_v43  ;;  %v1057_v54 = vmul.f32 %v1040_v56, %v1032_v6  ;;  %v2654_v43 = vpack.c.bf16 %v2091_v52, %v2089_v51  ;;  %v2658_v51 = vpack.c.bf16 %v2302_v16, %v2294_v37 }
 0x188   : > { %1632 = vmatpush1.bf16.msra.mxu1 %v1527_v59  ;;  %v2659_v52 = vpack.c.bf16 %v2139_v25, %v2131_v14  ;;  %v2662_v14 = vpack.c.bf16 %v2372_v3, %v2364_v60  ;;  %v2663_v25 = vld [vmem:[#allocation5_spill] sm:$0xff]  ;;  %v2668_v37 = vpack.c.bf16 %v2666_v28, %v2667_v48  ;;  %v2671_v60 = vld [vmem:[#allocation8_spill] sm:$0xff] }
 0x189   : > { %v1070_v46 = vpop.permute.xlu1 %1069  ;;  %v1028_v22 = vpop.permute.xlu0 %1027  ;;  %v2665_v26 = vpack.c.bf16 %v2663_v25, %v2664_v35 }
 0x18a   : > { %v1075_v41 = vsel %vm1073_vm1, %v1068_v42, %v1070_v46  ;;  %v1030_v17 = vsel %vm1029_vm0, %v1026_v63, %v1028_v22  ;;  %v1033_v44 = vsel %vm1029_vm0, %v1028_v22, %v1022_v12  ;;  %v1837_v12 = vld [vmem:[%s2629_s4 + $0x62] ss:$8 sm:$0xf] }
 0x18b   : > { %v1102_v55 = vmul.f32 %v1088_v8, %v1075_v41  ;;  %v1059_v45 = vmul.f32 %v1048_v61, %v1030_v17  ;;  %v1060_v10 = vmul.f32 %v1052_v5, %v1033_v44  ;;  %v1363_v23 = vrot.slane %v1837_v12, %v2050_v29 }
 0x18c   : > { %v2657_v41 = vpack.c.bf16 %v2195_v2, %v2193_v0  ;;  %v1375_v7 = vrot.slane %v1837_v12, %v2057_v33  ;;  %v1371_v0 = vrot.slane %v1837_v12, %v2065_v36  ;;  %v2661_v2 = vpack.c.bf16 %v2275_v50, %v2273_v47  ;;  %v2670_v50 = vld [vmem:[#allocation9_spill] sm:$0xff] }
 0x18d   : > { %v1530_v62 = vpack.c.bf16 %v1102_v55, %v1058_v11  ;;  %v1380_v29 = vmul.f32 %v1363_v23, %v2392_v27  ;;  %v2669_v47 = vpack.c.bf16 %v2345_v40, %v2343_v58  ;;  %v2672_v3 = vpack.c.bf16 %v2670_v50, %v2671_v60  ;;  %v2675_v55 = vld [vmem:[#allocation3_spill] sm:$0xff]  ;;  %v2676_v58 = vld [vmem:[#allocation12_spill] sm:$0xff] }
 0x18e   : > { %v1066_v1 = vpop.permute.xlu1 %1065  ;;  %v1383_v36 = vmul.f32 %v1375_v7, %v2400_v13  ;;  %v1382_v27 = vmul.f32 %v1371_v0, %v2412_v49  ;;  %v1838_v13 = vcombine.low %v2675_v55, %v2675_v55  ;;  %v2677_v40 = vld [vmem:[#allocation11_spill] sm:$0xff] }
 0x18f   : > { %v1076_v57 = vsel %vm1073_vm1, %v1066_v1, %v1068_v42  ;;  %1592 = vmatprep.subr.bf16.mxu0 %v1530_v62  ;;  %v1549_v16 = vpack.c.bf16 %v1380_v29, %v1380_v29  ;;  %v2678_v6 = vpack.c.bf16 %v2676_v58, %v2677_v40 }
 0x190   : > { %v1101_v18 = vmul.f32 %v1084_v31, %v1076_v57  ;;  %v1552_v49 = vpack.c.bf16 %v1383_v36, %v1383_v36  ;;  %v1551_v31 = vpack.c.bf16 %v1382_v27, %v1382_v27 }
 0x191   : > { %v1565_v11 = vsel %vm1563_vm2, %v1549_v16, 0 }
 0x192   : > { %v1072_v30 = vpop.permute.xlu1 %1071  ;;  %v1529_v19 = vpack.c.bf16 %v1101_v18, %v1057_v54  ;;  %v1571_v22 = vsel %vm1563_vm2, %v1551_v31, 0 }
 0x193   : > { %v1074_v20 = vsel %vm1073_vm1, %v1070_v46, %v1072_v30  ;;  %v1077_v42 = vsel %vm1073_vm1, %v1072_v30, %v1066_v1  ;;  %v1367_v46 = vrot.slane %v1837_v12, %v2059_v34 }
 0x194   : > { %v1103_v59 = vmul.f32 %v1092_v15, %v1074_v20  ;;  %v1104_v39 = vmul.f32 %v1096_v21, %v1077_v42  ;;  %1593 = vmatpush1.bf16.msra.mxu0 %v1529_v19 }
 0x195   : > { %1594 = vmatprep.subr.bf16.mxu0 %v2653_v53  ;;  %v1381_v34 = vmul.f32 %v1367_v46, %v2416_v32  ;;  %v2673_v32 = vld [vmem:[#allocation10_spill] sm:$0xff] }
 0x196   : > { %v1532_v63 = vpack.c.bf16 %v1104_v39, %v1060_v10  ;;  %v1531_v8 = vpack.c.bf16 %v1103_v59, %v1059_v45  ;;  %v2674_v56 = vpack.c.bf16 %v2360_v38, %v2673_v32 }
 0x197   : > { %v1550_v33 = vpack.c.bf16 %v1381_v34, %v1381_v34 }
 0x198   : > { %1595 = vmatpush1.bf16.msra.mxu0 %v2654_v43  ;;  %1633 = vmatprep.subr.bf16.mxu1 %v1532_v63 }
 0x199   : > { %1596 = vmatprep.subr.bf16.mxu0 %v2655_v24  ;;  %1634 = vmatpush1.bf16.msra.mxu1 %v1531_v8 }
 0x19a   : > { %1635 = vmatprep.subr.bf16.mxu1 %v2656_v9 }
 0x19c   : > { %1597 = vmatpush1.bf16.msra.mxu0 %v2657_v41 }
 0x19d   : > { %1598 = vmatprep.subr.bf16.mxu0 %v2658_v51  ;;  %1636 = vmatpush1.bf16.msra.mxu1 %v2659_v52 }
 0x19e   : > { %1637 = vmatprep.subr.bf16.mxu1 %v2660_v4 }
 0x1a0   : > { %1599 = vmatpush1.bf16.msra.mxu0 %v2661_v2 }
 0x1a1   : > { %1600 = vmatprep.subr.bf16.mxu0 %v2662_v14  ;;  %1638 = vmatpush1.bf16.msra.mxu1 %v2665_v26 }
 0x1a2   : > { %1639 = vmatprep.subr.bf16.mxu1 %v2668_v37 }
 0x1a4   : > { %1601 = vmatpush1.bf16.msra.mxu0 %v2669_v47 }
 0x1a5   : > { %1840 = vmatprep.subr.msk.bf16.mxu0 %vm1563_vm2, %v1550_v33  ;;  %1640 = vmatpush1.bf16.msra.mxu1 %v2672_v3 }
 0x1a6   : > { %1641 = vmatprep.subr.bf16.mxu1 %v2674_v56 }
 0x1a8   : > { %1603 = vmatpush1.bf16.msra.mxu0 %v1565_v11 }
 0x1a9   : > { %1642 = vmatpush1.bf16.msra.mxu1 %v2678_v6 }
 0x1aa   : > { %1842 = vmatprep.subr.msk.bf16.mxu1 %vm1563_vm2, %v1552_v49 }
 0x1ab   : > { %1609 = vmatmul.mubr.bf16.vlgmr.msra.gmra.mrb[0].mxu0 %v1838_v13 }
 0x1ad   : > { %1644 = vmatpush1.bf16.msra.mxu1 %v1571_v22 }
 0x1b0   : > { %1650 = vmatmul.mubr.bf16.vlgmr.msra.gmra.mrb[0].mxu1 %v1838_v13 }
 0x27e   : > { %v1610_v38 = vpop.f32.mrb[0].mxu0 }
 0x27f   : > { %1658 = vst [vmem:[%s291_s28] sm:$0xff] %v1610_v38  ;;  %v1612_v1 = vpop.f32.mrb[1].mxu0 }
 0x280   : > { %1659 = vst [vmem:[%s291_s28 + $0x8] sm:$0xff] %v1612_v1  ;;  %v1662_v62 = vadd.f32 %v1612_v1, %v1610_v38  ;;  %v1614_v61 = vpop.f32.mrb[2].mxu0 }
 0x281   : > { %v1615_v5 = vpop.f32.mrb[3].mxu0 }
 0x283   : > { %v1651_v57 = vpop.f32.mrb[0].mxu1 }
 0x284   : > { %1660 = vst [vmem:[%s291_s28 + $0x10] sm:$0xff] %v1651_v57  ;;  %v1653_v54 = vpop.f32.mrb[1].mxu1  ;;  %v1663_v18 = vadd.f32 %v1662_v62, %v1651_v57 }
 0x285   : > { %1661 = vst [vmem:[%s291_s28 + $0x18] sm:$0xff] %v1653_v54  ;;  %v1655_v15 = vpop.f32.mrb[2].mxu1 }
 0x286   : > { %v1656_v21 = vpop.f32.mrb[3].mxu1  ;;  %v1664_v17 = vadd.f32 %v1663_v18, %v1653_v54 }
 0x288   : > { %1665 = vadd.xlane.f32.xlu0 %v1664_v17 }
 0x315   : > { %v1666_v44 = vpop.xlane.xlu0 %1665 }
 0x316   : > { %v1667_v30 = vmul.f32 0.001953125, %v1666_v44  ;;  %1673 = vst.msk [vmem:[%s295_s9] sm:$0xff] %vm1672_vm3, %v1666_v44 }
 0x318   : > { %v1668_v19 = vsub.f32 %v1610_v38, %v1667_v30  ;;  %v1669_v20 = vsub.f32 %v1612_v1, %v1667_v30  ;;  %v1670_v42 = vsub.f32 %v1651_v57, %v1667_v30  ;;  %v1671_v45 = vsub.f32 %v1653_v54, %v1667_v30 }
 0x31a   : > { %v1674_v10 = vmul.f32 %v1668_v19, %v1668_v19  ;;  %v1675_v59 = vmul.f32 %v1669_v20, %v1669_v20  ;;  %v1676_v39 = vmul.f32 %v1670_v42, %v1670_v42  ;;  %v1677_v63 = vmul.f32 %v1671_v45, %v1671_v45 }
 0x31c   : > { %v1678_v53 = vadd.f32 %v1675_v59, %v1674_v10 }
 0x31e   : > { %v1679_v8 = vadd.f32 %v1678_v53, %v1676_v39 }
 0x320   : > { %v1680_v12 = vadd.f32 %v1679_v8, %v1677_v63 }
 0x322   : > { %1681 = vadd.xlane.f32.xlu1 %v1680_v12 }
 0x3af   : > { %v1682_v43 = vpop.xlane.xlu1 %1681 }
 0x3b0   : > { %1683 = vst.msk [vmem:[%s299_s11] sm:$0xff] %vm1672_vm3, %v1682_v43 }
 0x3b1 PF: > { %s18_s24 = sadd.s32 1, %s1883_s24  }
 0x3b2   : > { %p15_p4 = scmp.ge.s32.totalorder %s18_s24, 4  }
 0x3b4   :  { %17 = sbr.rel (!%p15_p4) target bundleno = 1 (0x1), region = 120 }

</bundles_post_ra>
